<compile_context>
chip_gen: v6e
topology: v6e:2x2x1
jax: 0.10.0
libtpu: 0.0.40
codegen_flags: <defaults>
</compile_context>

<pallas_src>
import math
from functools import partial

import numpy as np
import jax
import jax.numpy as jnp
from jax import lax
from jax.experimental import pallas as pl
from jax.experimental.pallas import tpu as pltpu

EPS = 1e-5


# --------------------------------------------------------------------------
# sizing helpers
# --------------------------------------------------------------------------
def _round_up(x, m):
    return (x + m - 1) // m * m


def _divisors_desc(h):
    return [d for d in range(h, 0, -1) if h % d == 0]


def _vmem_budget_bytes():
    """Generation-aware VMEM budget: big tiles on 128-MiB chips, safe on v7x."""
    cap = 128 * 2**20
    try:
        info = pltpu.get_tpu_info()
        cap = int(getattr(info, "vmem_capacity_bytes", cap))
    except Exception:
        pass
    if cap <= 64 * 2**20:                       # v7x-class TensorCore (64 MiB)
        return max(min(44 * 2**20, cap - 12 * 2**20), 16 * 2**20)
    return int(min(cap - 28 * 2**20, 100 * 2**20))   # v5e / v6e (128 MiB)


def _conv_step_bytes(th, w, ci, co, bn_relu_input):
    """Per-grid-step VMEM footprint of one conv pass (generous estimate)."""
    rows = th + 2
    io = (th * w * ci * 2            # mid tile (bf16)
          + 2 * w * ci * 2           # up + dn halo rows
          + 3 * 3 * ci * co * 2      # bf16 weights
          + co * 4                   # bias
          + th * w * co * 2          # y output tile (bf16)
          + 2 * co * 4)              # stats tile
    if bn_relu_input:
        io += 2 * ci * 4             # scale / shift
    temps = (rows * w * ci * (4 if bn_relu_input else 0)   # f32 BN/ReLU copies
             + rows * w * ci * 2                           # row-concat window
             + rows * (w + 2) * ci * 2                     # width-padded window
             + rows * w * 3 * ci * 2                       # width-im2col slab
             + 2 * th * w * 3 * ci * 2                     # slab reshape copies
             + 2 * th * w * co * 4                         # f32 acc + dot temps
             + th * w * co * 2)                            # bf16 store cast
    return 2 * io + temps                                  # x2: double buffering


def _pick_conv_rows(h, w, ci, co, budget, bn_relu_input):
    # Largest divisor of H whose footprint fits (maximizes matmul M = TH*W and
    # amortizes the 2-row halo).  Prime H degrades to 1-row tiles (correct,
    # slow) -- acceptable for the shapes this module sees.
    for th in _divisors_desc(h):
        if _conv_step_bytes(th, w, ci, co, bn_relu_input) * 1.2 <= budget:
            return th
    return 1


def _bn_step_bytes(th, w, cp, cout):
    io = th * w * cp * 2 + 2 * cp * 4 + th * w * cout * 4
    temps = 2 * th * w * cp * 4
    return 2 * io + temps


def _pick_bn_rows(h, w, cp, cout, budget):
    for th in _divisors_desc(h):
        if _bn_step_bytes(th, w, cp, cout) * 1.2 <= budget:
            return th
    return 1


# --------------------------------------------------------------------------
# kernels
# --------------------------------------------------------------------------
def _conv3x3_kernel(*refs, TH, W, R, bn_relu_input):
    """One (batch, row-block) tile of a 3x3 SAME conv.

    refs (bn_relu_input=True):
      mid (1,TH,W,Ci) bf16, up (1,1,W,Ci), dn (1,1,W,Ci),
      scale (1,Ci) f32, shift (1,Ci) f32,
      wgt (3, 3*Ci, Co) bf16, bias (1,Co) f32,
      y (1,TH,W,Co) bf16 out, stats (1,1,2,Co) f32 out.
    refs (bn_relu_input=False): same without scale/shift.
    """
    if bn_relu_input:
        (mid_ref, up_ref, dn_ref, scale_ref, shift_ref, w_ref, b_ref,
         y_ref, stat_ref) = refs
    else:
        mid_ref, up_ref, dn_ref, w_ref, b_ref, y_ref, stat_ref = refs
        scale_ref = shift_ref = None

    r = pl.program_id(1)
    Ci = mid_ref.shape[-1]
    Co = w_ref.shape[-1]

    mid = mid_ref[0]                                    # (TH, W, Ci)
    up = up_ref[0]                                      # (1,  W, Ci)
    dn = dn_ref[0]                                      # (1,  W, Ci)

    if bn_relu_input:
        # Previous layer's BatchNorm + ReLU applied on the fly (f32 VPU math),
        # cast back to bf16 for the MXU feed.
        scale = scale_ref[...]
        shift = shift_ref[...]

        def act(v):
            a = jnp.maximum(v.astype(jnp.float32) * scale + shift, 0.0)
            return a.astype(jnp.bfloat16)

        mid, up, dn = act(mid), act(up), act(dn)

    # Clamped neighbour rows stand in for the zero rows of SAME padding at the
    # image top/bottom; the padding zeros apply to the *activation*, so zero
    # them after BN/ReLU.
    up = jnp.where(r > 0, up, jnp.zeros_like(up))
    dn = jnp.where(r < R - 1, dn, jnp.zeros_like(dn))

    # (TH+2, W, Ci) row window, then rebuild the +/-1 column halo in-kernel
    # (no halo columns are stored in HBM any more).
    win = jnp.concatenate([up, mid, dn], axis=0)                 # bf16
    zc = jnp.zeros((TH + 2, 1, Ci), jnp.bfloat16)
    winp = jnp.concatenate([zc, win, zc], axis=1)                # (TH+2, W+2, Ci)
    # Width-im2col: lane order (dj, ci) matches the weight reshape.
    wide = jnp.concatenate(
        [winp[:, 0:W, :], winp[:, 1:W + 1, :], winp[:, 2:W + 2, :]], axis=-1)

    wgt = w_ref[...]                                             # (3, 3Ci, Co)
    acc = jnp.dot(wide[0:TH].reshape(TH * W, 3 * Ci), wgt[0],
                  preferred_element_type=jnp.float32)
    acc += jnp.dot(wide[1:TH + 1].reshape(TH * W, 3 * Ci), wgt[1],
                   preferred_element_type=jnp.float32)
    acc += jnp.dot(wide[2:TH + 2].reshape(TH * W, 3 * Ci), wgt[2],
                   preferred_element_type=jnp.float32)
    acc += b_ref[...]                                            # (1, Co) bcast

    # Per-tile BatchNorm partial statistics from the exact f32 accumulator.
    s1 = jnp.sum(acc, axis=0, keepdims=True)                     # (1, Co)
    s2 = jnp.sum(acc * acc, axis=0, keepdims=True)               # (1, Co)
    stat_ref[0, 0] = jnp.concatenate([s1, s2], axis=0)           # (2, Co)

    # bf16 intermediate store (halves pass->pass HBM traffic).
    y_ref[0] = acc.reshape(TH, W, Co).astype(jnp.bfloat16)


def _bn_relu_kernel(y_ref, scale_ref, shift_ref, o_ref, *, c_out):
    y = y_ref[...].astype(jnp.float32)
    act = jnp.maximum(y * scale_ref[...] + shift_ref[...], 0.0)
    # Write only the real channels (lane slice) -> no padded 16x f32 write and
    # no XLA-side slice afterwards.
    o_ref[...] = act[..., :c_out]


# --------------------------------------------------------------------------
# pallas_call wrappers
# --------------------------------------------------------------------------
def _conv_pass(x, scale, shift, wgt, bias, *, H, W, TH, bn_relu_input, vmem_limit):
    N = x.shape[0]
    R = H // TH
    C_in = x.shape[-1]
    C_out = wgt.shape[-1]

    kernel = partial(_conv3x3_kernel, TH=TH, W=W, R=R, bn_relu_input=bn_relu_input)

    row_blk = lambda n, r: (n, r, 0, 0)
    row_up = lambda n, r: (n, jnp.maximum(r * TH - 1, 0), 0, 0)
    row_dn = lambda n, r: (n, jnp.minimum((r + 1) * TH, H - 1), 0, 0)
    bcast2 = lambda n, r: (0, 0)
    bcast3 = lambda n, r: (0, 0, 0)

    in_specs = [
        pl.BlockSpec((1, TH, W, C_in), row_blk),   # mid rows
        pl.BlockSpec((1, 1, W, C_in), row_up),     # halo row above (clamped)
        pl.BlockSpec((1, 1, W, C_in), row_dn),     # halo row below (clamped)
    ]
    args = [x, x, x]
    if bn_relu_input:
        in_specs += [pl.BlockSpec((1, C_in), bcast2),   # BN scale of prev layer
                     pl.BlockSpec((1, C_in), bcast2)]   # BN shift of prev layer
        args += [scale, shift]
    in_specs += [pl.BlockSpec((3, 3 * C_in, C_out), bcast3),   # weights (bf16)
                 pl.BlockSpec((1, C_out), bcast2)]             # bias (f32)
    args += [wgt, bias]

    y, stats = pl.pallas_call(
        kernel,
        grid=(N, R),
        in_specs=in_specs,
        out_specs=[
            pl.BlockSpec((1, TH, W, C_out), row_blk),
            pl.BlockSpec((1, 1, 2, C_out), row_blk),
        ],
        out_shape=[
            jax.ShapeDtypeStruct((N, H, W, C_out), jnp.bfloat16),
            jax.ShapeDtypeStruct((N, R, 2, C_out), jnp.float32),
        ],
        compiler_params=pltpu.CompilerParams(
            dimension_semantics=("parallel", "parallel"),
            vmem_limit_bytes=vmem_limit),
    )(*args)
    return y, stats


def _bn_relu_pass(y, scale, shift, *, H, W, TH, C_out, vmem_limit):
    N = y.shape[0]
    Cp = y.shape[-1]
    R = H // TH
    return pl.pallas_call(
        partial(_bn_relu_kernel, c_out=C_out),
        grid=(N, R),
        in_specs=[
            pl.BlockSpec((1, TH, W, Cp), lambda n, r: (n, r, 0, 0)),
            pl.BlockSpec((1, Cp), lambda n, r: (0, 0)),
            pl.BlockSpec((1, Cp), lambda n, r: (0, 0)),
        ],
        out_specs=pl.BlockSpec((1, TH, W, C_out), lambda n, r: (n, r, 0, 0)),
        out_shape=jax.ShapeDtypeStruct((N, H, W, C_out), jnp.float32),
        compiler_params=pltpu.CompilerParams(
            dimension_semantics=("parallel", "parallel"),
            vmem_limit_bytes=vmem_limit),
    )(y, scale, shift)


# --------------------------------------------------------------------------
# parameter prep / BN finalize (tiny XLA-side ops)
# --------------------------------------------------------------------------
def _prep_conv(w, b, cin, cin_p, cout, cout_p):
    wp = jnp.zeros((3, 3, cin_p, cout_p), jnp.float32)
    wp = wp.at[:, :, :cin, :cout].set(w.astype(jnp.float32))
    wr = wp.reshape(3, 3 * cin_p, cout_p).astype(jnp.bfloat16)   # (dj, ci) flat
    bp = jnp.zeros((1, cout_p), jnp.float32).at[:, :cout].set(
        b.reshape(1, cout).astype(jnp.float32))
    return wr, bp


def _pad_channels(v, c, cp, fill):
    out = jnp.full((1, cp), fill, jnp.float32)
    return out.at[:, :c].set(v.reshape(1, c).astype(jnp.float32))


def _finalize_bn(stats, count, gamma, beta):
    """Per-tile (sum, sum_sq) partials -> folded per-channel scale/shift.

    TODO(synk): E[x^2]-E[x]^2 in f32 can cancel for very large N*H*W or
    mean >> std; switch to a Welford-style combine of per-tile partials.
    """
    tot = jnp.sum(stats, axis=(0, 1))                       # (2, Cp)
    mean = tot[0] / count
    var = jnp.maximum(tot[1] / count - mean * mean, 0.0)    # biased variance
    scale = gamma.reshape(-1) * lax.rsqrt(var + EPS)
    shift = beta.reshape(-1) - mean * scale
    return scale.reshape(1, -1), shift.reshape(1, -1)


# --------------------------------------------------------------------------
# public forward (NCHW in / NCHW out, PyTorch semantics)
# --------------------------------------------------------------------------
def unet_conv2_forward(x_nchw, params):
    N, Cin, H, W = x_nchw.shape
    Cout = params["w1"].shape[-1]
    Cin_p = _round_up(Cin, 128)
    Cout_p = _round_up(Cout, 128)

    budget = _vmem_budget_bytes()
    TH1 = _pick_conv_rows(H, W, Cin_p, Cout_p, budget, bn_relu_input=False)
    TH2 = _pick_conv_rows(H, W, Cout_p, Cout_p, budget, bn_relu_input=True)
    TH3 = _pick_bn_rows(H, W, Cout_p, Cout, budget)

    # NHWC + zero channel padding to 128 lanes, bf16 MXU feed.
    # TODO(synk): fold this relayout/pad into pass 1's input DMA.
    x = jnp.transpose(x_nchw, (0, 2, 3, 1)).astype(jnp.float32)
    x = jnp.pad(x, ((0, 0), (0, 0), (0, 0), (0, Cin_p - Cin))).astype(jnp.bfloat16)

    w1, b1 = _prep_conv(params["w1"], params["b1"], Cin, Cin_p, Cout, Cout_p)
    w2, b2 = _prep_conv(params["w2"], params["b2"], Cout, Cout_p, Cout, Cout_p)
    g1 = _pad_channels(params["g1"], Cout, Cout_p, 1.0)
    be1 = _pad_channels(params["beta1"], Cout, Cout_p, 0.0)
    g2 = _pad_channels(params["g2"], Cout, Cout_p, 1.0)
    be2 = _pad_channels(params["beta2"], Cout, Cout_p, 0.0)

    # Pass 1: conv1 + bias -> bf16 pre-BN activation + BN1 partial stats.
    y1, st1 = _conv_pass(x, None, None, w1, b1, H=H, W=W, TH=TH1,
                         bn_relu_input=False, vmem_limit=budget)
    scale1, shift1 = _finalize_bn(st1, N * H * W, g1, be1)

    # Pass 2: BN1 + ReLU1 on the fly, then conv2 + bias + BN2 partial stats.
    y2, st2 = _conv_pass(y1, scale1, shift1, w2, b2, H=H, W=W, TH=TH2,
                         bn_relu_input=True, vmem_limit=budget)
    scale2, shift2 = _finalize_bn(st2, N * H * W, g2, be2)

    # Pass 3: BN2 + ReLU2, written with unpadded channels.
    out = _bn_relu_pass(y2, scale2, shift2, H=H, W=W, TH=TH3, C_out=Cout,
                        vmem_limit=budget)
    return jnp.transpose(out, (0, 3, 1, 2))


# --------------------------------------------------------------------------
# init + pure-JAX reference
# --------------------------------------------------------------------------
def init_params(key, in_channels, out_channels):
    """Conv2d-style uniform(+/- 1/sqrt(fan_in)) init; BN gamma=1, beta=0."""
    k1, k2, k3, k4 = jax.random.split(key, 4)

    def conv_init(kw, kb, cin, cout):
        bound = 1.0 / math.sqrt(cin * 9)
        w = jax.random.uniform(kw, (3, 3, cin, cout), jnp.float32, -bound, bound)
        b = jax.random.uniform(kb, (1, cout), jnp.float32, -bound, bound)
        return w, b

    w1, b1 = conv_init(k1, k2, in_channels, out_channels)
    w2, b2 = conv_init(k3, k4, out_channels, out_channels)
    return {
        "w1": w1, "b1": b1,
        "g1": jnp.ones((1, out_channels), jnp.float32),
        "beta1": jnp.zeros((1, out_channels), jnp.float32),
        "w2": w2, "b2": b2,
        "g2": jnp.ones((1, out_channels), jnp.float32),
        "beta2": jnp.zeros((1, out_channels), jnp.float32),
    }


def ref_forward(x_nchw, params):
    """Pure-JAX reference: bf16 conv operands (f32 accumulation) to mirror the
    kernel's MXU feed; BN (training-mode batch stats) and ReLU in f32."""
    x = jnp.transpose(x_nchw, (0, 2, 3, 1)).astype(jnp.float32)

    def block(x, w, b, g, beta):
        y = lax.conv_general_dilated(
            x.astype(jnp.bfloat16), w.astype(jnp.bfloat16),
            window_strides=(1, 1), padding="SAME",
            dimension_numbers=("NHWC", "HWIO", "NHWC"),
            preferred_element_type=jnp.float32) + b.reshape(1, 1, 1, -1)
        mean = jnp.mean(y, axis=(0, 1, 2), keepdims=True)
        var = jnp.mean((y - mean) ** 2, axis=(0, 1, 2), keepdims=True)
        y = (y - mean) * lax.rsqrt(var + EPS) * g.reshape(1, 1, 1, -1) \
            + beta.reshape(1, 1, 1, -1)
        return jnp.maximum(y, 0.0)

    y = block(x, params["w1"], params["b1"], params["g1"], params["beta1"])
    y = block(y, params["w2"], params["b2"], params["g2"], params["beta2"])
    return jnp.transpose(y, (0, 3, 1, 2))


if __name__ == "__main__":
    in_channels, out_channels = 4, 8
    N, H, W = 2, 16, 16

    key = jax.random.PRNGKey(0)
    kx, kp = jax.random.split(key)
    x = jax.random.normal(kx, (N, in_channels, H, W), jnp.float32)
    params = init_params(kp, in_channels, out_channels)

    fwd = jax.jit(unet_conv2_forward)
    out = jax.block_until_ready(fwd(x, params))
    ref = jax.block_until_ready(ref_forward(x, params))

    assert out.shape == (N, out_channels, H, W)
    # Tolerance covers bf16 storage of the intermediate activation (kernel path)
    # vs. the f32 intermediate of the XLA reference (both use bf16 MXU operands
    # with f32 accumulation).
    np.testing.assert_allclose(np.asarray(out), np.asarray(ref),
                               rtol=2e-2, atol=2e-2)
    print("KERNEL_OK")
</pallas_src>

<mosaic_0001>
module attributes {stable_mosaic.version = 11 : i64} {
  func.func @_conv3x3_kernel(%arg0: i32, %arg1: i32, %arg2: memref<1x16x16x128xbf16, #tpu.memory_space<vmem>>, %arg3: memref<1x1x16x128xbf16, #tpu.memory_space<vmem>>, %arg4: memref<1x1x16x128xbf16, #tpu.memory_space<vmem>>, %arg5: memref<3x384x128xbf16, #tpu.memory_space<vmem>>, %arg6: memref<1x128xf32, #tpu.memory_space<vmem>>, %arg7: memref<1x16x16x128xbf16, #tpu.memory_space<vmem>>, %arg8: memref<1x1x2x128xf32, #tpu.memory_space<vmem>>) attributes {dimension_semantics = [#tpu.dimension_semantics<parallel>, #tpu.dimension_semantics<parallel>], iteration_bounds = array<i64: 2, 1>, scalar_prefetch = 0 : i64, scratch_operands = 0 : i64, tpu.core_type = #tpu.core_type<tc>, window_params = [{transform_indices = @transform_0, window_bounds = array<i64: 1, 16, 16, 128>}, {transform_indices = @transform_1, window_bounds = array<i64: 1, 1, 16, 128>}, {transform_indices = @transform_2, window_bounds = array<i64: 1, 1, 16, 128>}, {pipeline_mode = #tpu.pipeline_mode<synchronous>, transform_indices = @transform_3, window_bounds = array<i64: 3, 384, 128>}, {pipeline_mode = #tpu.pipeline_mode<synchronous>, transform_indices = @transform_4, window_bounds = array<i64: 1, 128>}, {transform_indices = @transform_5, window_bounds = array<i64: 1, 16, 16, 128>}, {transform_indices = @transform_6, window_bounds = array<i64: 1, 1, 2, 128>}]} {
    %c0 = arith.constant 0 : index
    %c0_0 = arith.constant 0 : index
    %c0_1 = arith.constant 0 : index
    %c0_2 = arith.constant 0 : index
    %0 = vector.load %arg2[%c0, %c0_0, %c0_1, %c0_2] : memref<1x16x16x128xbf16, #tpu.memory_space<vmem>>, vector<1x16x16x128xbf16>
    %1 = vector.shape_cast %0 : vector<1x16x16x128xbf16> to vector<16x16x128xbf16>
    %c0_3 = arith.constant 0 : index
    %c0_4 = arith.constant 0 : index
    %c0_5 = arith.constant 0 : index
    %c0_6 = arith.constant 0 : index
    %2 = vector.load %arg3[%c0_3, %c0_4, %c0_5, %c0_6] : memref<1x1x16x128xbf16, #tpu.memory_space<vmem>>, vector<1x1x16x128xbf16>
    %3 = vector.shape_cast %2 : vector<1x1x16x128xbf16> to vector<1x16x128xbf16>
    %c0_7 = arith.constant 0 : index
    %c0_8 = arith.constant 0 : index
    %c0_9 = arith.constant 0 : index
    %c0_10 = arith.constant 0 : index
    %4 = vector.load %arg4[%c0_7, %c0_8, %c0_9, %c0_10] : memref<1x1x16x128xbf16, #tpu.memory_space<vmem>>, vector<1x1x16x128xbf16>
    %5 = vector.shape_cast %4 : vector<1x1x16x128xbf16> to vector<1x16x128xbf16>
    %c0_i32 = arith.constant 0 : i32
    %6 = arith.cmpi sgt, %arg1, %c0_i32 : i32
    %cst = arith.constant 0.000000e+00 : bf16
    %7 = vector.broadcast %cst : bf16 to vector<1x16x128xbf16>
    %8 = arith.select %6, %3, %7 : vector<1x16x128xbf16>
    %c0_i32_11 = arith.constant 0 : i32
    %9 = arith.cmpi slt, %arg1, %c0_i32_11 : i32
    %cst_12 = arith.constant 0.000000e+00 : bf16
    %10 = vector.broadcast %cst_12 : bf16 to vector<1x16x128xbf16>
    %11 = arith.select %9, %5, %10 : vector<1x16x128xbf16>
    %12 = tpu.concatenate %8, %1, %11 in 0 : vector<1x16x128xbf16>, vector<16x16x128xbf16>, vector<1x16x128xbf16> -> vector<18x16x128xbf16>
    %cst_13 = arith.constant 0.000000e+00 : bf16
    %13 = vector.broadcast %cst_13 : bf16 to vector<18x1x128xbf16>
    %14 = tpu.concatenate %13, %12, %13 in 1 : vector<18x1x128xbf16>, vector<18x16x128xbf16>, vector<18x1x128xbf16> -> vector<18x18x128xbf16>
    %15 = vector.extract_strided_slice %14 {offsets = [0, 0, 0], sizes = [18, 16, 128], strides = [1, 1, 1]} : vector<18x18x128xbf16> to vector<18x16x128xbf16>
    %16 = vector.extract_strided_slice %14 {offsets = [0, 1, 0], sizes = [18, 16, 128], strides = [1, 1, 1]} : vector<18x18x128xbf16> to vector<18x16x128xbf16>
    %17 = vector.extract_strided_slice %14 {offsets = [0, 2, 0], sizes = [18, 16, 128], strides = [1, 1, 1]} : vector<18x18x128xbf16> to vector<18x16x128xbf16>
    %18 = tpu.concatenate %15, %16, %17 in 2 : vector<18x16x128xbf16>, vector<18x16x128xbf16>, vector<18x16x128xbf16> -> vector<18x16x384xbf16>
    %c0_14 = arith.constant 0 : index
    %c0_15 = arith.constant 0 : index
    %c0_16 = arith.constant 0 : index
    %19 = vector.load %arg5[%c0_14, %c0_15, %c0_16] : memref<3x384x128xbf16, #tpu.memory_space<vmem>>, vector<3x384x128xbf16>
    %20 = vector.extract_strided_slice %18 {offsets = [0, 0, 0], sizes = [16, 16, 384], strides = [1, 1, 1]} : vector<18x16x384xbf16> to vector<16x16x384xbf16>
    %21 = vector.shape_cast %20 : vector<16x16x384xbf16> to vector<256x384xbf16>
    %22 = vector.extract_strided_slice %19 {offsets = [0, 0, 0], sizes = [1, 384, 128], strides = [1, 1, 1]} : vector<3x384x128xbf16> to vector<1x384x128xbf16>
    %23 = vector.shape_cast %22 : vector<1x384x128xbf16> to vector<384x128xbf16>
    %cst_17 = arith.constant dense<0.000000e+00> : vector<256x128xf32>
    %24 = tpu.matmul %21, %23, %cst_17 {dimension_numbers = #tpu.dot_dimension_numbers<[1], [0], [0], [1], [0, 0, 1, 1], [], []>} : vector<256x384xbf16>, vector<384x128xbf16>, vector<256x128xf32> -> vector<256x128xf32>
    %25 = vector.extract_strided_slice %18 {offsets = [1, 0, 0], sizes = [16, 16, 384], strides = [1, 1, 1]} : vector<18x16x384xbf16> to vector<16x16x384xbf16>
    %26 = vector.shape_cast %25 : vector<16x16x384xbf16> to vector<256x384xbf16>
    %27 = vector.extract_strided_slice %19 {offsets = [1, 0, 0], sizes = [1, 384, 128], strides = [1, 1, 1]} : vector<3x384x128xbf16> to vector<1x384x128xbf16>
    %28 = vector.shape_cast %27 : vector<1x384x128xbf16> to vector<384x128xbf16>
    %cst_18 = arith.constant dense<0.000000e+00> : vector<256x128xf32>
    %29 = tpu.matmul %26, %28, %cst_18 {dimension_numbers = #tpu.dot_dimension_numbers<[1], [0], [0], [1], [0, 0, 1, 1], [], []>} : vector<256x384xbf16>, vector<384x128xbf16>, vector<256x128xf32> -> vector<256x128xf32>
    %30 = arith.addf %24, %29 : vector<256x128xf32>
    %31 = vector.extract_strided_slice %18 {offsets = [2, 0, 0], sizes = [16, 16, 384], strides = [1, 1, 1]} : vector<18x16x384xbf16> to vector<16x16x384xbf16>
    %32 = vector.shape_cast %31 : vector<16x16x384xbf16> to vector<256x384xbf16>
    %33 = vector.extract_strided_slice %19 {offsets = [2, 0, 0], sizes = [1, 384, 128], strides = [1, 1, 1]} : vector<3x384x128xbf16> to vector<1x384x128xbf16>
    %34 = vector.shape_cast %33 : vector<1x384x128xbf16> to vector<384x128xbf16>
    %cst_19 = arith.constant dense<0.000000e+00> : vector<256x128xf32>
    %35 = tpu.matmul %32, %34, %cst_19 {dimension_numbers = #tpu.dot_dimension_numbers<[1], [0], [0], [1], [0, 0, 1, 1], [], []>} : vector<256x384xbf16>, vector<384x128xbf16>, vector<256x128xf32> -> vector<256x128xf32>
    %36 = arith.addf %30, %35 : vector<256x128xf32>
    %c0_20 = arith.constant 0 : index
    %c0_21 = arith.constant 0 : index
    %37 = vector.load %arg6[%c0_20, %c0_21] : memref<1x128xf32, #tpu.memory_space<vmem>>, vector<1x128xf32>
    %38 = vector.broadcast %37 : vector<1x128xf32> to vector<256x128xf32>
    %39 = arith.addf %36, %38 : vector<256x128xf32>
    %cst_22 = arith.constant dense<0.000000e+00> : vector<128xf32>
    %40 = vector.multi_reduction <add>, %39, %cst_22 [0] : vector<256x128xf32> to vector<128xf32>
    %41 = vector.shape_cast %40 : vector<128xf32> to vector<1x128xf32>
    %42 = arith.mulf %39, %39 : vector<256x128xf32>
    %cst_23 = arith.constant dense<0.000000e+00> : vector<128xf32>
    %43 = vector.multi_reduction <add>, %42, %cst_23 [0] : vector<256x128xf32> to vector<128xf32>
    %44 = vector.shape_cast %43 : vector<128xf32> to vector<1x128xf32>
    %45 = tpu.concatenate %41, %44 in 0 : vector<1x128xf32>, vector<1x128xf32> -> vector<2x128xf32>
    %c0_24 = arith.constant 0 : index
    %c0_25 = arith.constant 0 : index
    %c0_26 = arith.constant 0 : index
    %c0_27 = arith.constant 0 : index
    %46 = vector.load %arg8[%c0_24, %c0_25, %c0_26, %c0_27] : memref<1x1x2x128xf32, #tpu.memory_space<vmem>>, vector<1x1x2x128xf32>
    %47 = vector.shape_cast %46 : vector<1x1x2x128xf32> to vector<2x128xf32>
    %48 = vector.shape_cast %45 : vector<2x128xf32> to vector<1x1x2x128xf32>
    tpu.vector_store %arg8[%c0_24, %c0_25, %c0_26, %c0_27], %48 {strides = array<i32>} : memref<1x1x2x128xf32, #tpu.memory_space<vmem>>, vector<1x1x2x128xf32>,
    %49 = vector.shape_cast %39 : vector<256x128xf32> to vector<16x16x128xf32>
    %50 = arith.truncf %49 : vector<16x16x128xf32> to vector<16x16x128xbf16>
    %c0_28 = arith.constant 0 : index
    %c0_29 = arith.constant 0 : index
    %c0_30 = arith.constant 0 : index
    %c0_31 = arith.constant 0 : index
    %51 = vector.load %arg7[%c0_28, %c0_29, %c0_30, %c0_31] : memref<1x16x16x128xbf16, #tpu.memory_space<vmem>>, vector<1x16x16x128xbf16>
    %52 = vector.shape_cast %51 : vector<1x16x16x128xbf16> to vector<16x16x128xbf16>
    %53 = vector.shape_cast %50 : vector<16x16x128xbf16> to vector<1x16x16x128xbf16>
    tpu.vector_store %arg7[%c0_28, %c0_29, %c0_30, %c0_31], %53 {strides = array<i32>} : memref<1x16x16x128xbf16, #tpu.memory_space<vmem>>, vector<1x16x16x128xbf16>,
    return
  }
  func.func @transform_0(%arg0: i32, %arg1: i32) -> (i32, i32, i32, i32) {
    %c0_i32 = arith.constant 0 : i32
    %c0_i32_0 = arith.constant 0 : i32
    %c0_i32_1 = arith.constant 0 : i32
    return %arg0, %arg1, %c0_i32, %c0_i32_0 : i32, i32, i32, i32
  }
  func.func @transform_1(%arg0: i32, %arg1: i32) -> (i32, i32, i32, i32) {
    %c16_i32 = arith.constant 16 : i32
    %0 = arith.muli %arg1, %c16_i32 : i32
    %c1_i32 = arith.constant 1 : i32
    %1 = arith.subi %0, %c1_i32 : i32
    %c0_i32 = arith.constant 0 : i32
    %2 = arith.maxsi %1, %c0_i32 : i32
    %c0_i32_0 = arith.constant 0 : i32
    %c0_i32_1 = arith.constant 0 : i32
    %c0_i32_2 = arith.constant 0 : i32
    return %arg0, %2, %c0_i32_0, %c0_i32_1 : i32, i32, i32, i32
  }
  func.func @transform_2(%arg0: i32, %arg1: i32) -> (i32, i32, i32, i32) {
    %c1_i32 = arith.constant 1 : i32
    %0 = arith.addi %arg1, %c1_i32 : i32
    %c16_i32 = arith.constant 16 : i32
    %1 = arith.muli %0, %c16_i32 : i32
    %c15_i32 = arith.constant 15 : i32
    %2 = arith.minsi %1, %c15_i32 : i32
    %c0_i32 = arith.constant 0 : i32
    %c0_i32_0 = arith.constant 0 : i32
    %c0_i32_1 = arith.constant 0 : i32
    return %arg0, %2, %c0_i32, %c0_i32_0 : i32, i32, i32, i32
  }
  func.func @transform_3(%arg0: i32, %arg1: i32) -> (i32, i32, i32) {
    %c0_i32 = arith.constant 0 : i32
    %c0_i32_0 = arith.constant 0 : i32
    %c0_i32_1 = arith.constant 0 : i32
    %c0_i32_2 = arith.constant 0 : i32
    return %c0_i32, %c0_i32_0, %c0_i32_1 : i32, i32, i32
  }
  func.func @transform_4(%arg0: i32, %arg1: i32) -> (i32, i32) {
    %c0_i32 = arith.constant 0 : i32
    %c0_i32_0 = arith.constant 0 : i32
    %c0_i32_1 = arith.constant 0 : i32
    return %c0_i32, %c0_i32_0 : i32, i32
  }
  func.func @transform_5(%arg0: i32, %arg1: i32) -> (i32, i32, i32, i32) {
    %c0_i32 = arith.constant 0 : i32
    %c0_i32_0 = arith.constant 0 : i32
    %c0_i32_1 = arith.constant 0 : i32
    return %arg0, %arg1, %c0_i32, %c0_i32_0 : i32, i32, i32, i32
  }
  func.func @transform_6(%arg0: i32, %arg1: i32) -> (i32, i32, i32, i32) {
    %c0_i32 = arith.constant 0 : i32
    %c0_i32_0 = arith.constant 0 : i32
    %c0_i32_1 = arith.constant 0 : i32
    return %arg0, %arg1, %c0_i32, %c0_i32_0 : i32, i32, i32, i32
  }
}

module attributes {stable_mosaic.version = 11 : i64} {
  func.func @_bn_relu_kernel(%arg0: i32, %arg1: i32, %arg2: memref<1x16x16x128xbf16, #tpu.memory_space<vmem>>, %arg3: memref<1x128xf32, #tpu.memory_space<vmem>>, %arg4: memref<1x128xf32, #tpu.memory_space<vmem>>, %arg5: memref<1x16x16x8xf32, #tpu.memory_space<vmem>>) attributes {dimension_semantics = [#tpu.dimension_semantics<parallel>, #tpu.dimension_semantics<parallel>], iteration_bounds = array<i64: 2, 1>, scalar_prefetch = 0 : i64, scratch_operands = 0 : i64, tpu.core_type = #tpu.core_type<tc>, window_params = [{transform_indices = @transform_0, window_bounds = array<i64: 1, 16, 16, 128>}, {pipeline_mode = #tpu.pipeline_mode<synchronous>, transform_indices = @transform_1, window_bounds = array<i64: 1, 128>}, {pipeline_mode = #tpu.pipeline_mode<synchronous>, transform_indices = @transform_2, window_bounds = array<i64: 1, 128>}, {transform_indices = @transform_3, window_bounds = array<i64: 1, 16, 16, 8>}]} {
    %c0 = arith.constant 0 : index
    %c0_0 = arith.constant 0 : index
    %c0_1 = arith.constant 0 : index
    %c0_2 = arith.constant 0 : index
    %0 = vector.load %arg2[%c0, %c0_0, %c0_1, %c0_2] : memref<1x16x16x128xbf16, #tpu.memory_space<vmem>>, vector<1x16x16x128xbf16>
    %1 = arith.extf %0 : vector<1x16x16x128xbf16> to vector<1x16x16x128xf32>
    %c0_3 = arith.constant 0 : index
    %c0_4 = arith.constant 0 : index
    %2 = vector.load %arg3[%c0_3, %c0_4] : memref<1x128xf32, #tpu.memory_space<vmem>>, vector<1x128xf32>
    %3 = vector.shape_cast %2 : vector<1x128xf32> to vector<1x1x1x128xf32>
    %4 = vector.broadcast %3 : vector<1x1x1x128xf32> to vector<1x16x16x128xf32>
    %5 = arith.mulf %1, %4 : vector<1x16x16x128xf32>
    %c0_5 = arith.constant 0 : index
    %c0_6 = arith.constant 0 : index
    %6 = vector.load %arg4[%c0_5, %c0_6] : memref<1x128xf32, #tpu.memory_space<vmem>>, vector<1x128xf32>
    %7 = vector.shape_cast %6 : vector<1x128xf32> to vector<1x1x1x128xf32>
    %8 = vector.broadcast %7 : vector<1x1x1x128xf32> to vector<1x16x16x128xf32>
    %9 = arith.addf %5, %8 : vector<1x16x16x128xf32>
    %cst = arith.constant 0.000000e+00 : f32
    %10 = vector.broadcast %cst : f32 to vector<1x16x16x128xf32>
    %11 = arith.maximumf %9, %10 : vector<1x16x16x128xf32>
    %12 = vector.extract_strided_slice %11 {offsets = [0, 0, 0, 0], sizes = [1, 16, 16, 8], strides = [1, 1, 1, 1]} : vector<1x16x16x128xf32> to vector<1x16x16x8xf32>
    %c0_7 = arith.constant 0 : index
    %c0_8 = arith.constant 0 : index
    %c0_9 = arith.constant 0 : index
    %c0_10 = arith.constant 0 : index
    %13 = vector.load %arg5[%c0_7, %c0_8, %c0_9, %c0_10] : memref<1x16x16x8xf32, #tpu.memory_space<vmem>>, vector<1x16x16x8xf32>
    tpu.vector_store %arg5[%c0_7, %c0_8, %c0_9, %c0_10], %12 {strides = array<i32>} : memref<1x16x16x8xf32, #tpu.memory_space<vmem>>, vector<1x16x16x8xf32>,
    return
  }
  func.func @transform_0(%arg0: i32, %arg1: i32) -> (i32, i32, i32, i32) {
    %c0_i32 = arith.constant 0 : i32
    %c0_i32_0 = arith.constant 0 : i32
    %c0_i32_1 = arith.constant 0 : i32
    return %arg0, %arg1, %c0_i32, %c0_i32_0 : i32, i32, i32, i32
  }
  func.func @transform_1(%arg0: i32, %arg1: i32) -> (i32, i32) {
    %c0_i32 = arith.constant 0 : i32
    %c0_i32_0 = arith.constant 0 : i32
    %c0_i32_1 = arith.constant 0 : i32
    return %c0_i32, %c0_i32_0 : i32, i32
  }
  func.func @transform_2(%arg0: i32, %arg1: i32) -> (i32, i32) {
    %c0_i32 = arith.constant 0 : i32
    %c0_i32_0 = arith.constant 0 : i32
    %c0_i32_1 = arith.constant 0 : i32
    return %c0_i32, %c0_i32_0 : i32, i32
  }
  func.func @transform_3(%arg0: i32, %arg1: i32) -> (i32, i32, i32, i32) {
    %c0_i32 = arith.constant 0 : i32
    %c0_i32_0 = arith.constant 0 : i32
    %c0_i32_1 = arith.constant 0 : i32
    return %arg0, %arg1, %c0_i32, %c0_i32_0 : i32, i32, i32, i32
  }
}

module attributes {stable_mosaic.version = 11 : i64} {
  func.func @_conv3x3_kernel(%arg0: i32, %arg1: i32, %arg2: memref<1x16x16x128xbf16, #tpu.memory_space<vmem>>, %arg3: memref<1x1x16x128xbf16, #tpu.memory_space<vmem>>, %arg4: memref<1x1x16x128xbf16, #tpu.memory_space<vmem>>, %arg5: memref<1x128xf32, #tpu.memory_space<vmem>>, %arg6: memref<1x128xf32, #tpu.memory_space<vmem>>, %arg7: memref<3x384x128xbf16, #tpu.memory_space<vmem>>, %arg8: memref<1x128xf32, #tpu.memory_space<vmem>>, %arg9: memref<1x16x16x128xbf16, #tpu.memory_space<vmem>>, %arg10: memref<1x1x2x128xf32, #tpu.memory_space<vmem>>) attributes {dimension_semantics = [#tpu.dimension_semantics<parallel>, #tpu.dimension_semantics<parallel>], iteration_bounds = array<i64: 2, 1>, scalar_prefetch = 0 : i64, scratch_operands = 0 : i64, tpu.core_type = #tpu.core_type<tc>, window_params = [{transform_indices = @transform_0, window_bounds = array<i64: 1, 16, 16, 128>}, {transform_indices = @transform_1, window_bounds = array<i64: 1, 1, 16, 128>}, {transform_indices = @transform_2, window_bounds = array<i64: 1, 1, 16, 128>}, {pipeline_mode = #tpu.pipeline_mode<synchronous>, transform_indices = @transform_3, window_bounds = array<i64: 1, 128>}, {pipeline_mode = #tpu.pipeline_mode<synchronous>, transform_indices = @transform_4, window_bounds = array<i64: 1, 128>}, {pipeline_mode = #tpu.pipeline_mode<synchronous>, transform_indices = @transform_5, window_bounds = array<i64: 3, 384, 128>}, {pipeline_mode = #tpu.pipeline_mode<synchronous>, transform_indices = @transform_6, window_bounds = array<i64: 1, 128>}, {transform_indices = @transform_7, window_bounds = array<i64: 1, 16, 16, 128>}, {transform_indices = @transform_8, window_bounds = array<i64: 1, 1, 2, 128>}]} {
    %c0 = arith.constant 0 : index
    %c0_0 = arith.constant 0 : index
    %c0_1 = arith.constant 0 : index
    %c0_2 = arith.constant 0 : index
    %0 = vector.load %arg2[%c0, %c0_0, %c0_1, %c0_2] : memref<1x16x16x128xbf16, #tpu.memory_space<vmem>>, vector<1x16x16x128xbf16>
    %1 = vector.shape_cast %0 : vector<1x16x16x128xbf16> to vector<16x16x128xbf16>
    %c0_3 = arith.constant 0 : index
    %c0_4 = arith.constant 0 : index
    %c0_5 = arith.constant 0 : index
    %c0_6 = arith.constant 0 : index
    %2 = vector.load %arg3[%c0_3, %c0_4, %c0_5, %c0_6] : memref<1x1x16x128xbf16, #tpu.memory_space<vmem>>, vector<1x1x16x128xbf16>
    %3 = vector.shape_cast %2 : vector<1x1x16x128xbf16> to vector<1x16x128xbf16>
    %c0_7 = arith.constant 0 : index
    %c0_8 = arith.constant 0 : index
    %c0_9 = arith.constant 0 : index
    %c0_10 = arith.constant 0 : index
    %4 = vector.load %arg4[%c0_7, %c0_8, %c0_9, %c0_10] : memref<1x1x16x128xbf16, #tpu.memory_space<vmem>>, vector<1x1x16x128xbf16>
    %5 = vector.shape_cast %4 : vector<1x1x16x128xbf16> to vector<1x16x128xbf16>
    %c0_11 = arith.constant 0 : index
    %c0_12 = arith.constant 0 : index
    %6 = vector.load %arg5[%c0_11, %c0_12] : memref<1x128xf32, #tpu.memory_space<vmem>>, vector<1x128xf32>
    %c0_13 = arith.constant 0 : index
    %c0_14 = arith.constant 0 : index
    %7 = vector.load %arg6[%c0_13, %c0_14] : memref<1x128xf32, #tpu.memory_space<vmem>>, vector<1x128xf32>
    %8 = arith.extf %1 : vector<16x16x128xbf16> to vector<16x16x128xf32>
    %9 = vector.shape_cast %6 : vector<1x128xf32> to vector<1x1x128xf32>
    %10 = vector.broadcast %9 : vector<1x1x128xf32> to vector<16x16x128xf32>
    %11 = arith.mulf %8, %10 : vector<16x16x128xf32>
    %12 = vector.shape_cast %7 : vector<1x128xf32> to vector<1x1x128xf32>
    %13 = vector.broadcast %12 : vector<1x1x128xf32> to vector<16x16x128xf32>
    %14 = arith.addf %11, %13 : vector<16x16x128xf32>
    %cst = arith.constant 0.000000e+00 : f32
    %15 = vector.broadcast %cst : f32 to vector<16x16x128xf32>
    %16 = arith.maximumf %14, %15 : vector<16x16x128xf32>
    %17 = arith.truncf %16 : vector<16x16x128xf32> to vector<16x16x128xbf16>
    %18 = arith.extf %3 : vector<1x16x128xbf16> to vector<1x16x128xf32>
    %19 = vector.shape_cast %6 : vector<1x128xf32> to vector<1x1x128xf32>
    %20 = vector.broadcast %19 : vector<1x1x128xf32> to vector<1x16x128xf32>
    %21 = arith.mulf %18, %20 : vector<1x16x128xf32>
    %22 = vector.shape_cast %7 : vector<1x128xf32> to vector<1x1x128xf32>
    %23 = vector.broadcast %22 : vector<1x1x128xf32> to vector<1x16x128xf32>
    %24 = arith.addf %21, %23 : vector<1x16x128xf32>
    %cst_15 = arith.constant 0.000000e+00 : f32
    %25 = vector.broadcast %cst_15 : f32 to vector<1x16x128xf32>
    %26 = arith.maximumf %24, %25 : vector<1x16x128xf32>
    %27 = arith.truncf %26 : vector<1x16x128xf32> to vector<1x16x128xbf16>
    %28 = arith.extf %5 : vector<1x16x128xbf16> to vector<1x16x128xf32>
    %29 = vector.shape_cast %6 : vector<1x128xf32> to vector<1x1x128xf32>
    %30 = vector.broadcast %29 : vector<1x1x128xf32> to vector<1x16x128xf32>
    %31 = arith.mulf %28, %30 : vector<1x16x128xf32>
    %32 = vector.shape_cast %7 : vector<1x128xf32> to vector<1x1x128xf32>
    %33 = vector.broadcast %32 : vector<1x1x128xf32> to vector<1x16x128xf32>
    %34 = arith.addf %31, %33 : vector<1x16x128xf32>
    %cst_16 = arith.constant 0.000000e+00 : f32
    %35 = vector.broadcast %cst_16 : f32 to vector<1x16x128xf32>
    %36 = arith.maximumf %34, %35 : vector<1x16x128xf32>
    %37 = arith.truncf %36 : vector<1x16x128xf32> to vector<1x16x128xbf16>
    %c0_i32 = arith.constant 0 : i32
    %38 = arith.cmpi sgt, %arg1, %c0_i32 : i32
    %cst_17 = arith.constant 0.000000e+00 : bf16
    %39 = vector.broadcast %cst_17 : bf16 to vector<1x16x128xbf16>
    %40 = arith.select %38, %27, %39 : vector<1x16x128xbf16>
    %c0_i32_18 = arith.constant 0 : i32
    %41 = arith.cmpi slt, %arg1, %c0_i32_18 : i32
    %cst_19 = arith.constant 0.000000e+00 : bf16
    %42 = vector.broadcast %cst_19 : bf16 to vector<1x16x128xbf16>
    %43 = arith.select %41, %37, %42 : vector<1x16x128xbf16>
    %44 = tpu.concatenate %40, %17, %43 in 0 : vector<1x16x128xbf16>, vector<16x16x128xbf16>, vector<1x16x128xbf16> -> vector<18x16x128xbf16>
    %cst_20 = arith.constant 0.000000e+00 : bf16
    %45 = vector.broadcast %cst_20 : bf16 to vector<18x1x128xbf16>
    %46 = tpu.concatenate %45, %44, %45 in 1 : vector<18x1x128xbf16>, vector<18x16x128xbf16>, vector<18x1x128xbf16> -> vector<18x18x128xbf16>
    %47 = vector.extract_strided_slice %46 {offsets = [0, 0, 0], sizes = [18, 16, 128], strides = [1, 1, 1]} : vector<18x18x128xbf16> to vector<18x16x128xbf16>
    %48 = vector.extract_strided_slice %46 {offsets = [0, 1, 0], sizes = [18, 16, 128], strides = [1, 1, 1]} : vector<18x18x128xbf16> to vector<18x16x128xbf16>
    %49 = vector.extract_strided_slice %46 {offsets = [0, 2, 0], sizes = [18, 16, 128], strides = [1, 1, 1]} : vector<18x18x128xbf16> to vector<18x16x128xbf16>
    %50 = tpu.concatenate %47, %48, %49 in 2 : vector<18x16x128xbf16>, vector<18x16x128xbf16>, vector<18x16x128xbf16> -> vector<18x16x384xbf16>
    %c0_21 = arith.constant 0 : index
    %c0_22 = arith.constant 0 : index
    %c0_23 = arith.constant 0 : index
    %51 = vector.load %arg7[%c0_21, %c0_22, %c0_23] : memref<3x384x128xbf16, #tpu.memory_space<vmem>>, vector<3x384x128xbf16>
    %52 = vector.extract_strided_slice %50 {offsets = [0, 0, 0], sizes = [16, 16, 384], strides = [1, 1, 1]} : vector<18x16x384xbf16> to vector<16x16x384xbf16>
    %53 = vector.shape_cast %52 : vector<16x16x384xbf16> to vector<256x384xbf16>
    %54 = vector.extract_strided_slice %51 {offsets = [0, 0, 0], sizes = [1, 384, 128], strides = [1, 1, 1]} : vector<3x384x128xbf16> to vector<1x384x128xbf16>
    %55 = vector.shape_cast %54 : vector<1x384x128xbf16> to vector<384x128xbf16>
    %cst_24 = arith.constant dense<0.000000e+00> : vector<256x128xf32>
    %56 = tpu.matmul %53, %55, %cst_24 {dimension_numbers = #tpu.dot_dimension_numbers<[1], [0], [0], [1], [0, 0, 1, 1], [], []>} : vector<256x384xbf16>, vector<384x128xbf16>, vector<256x128xf32> -> vector<256x128xf32>
    %57 = vector.extract_strided_slice %50 {offsets = [1, 0, 0], sizes = [16, 16, 384], strides = [1, 1, 1]} : vector<18x16x384xbf16> to vector<16x16x384xbf16>
    %58 = vector.shape_cast %57 : vector<16x16x384xbf16> to vector<256x384xbf16>
    %59 = vector.extract_strided_slice %51 {offsets = [1, 0, 0], sizes = [1, 384, 128], strides = [1, 1, 1]} : vector<3x384x128xbf16> to vector<1x384x128xbf16>
    %60 = vector.shape_cast %59 : vector<1x384x128xbf16> to vector<384x128xbf16>
    %cst_25 = arith.constant dense<0.000000e+00> : vector<256x128xf32>
    %61 = tpu.matmul %58, %60, %cst_25 {dimension_numbers = #tpu.dot_dimension_numbers<[1], [0], [0], [1], [0, 0, 1, 1], [], []>} : vector<256x384xbf16>, vector<384x128xbf16>, vector<256x128xf32> -> vector<256x128xf32>
    %62 = arith.addf %56, %61 : vector<256x128xf32>
    %63 = vector.extract_strided_slice %50 {offsets = [2, 0, 0], sizes = [16, 16, 384], strides = [1, 1, 1]} : vector<18x16x384xbf16> to vector<16x16x384xbf16>
    %64 = vector.shape_cast %63 : vector<16x16x384xbf16> to vector<256x384xbf16>
    %65 = vector.extract_strided_slice %51 {offsets = [2, 0, 0], sizes = [1, 384, 128], strides = [1, 1, 1]} : vector<3x384x128xbf16> to vector<1x384x128xbf16>
    %66 = vector.shape_cast %65 : vector<1x384x128xbf16> to vector<384x128xbf16>
    %cst_26 = arith.constant dense<0.000000e+00> : vector<256x128xf32>
    %67 = tpu.matmul %64, %66, %cst_26 {dimension_numbers = #tpu.dot_dimension_numbers<[1], [0], [0], [1], [0, 0, 1, 1], [], []>} : vector<256x384xbf16>, vector<384x128xbf16>, vector<256x128xf32> -> vector<256x128xf32>
    %68 = arith.addf %62, %67 : vector<256x128xf32>
    %c0_27 = arith.constant 0 : index
    %c0_28 = arith.constant 0 : index
    %69 = vector.load %arg8[%c0_27, %c0_28] : memref<1x128xf32, #tpu.memory_space<vmem>>, vector<1x128xf32>
    %70 = vector.broadcast %69 : vector<1x128xf32> to vector<256x128xf32>
    %71 = arith.addf %68, %70 : vector<256x128xf32>
    %cst_29 = arith.constant dense<0.000000e+00> : vector<128xf32>
    %72 = vector.multi_reduction <add>, %71, %cst_29 [0] : vector<256x128xf32> to vector<128xf32>
    %73 = vector.shape_cast %72 : vector<128xf32> to vector<1x128xf32>
    %74 = arith.mulf %71, %71 : vector<256x128xf32>
    %cst_30 = arith.constant dense<0.000000e+00> : vector<128xf32>
    %75 = vector.multi_reduction <add>, %74, %cst_30 [0] : vector<256x128xf32> to vector<128xf32>
    %76 = vector.shape_cast %75 : vector<128xf32> to vector<1x128xf32>
    %77 = tpu.concatenate %73, %76 in 0 : vector<1x128xf32>, vector<1x128xf32> -> vector<2x128xf32>
    %c0_31 = arith.constant 0 : index
    %c0_32 = arith.constant 0 : index
    %c0_33 = arith.constant 0 : index
    %c0_34 = arith.constant 0 : index
    %78 = vector.load %arg10[%c0_31, %c0_32, %c0_33, %c0_34] : memref<1x1x2x128xf32, #tpu.memory_space<vmem>>, vector<1x1x2x128xf32>
    %79 = vector.shape_cast %78 : vector<1x1x2x128xf32> to vector<2x128xf32>
    %80 = vector.shape_cast %77 : vector<2x128xf32> to vector<1x1x2x128xf32>
    tpu.vector_store %arg10[%c0_31, %c0_32, %c0_33, %c0_34], %80 {strides = array<i32>} : memref<1x1x2x128xf32, #tpu.memory_space<vmem>>, vector<1x1x2x128xf32>,
    %81 = vector.shape_cast %71 : vector<256x128xf32> to vector<16x16x128xf32>
    %82 = arith.truncf %81 : vector<16x16x128xf32> to vector<16x16x128xbf16>
    %c0_35 = arith.constant 0 : index
    %c0_36 = arith.constant 0 : index
    %c0_37 = arith.constant 0 : index
    %c0_38 = arith.constant 0 : index
    %83 = vector.load %arg9[%c0_35, %c0_36, %c0_37, %c0_38] : memref<1x16x16x128xbf16, #tpu.memory_space<vmem>>, vector<1x16x16x128xbf16>
    %84 = vector.shape_cast %83 : vector<1x16x16x128xbf16> to vector<16x16x128xbf16>
    %85 = vector.shape_cast %82 : vector<16x16x128xbf16> to vector<1x16x16x128xbf16>
    tpu.vector_store %arg9[%c0_35, %c0_36, %c0_37, %c0_38], %85 {strides = array<i32>} : memref<1x16x16x128xbf16, #tpu.memory_space<vmem>>, vector<1x16x16x128xbf16>,
    return
  }
  func.func @transform_0(%arg0: i32, %arg1: i32) -> (i32, i32, i32, i32) {
    %c0_i32 = arith.constant 0 : i32
    %c0_i32_0 = arith.constant 0 : i32
    %c0_i32_1 = arith.constant 0 : i32
    return %arg0, %arg1, %c0_i32, %c0_i32_0 : i32, i32, i32, i32
  }
  func.func @transform_1(%arg0: i32, %arg1: i32) -> (i32, i32, i32, i32) {
    %c16_i32 = arith.constant 16 : i32
    %0 = arith.muli %arg1, %c16_i32 : i32
    %c1_i32 = arith.constant 1 : i32
    %1 = arith.subi %0, %c1_i32 : i32
    %c0_i32 = arith.constant 0 : i32
    %2 = arith.maxsi %1, %c0_i32 : i32
    %c0_i32_0 = arith.constant 0 : i32
    %c0_i32_1 = arith.constant 0 : i32
    %c0_i32_2 = arith.constant 0 : i32
    return %arg0, %2, %c0_i32_0, %c0_i32_1 : i32, i32, i32, i32
  }
  func.func @transform_2(%arg0: i32, %arg1: i32) -> (i32, i32, i32, i32) {
    %c1_i32 = arith.constant 1 : i32
    %0 = arith.addi %arg1, %c1_i32 : i32
    %c16_i32 = arith.constant 16 : i32
    %1 = arith.muli %0, %c16_i32 : i32
    %c15_i32 = arith.constant 15 : i32
    %2 = arith.minsi %1, %c15_i32 : i32
    %c0_i32 = arith.constant 0 : i32
    %c0_i32_0 = arith.constant 0 : i32
    %c0_i32_1 = arith.constant 0 : i32
    return %arg0, %2, %c0_i32, %c0_i32_0 : i32, i32, i32, i32
  }
  func.func @transform_3(%arg0: i32, %arg1: i32) -> (i32, i32) {
    %c0_i32 = arith.constant 0 : i32
    %c0_i32_0 = arith.constant 0 : i32
    %c0_i32_1 = arith.constant 0 : i32
    return %c0_i32, %c0_i32_0 : i32, i32
  }
  func.func @transform_4(%arg0: i32, %arg1: i32) -> (i32, i32) {
    %c0_i32 = arith.constant 0 : i32
    %c0_i32_0 = arith.constant 0 : i32
    %c0_i32_1 = arith.constant 0 : i32
    return %c0_i32, %c0_i32_0 : i32, i32
  }
  func.func @transform_5(%arg0: i32, %arg1: i32) -> (i32, i32, i32) {
    %c0_i32 = arith.constant 0 : i32
    %c0_i32_0 = arith.constant 0 : i32
    %c0_i32_1 = arith.constant 0 : i32
    %c0_i32_2 = arith.constant 0 : i32
    return %c0_i32, %c0_i32_0, %c0_i32_1 : i32, i32, i32
  }
  func.func @transform_6(%arg0: i32, %arg1: i32) -> (i32, i32) {
    %c0_i32 = arith.constant 0 : i32
    %c0_i32_0 = arith.constant 0 : i32
    %c0_i32_1 = arith.constant 0 : i32
    return %c0_i32, %c0_i32_0 : i32, i32
  }
  func.func @transform_7(%arg0: i32, %arg1: i32) -> (i32, i32, i32, i32) {
    %c0_i32 = arith.constant 0 : i32
    %c0_i32_0 = arith.constant 0 : i32
    %c0_i32_1 = arith.constant 0 : i32
    return %arg0, %arg1, %c0_i32, %c0_i32_0 : i32, i32, i32, i32
  }
  func.func @transform_8(%arg0: i32, %arg1: i32) -> (i32, i32, i32, i32) {
    %c0_i32 = arith.constant 0 : i32
    %c0_i32_0 = arith.constant 0 : i32
    %c0_i32_1 = arith.constant 0 : i32
    return %arg0, %arg1, %c0_i32, %c0_i32_0 : i32, i32, i32, i32
  }
}

</mosaic_0001>

<bundles_post_ra>
// kernel: unet_conv2_forward.5
= control target key start
LH: loop header
LB: loop body
LE: loop exit
PB: predicated region body
PF: predicated region fallthrough
CT: control target
= control target key end

     0   :  { %s680_s12 = smov 0   ;;  %s682_s13 = smov 0   ;;  %s875_s0 = inlined_call_operand.vmem [shape: bf16[2,16,16,128], index: 0, kind: input, shape index: {}]   ;;  %s876_s1 = inlined_call_operand.vmem [shape: f32[1,128], index: 1, kind: input, shape index: {}]   ;;  %s877_s2 = inlined_call_operand.vmem [shape: f32[1,128], index: 2, kind: input, shape index: {}]   ;;  %s878_s3 = inlined_call_operand.vmem [shape: f32[2,16,16,8], index: 3, kind: output, shape index: {}]  }
   0x1   :  { %s684_s14 = smov 0  }
   0x2 LB: > { %s25_s15 = sadd.s32 1, %s654_s13  ;;  %p522_p0 = scmp.ge.s32.totalorder %s658_s14, 1  ;;  %s658_s14 = sphi %s684_s14, %s13_s14   ;;  %s654_s13 = sphi %s682_s13, %s880_s13   ;;  %s650_s12 = sphi %s680_s12, %s879_s12  }
   0x3   : > { %p27_p1 = scmp.ge.s32.totalorder %s25_s15, 2  ;;  %p159_p2 = scmp.lt.s32.totalorder %s658_s14, 3 }
   0x5   : > { %s882_s15 = smov (%p27_p1, %s25_s15), 0  ;;  %p160_p3 = pnand %p522_p0, %p159_p2 }
   0x6   : > { %p194_p4 = scmp.lt.s32.totalorder (!%p160_p3), %s650_s12, 1 }
   0x7   : > { %163 = sbr.rel (%p160_p3) target bundleno = 52 (0x34), region = 32 }
   0xc   : > { %s884_s12 = smov (!%p194_p4, %s650_s12), 1  ;;  %v709_v0 = vld [vmem:[%s876_s1] ss:$0 sm:$0xff]  ;;  %vm389_vm0 = vcmask 64512  }
   0xd   : > { %s531_s16 = sshll.u32 %s884_s12, 7  ;;  %v718_v9 = vld [vmem:[%s877_s2] ss:$0 sm:$0xff]  ;;  %s532_s24 = sshll.u32 %s884_s12, 8 }
   0xe   : > { %s704_s19 = scalar_lea.vmem %s875_s0, %s531_s16  ;;  %s736_s27 = scalar_lea.vmem %s878_s3, %s532_s24 }
   0xf   : > { %v534_v1 = vld [vmem:[%s704_s19] sm:$0xff]   ;;  %v597_v2 = vld [vmem:[%s704_s19 + $0x8] sm:$0xff]   ;;  %v598_v3 = vld [vmem:[%s704_s19 + $0x10] sm:$0xff]  }
  0x10   : > { %v535_v4 = vunpack.c.l.bf16 %v534_v1  ;;  %v536_v5 = vunpack.c.h.bf16 %v534_v1  ;;  %v539_v6 = vunpack.c.l.bf16 %v597_v2  ;;  %v540_v7 = vunpack.c.h.bf16 %v597_v2  ;;  %v599_v8 = vld [vmem:[%s704_s19 + $0x18] sm:$0xff]   ;;  %v600_v30 = vld [vmem:[%s704_s19 + $0x20] sm:$0xff]   ;;  %v601_v31 = vld [vmem:[%s704_s19 + $0x28] sm:$0xff]  }
  0x11   : > { %v543_v10 = vunpack.c.l.bf16 %v598_v3  ;;  %v544_v11 = vunpack.c.h.bf16 %v598_v3  ;;  %v547_v12 = vunpack.c.l.bf16 %v599_v8  ;;  %v548_v13 = vunpack.c.h.bf16 %v599_v8  ;;  %v602_v36 = vld [vmem:[%s704_s19 + $0x30] sm:$0xff]   ;;  %v603_v37 = vld [vmem:[%s704_s19 + $0x38] sm:$0xff]   ;;  %v604_v3 = vld [vmem:[%s704_s19 + $0x40] sm:$0xff]  }
  0x12   : > { %v286_v14 = vmul.f32 %v535_v4, %v709_v0  ;;  %v287_v15 = vmul.f32 %v536_v5, %v709_v0  ;;  %v288_v16 = vmul.f32 %v539_v6, %v709_v0  ;;  %v289_v17 = vmul.f32 %v540_v7, %v709_v0  ;;  %v605_v4 = vld [vmem:[%s704_s19 + $0x48] sm:$0xff]  }
  0x13   : > { %v290_v18 = vmul.f32 %v543_v10, %v709_v0  ;;  %v291_v19 = vmul.f32 %v544_v11, %v709_v0  ;;  %v292_v20 = vmul.f32 %v547_v12, %v709_v0  ;;  %v293_v21 = vmul.f32 %v548_v13, %v709_v0  ;;  %v606_v10 = vld [vmem:[%s704_s19 + $0x50] sm:$0xff]   ;;  %v607_v11 = vld [vmem:[%s704_s19 + $0x58] sm:$0xff]  }
  0x14   : > { %v325_v22 = vadd.f32 %v718_v9, %v286_v14  ;;  %v326_v23 = vadd.f32 %v718_v9, %v287_v15  ;;  %v327_v24 = vadd.f32 %v718_v9, %v288_v16  ;;  %v328_v25 = vadd.f32 %v718_v9, %v289_v17 }
  0x15   : > { %v329_v26 = vadd.f32 %v718_v9, %v290_v18  ;;  %v330_v27 = vadd.f32 %v718_v9, %v291_v19  ;;  %v331_v28 = vadd.f32 %v718_v9, %v292_v20  ;;  %v332_v29 = vadd.f32 %v718_v9, %v293_v21 }
  0x16   : > { %v357_v32 = vmax.f32 %v325_v22, 0.0  ;;  %v358_v33 = vmax.f32 %v326_v23, 0.0  ;;  %v359_v34 = vmax.f32 %v327_v24, 0.0  ;;  %v360_v35 = vmax.f32 %v328_v25, 0.0 }
  0x17   : > { %v361_v38 = vmax.f32 %v329_v26, 0.0  ;;  %v362_v39 = vmax.f32 %v330_v27, 0.0  ;;  %v363_v40 = vmax.f32 %v331_v28, 0.0  ;;  %v364_v41 = vmax.f32 %v332_v29, 0.0 }
  0x18   : > { %390 = vst.msk [vmem:[%s736_s27] sm:$0xff] %vm389_vm0, %v357_v32  ;;  %391 = vst.msk [vmem:[%s736_s27 + $0x8] sm:$0xff] %vm389_vm0, %v358_v33  ;;  %v551_v42 = vunpack.c.l.bf16 %v600_v30  ;;  %v552_v43 = vunpack.c.h.bf16 %v600_v30  ;;  %v555_v44 = vunpack.c.l.bf16 %v601_v31  ;;  %v556_v45 = vunpack.c.h.bf16 %v601_v31 }
  0x19   : > { %392 = vst.msk [vmem:[%s736_s27 + $0x10] sm:$0xff] %vm389_vm0, %v359_v34  ;;  %393 = vst.msk [vmem:[%s736_s27 + $0x18] sm:$0xff] %vm389_vm0, %v360_v35  ;;  %v559_v46 = vunpack.c.l.bf16 %v602_v36  ;;  %v560_v47 = vunpack.c.h.bf16 %v602_v36  ;;  %v563_v48 = vunpack.c.l.bf16 %v603_v37  ;;  %v564_v49 = vunpack.c.h.bf16 %v603_v37 }
  0x1a   : > { %394 = vst.msk [vmem:[%s736_s27 + $0x20] sm:$0xff] %vm389_vm0, %v361_v38  ;;  %395 = vst.msk [vmem:[%s736_s27 + $0x28] sm:$0xff] %vm389_vm0, %v362_v39  ;;  %v294_v50 = vmul.f32 %v551_v42, %v709_v0  ;;  %v295_v51 = vmul.f32 %v552_v43, %v709_v0  ;;  %v296_v52 = vmul.f32 %v555_v44, %v709_v0  ;;  %v567_v16 = vunpack.c.l.bf16 %v604_v3 }
  0x1b   : > { %396 = vst.msk [vmem:[%s736_s27 + $0x30] sm:$0xff] %vm389_vm0, %v363_v40  ;;  %397 = vst.msk [vmem:[%s736_s27 + $0x38] sm:$0xff] %vm389_vm0, %v364_v41  ;;  %v297_v53 = vmul.f32 %v556_v45, %v709_v0  ;;  %v298_v54 = vmul.f32 %v559_v46, %v709_v0  ;;  %v299_v55 = vmul.f32 %v560_v47, %v709_v0  ;;  %v568_v17 = vunpack.c.h.bf16 %v604_v3  ;;  %v608_v40 = vld [vmem:[%s704_s19 + $0x60] sm:$0xff]   ;;  %v609_v41 = vld [vmem:[%s704_s19 + $0x68] sm:$0xff]  }
  0x1c   : > { %v300_v56 = vmul.f32 %v563_v48, %v709_v0  ;;  %v301_v57 = vmul.f32 %v564_v49, %v709_v0  ;;  %v333_v58 = vadd.f32 %v718_v9, %v294_v50  ;;  %v334_v59 = vadd.f32 %v718_v9, %v295_v51  ;;  %v610_v46 = vld [vmem:[%s704_s19 + $0x70] sm:$0xff]   ;;  %v611_v47 = vld [vmem:[%s704_s19 + $0x78] sm:$0xff]  }
  0x1d   : > { %v335_v60 = vadd.f32 %v718_v9, %v296_v52  ;;  %v336_v61 = vadd.f32 %v718_v9, %v297_v53  ;;  %v337_v62 = vadd.f32 %v718_v9, %v298_v54  ;;  %v338_v63 = vadd.f32 %v718_v9, %v299_v55 }
  0x1e   : > { %v339_v1 = vadd.f32 %v718_v9, %v300_v56  ;;  %v340_v2 = vadd.f32 %v718_v9, %v301_v57  ;;  %v365_v5 = vmax.f32 %v333_v58, 0.0  ;;  %v366_v6 = vmax.f32 %v334_v59, 0.0 }
  0x1f   : > { %v367_v7 = vmax.f32 %v335_v60, 0.0  ;;  %v368_v8 = vmax.f32 %v336_v61, 0.0  ;;  %v369_v12 = vmax.f32 %v337_v62, 0.0  ;;  %v370_v13 = vmax.f32 %v338_v63, 0.0 }
  0x20   : > { %v371_v14 = vmax.f32 %v339_v1, 0.0  ;;  %v372_v15 = vmax.f32 %v340_v2, 0.0  ;;  %398 = vst.msk [vmem:[%s736_s27 + $0x40] sm:$0xff] %vm389_vm0, %v365_v5  ;;  %399 = vst.msk [vmem:[%s736_s27 + $0x48] sm:$0xff] %vm389_vm0, %v366_v6  ;;  %v571_v18 = vunpack.c.l.bf16 %v605_v4  ;;  %v572_v19 = vunpack.c.h.bf16 %v605_v4 }
  0x21   : > { %400 = vst.msk [vmem:[%s736_s27 + $0x50] sm:$0xff] %vm389_vm0, %v367_v7  ;;  %401 = vst.msk [vmem:[%s736_s27 + $0x58] sm:$0xff] %vm389_vm0, %v368_v8  ;;  %v575_v20 = vunpack.c.l.bf16 %v606_v10  ;;  %v576_v21 = vunpack.c.h.bf16 %v606_v10  ;;  %v579_v22 = vunpack.c.l.bf16 %v607_v11  ;;  %v580_v23 = vunpack.c.h.bf16 %v607_v11 }
  0x22   : > { %402 = vst.msk [vmem:[%s736_s27 + $0x60] sm:$0xff] %vm389_vm0, %v369_v12  ;;  %403 = vst.msk [vmem:[%s736_s27 + $0x68] sm:$0xff] %vm389_vm0, %v370_v13  ;;  %v302_v24 = vmul.f32 %v567_v16, %v709_v0  ;;  %v303_v25 = vmul.f32 %v568_v17, %v709_v0  ;;  %v304_v26 = vmul.f32 %v571_v18, %v709_v0  ;;  %v583_v52 = vunpack.c.l.bf16 %v608_v40 }
  0x23   : > { %404 = vst.msk [vmem:[%s736_s27 + $0x70] sm:$0xff] %vm389_vm0, %v371_v14  ;;  %405 = vst.msk [vmem:[%s736_s27 + $0x78] sm:$0xff] %vm389_vm0, %v372_v15  ;;  %v305_v27 = vmul.f32 %v572_v19, %v709_v0  ;;  %v306_v28 = vmul.f32 %v575_v20, %v709_v0  ;;  %v307_v29 = vmul.f32 %v576_v21, %v709_v0  ;;  %v584_v53 = vunpack.c.h.bf16 %v608_v40 }
  0x24   : > { %v308_v30 = vmul.f32 %v579_v22, %v709_v0  ;;  %v309_v31 = vmul.f32 %v580_v23, %v709_v0  ;;  %v341_v32 = vadd.f32 %v718_v9, %v302_v24  ;;  %v342_v33 = vadd.f32 %v718_v9, %v303_v25 }
  0x25   : > { %v343_v34 = vadd.f32 %v718_v9, %v304_v26  ;;  %v344_v35 = vadd.f32 %v718_v9, %v305_v27  ;;  %v345_v36 = vadd.f32 %v718_v9, %v306_v28  ;;  %v346_v37 = vadd.f32 %v718_v9, %v307_v29 }
  0x26   : > { %v347_v38 = vadd.f32 %v718_v9, %v308_v30  ;;  %v348_v39 = vadd.f32 %v718_v9, %v309_v31  ;;  %v373_v42 = vmax.f32 %v341_v32, 0.0  ;;  %v374_v43 = vmax.f32 %v342_v33, 0.0 }
  0x27   : > { %v375_v44 = vmax.f32 %v343_v34, 0.0  ;;  %v376_v45 = vmax.f32 %v344_v35, 0.0  ;;  %v377_v48 = vmax.f32 %v345_v36, 0.0  ;;  %v378_v49 = vmax.f32 %v346_v37, 0.0 }
  0x28   : > { %v379_v50 = vmax.f32 %v347_v38, 0.0  ;;  %v380_v51 = vmax.f32 %v348_v39, 0.0  ;;  %406 = vst.msk [vmem:[%s736_s27 + $0x80] sm:$0xff] %vm389_vm0, %v373_v42  ;;  %407 = vst.msk [vmem:[%s736_s27 + $0x88] sm:$0xff] %vm389_vm0, %v374_v43  ;;  %v587_v54 = vunpack.c.l.bf16 %v609_v41  ;;  %v588_v55 = vunpack.c.h.bf16 %v609_v41 }
  0x29   : > { %408 = vst.msk [vmem:[%s736_s27 + $0x90] sm:$0xff] %vm389_vm0, %v375_v44  ;;  %409 = vst.msk [vmem:[%s736_s27 + $0x98] sm:$0xff] %vm389_vm0, %v376_v45  ;;  %v591_v56 = vunpack.c.l.bf16 %v610_v46  ;;  %v592_v57 = vunpack.c.h.bf16 %v610_v46  ;;  %v595_v58 = vunpack.c.l.bf16 %v611_v47  ;;  %v596_v59 = vunpack.c.h.bf16 %v611_v47 }
  0x2a   : > { %410 = vst.msk [vmem:[%s736_s27 + $0xa0] sm:$0xff] %vm389_vm0, %v377_v48  ;;  %411 = vst.msk [vmem:[%s736_s27 + $0xa8] sm:$0xff] %vm389_vm0, %v378_v49  ;;  %v310_v60 = vmul.f32 %v583_v52, %v709_v0  ;;  %v311_v61 = vmul.f32 %v584_v53, %v709_v0  ;;  %v312_v62 = vmul.f32 %v587_v54, %v709_v0 }
  0x2b   : > { %412 = vst.msk [vmem:[%s736_s27 + $0xb0] sm:$0xff] %vm389_vm0, %v379_v50  ;;  %413 = vst.msk [vmem:[%s736_s27 + $0xb8] sm:$0xff] %vm389_vm0, %v380_v51  ;;  %v313_v63 = vmul.f32 %v588_v55, %v709_v0  ;;  %v314_v1 = vmul.f32 %v591_v56, %v709_v0  ;;  %v315_v2 = vmul.f32 %v592_v57, %v709_v0 }
  0x2c   : > { %v316_v3 = vmul.f32 %v595_v58, %v709_v0  ;;  %v317_v4 = vmul.f32 %v596_v59, %v709_v0  ;;  %v349_v5 = vadd.f32 %v718_v9, %v310_v60  ;;  %v350_v6 = vadd.f32 %v718_v9, %v311_v61 }
  0x2d   : > { %v351_v7 = vadd.f32 %v718_v9, %v312_v62  ;;  %v352_v8 = vadd.f32 %v718_v9, %v313_v63  ;;  %v353_v10 = vadd.f32 %v718_v9, %v314_v1  ;;  %v354_v11 = vadd.f32 %v718_v9, %v315_v2 }
  0x2e   : > { %v355_v0 = vadd.f32 %v718_v9, %v316_v3  ;;  %v356_v12 = vadd.f32 %v718_v9, %v317_v4  ;;  %v381_v13 = vmax.f32 %v349_v5, 0.0  ;;  %v382_v14 = vmax.f32 %v350_v6, 0.0 }
  0x2f   : > { %v383_v15 = vmax.f32 %v351_v7, 0.0  ;;  %v384_v16 = vmax.f32 %v352_v8, 0.0  ;;  %v385_v17 = vmax.f32 %v353_v10, 0.0  ;;  %v386_v18 = vmax.f32 %v354_v11, 0.0 }
  0x30   : > { %v387_v19 = vmax.f32 %v355_v0, 0.0  ;;  %v388_v20 = vmax.f32 %v356_v12, 0.0  ;;  %414 = vst.msk [vmem:[%s736_s27 + $0xc0] sm:$0xff] %vm389_vm0, %v381_v13  ;;  %415 = vst.msk [vmem:[%s736_s27 + $0xc8] sm:$0xff] %vm389_vm0, %v382_v14 }
  0x31   : > { %416 = vst.msk [vmem:[%s736_s27 + $0xd0] sm:$0xff] %vm389_vm0, %v383_v15  ;;  %417 = vst.msk [vmem:[%s736_s27 + $0xd8] sm:$0xff] %vm389_vm0, %v384_v16 }
  0x32   : > { %418 = vst.msk [vmem:[%s736_s27 + $0xe0] sm:$0xff] %vm389_vm0, %v385_v17  ;;  %419 = vst.msk [vmem:[%s736_s27 + $0xe8] sm:$0xff] %vm389_vm0, %v386_v18 }
  0x33   : > { %420 = vst.msk [vmem:[%s736_s27 + $0xf0] sm:$0xff] %vm389_vm0, %v387_v19  ;;  %421 = vst.msk [vmem:[%s736_s27 + $0xf8] sm:$0xff] %vm389_vm0, %v388_v20 }
  0x34 PF: > { %s13_s14 = sadd.s32 1, %s658_s14   ;;  %s879_s12 = smov %s654_s13 }
  0x35   : > { %p10_p5 = scmp.ge.s32.totalorder %s13_s14, 4   ;;  %s880_s13 = smov %s882_s15 }
  0x37   :  { %12 = sbr.rel (!%p10_p5) target bundleno = 2 (0x2), region = 62 }

// kernel: unet_conv2_forward.3
= control target key start
LH: loop header
LB: loop body
LE: loop exit
PB: predicated region body
PF: predicated region fallthrough
CT: control target
= control target key end

     0   :  { %s4196_s21 = smov 0   ;;  %s4198_s22 = smov 0   ;;  %s5418_s0 = inlined_call_operand.vmem [shape: bf16[2,16,16,128], index: 0, kind: input, shape index: {}, may-alias: {0,1,2}]   ;;  %s5419_s1 = inlined_call_operand.vmem [shape: bf16[2,16,16,128], index: 1, kind: input, shape index: {}, may-alias: {0,1,2}]   ;;  %s5420_s2 = inlined_call_operand.vmem [shape: bf16[2,16,16,128], index: 2, kind: input, shape index: {}, may-alias: {0,1,2}]   ;;  %s5421_s3 = inlined_call_operand.vmem [shape: bf16[3,384,128], index: 3, kind: input, shape index: {}]   ;;  %s5422_s4 = inlined_call_operand.vmem [shape: f32[1,128], index: 4, kind: input, shape index: {}]   ;;  %s5423_s5 = inlined_call_operand.vmem [shape: bf16[2,16,16,128], index: 5, kind: output, shape index: {0}]   ;;  %s5424_s6 = inlined_call_operand.vmem [shape: f32[2,1,2,128], index: 6, kind: output, shape index: {1}]  }
   0x1   :  { %s4200_s1 = smov 0  }
   0x2 LB: > { %s29_s2 = sadd.s32 1, %s4154_s22  ;;  %p3188_p0 = scmp.ge.s32.totalorder %s4158_s1, 1  ;;  %s4158_s1 = sphi %s4200_s1, %s17_s1   ;;  %s4154_s22 = sphi %s4198_s22, %s5471_s22   ;;  %s4150_s21 = sphi %s4196_s21, %s5470_s21  }
   0x3   : > { %p31_p1 = scmp.ge.s32.totalorder %s29_s2, 2  ;;  %p303_p2 = scmp.lt.s32.totalorder %s4158_s1, 3 }
   0x5   : > { %s5473_s2 = smov (%p31_p1, %s29_s2), 0  ;;  %p304_p3 = pnand %p3188_p0, %p303_p2 }
   0x7   : > { %307 = sbr.rel (%p304_p3) target bundleno = 553 (0x229), region = 40 }
   0xc   : > { %v4048_v0 = vld [vmem:[%s5421_s3 + $0x138] sm:$0xff]   ;;  %v4050_v2 = vld [vmem:[%s5421_s3 + $0x130] sm:$0xff]   ;;  %p377_p4 = scmp.lt.s32.totalorder %s4150_s21, 1  ;;  %v4052_v4 = vld [vmem:[%s5421_s3 + $0x128] sm:$0xff]   ;;  %vm740_vm0 = vcmask 1040384   ;;  %vm1050_vm4 = vcmask 1046528  }
   0xd   : > { %v4049_v1 = vld [vmem:[%s5421_s3 + $0xf8] sm:$0xff]   ;;  %3455 = vmatprep.subr.bf16.mxu0 %v4048_v0  ;;  %4007 = vmatprep.subr.bf16.mxu1 %v4048_v0  ;;  %v4051_v3 = vld [vmem:[%s5421_s3 + $0xf0] sm:$0xff]   ;;  %v4053_v5 = vld [vmem:[%s5421_s3 + $0xe8] sm:$0xff]   ;;  %vm741_vm1 = vsmask.f32 256 }
   0xe   : > { %3456 = vmatpush3.bf16.msra.mxu0 %v4049_v1  ;;  %4015 = vmatpush3.bf16.msra.mxu1 %v4049_v1  ;;  %s5475_s21 = smov (!%p377_p4, %s4150_s21), 1  ;;  %v4054_v6 = vld [vmem:[%s5421_s3 + $0x120] sm:$0xff]   ;;  %v4056_v8 = vld [vmem:[%s5421_s3 + $0x118] sm:$0xff]   ;;  %v4058_v10 = vld [vmem:[%s5421_s3 + $0x110] sm:$0xff]   ;;  %vm779_vm3 = vsmask.f32 7424 }
   0xf   : > { %3457 = vmatprep.subr.bf16.mxu0 %v4050_v2  ;;  %4008 = vmatprep.subr.bf16.mxu1 %v4050_v2  ;;  %s3323_s13 = sshll.u32 %s5475_s21, 7  ;;  %v4055_v7 = vld [vmem:[%s5421_s3 + $0xe0] sm:$0xff]   ;;  %v4057_v9 = vld [vmem:[%s5421_s3 + $0xd8] sm:$0xff]   ;;  %v4059_v15 = vld [vmem:[%s5421_s3 + $0xd0] sm:$0xff]  }
  0x10   : > { %s4249_s20 = scalar_lea.vmem %s5418_s0, %s3323_s13  ;;  %v4060_v16 = vld [vmem:[%s5421_s3 + $0x108] sm:$0xff]   ;;  %vm4266_vm2 = vmand %vm740_vm0, %vm741_vm1  ;;  %v4062_v28 = vld [vmem:[%s5421_s3 + $0x100] sm:$0xff]   ;;  %s5257_s29 = scalar_lea.vmem %s5423_s5, %s3323_s13 }
  0x11   : > { %v4064_v11 = vld [vmem:[%s4249_s20] sm:$0xff]   ;;  %v4061_v21 = vld [vmem:[%s5421_s3 + $0xc8] sm:$0xff]   ;;  %v4066_v45 = vld [vmem:[%s5421_s3 + $0x178] sm:$0xff]   ;;  %s3197_s13 = sshll.u32 %s5475_s21, 1 }
  0x12   : > { %3458 = vmatpush3.bf16.msra.mxu0 %v4051_v3  ;;  %4016 = vmatpush3.bf16.msra.mxu1 %v4051_v3  ;;  %v586_v12 = vshrl.u32 %v4064_v11, 16  ;;  %v589_v13 = vshll.u32 %v4064_v11, 16  ;;  %v4065_v14 = vld [vmem:[%s4249_s20 + $0x60] sm:$0xff]   ;;  %v4069_v25 = vld [vmem:[%s4249_s20 + $0x8] sm:$0xff]   ;;  %v4067_v53 = vld [vmem:[%s5421_s3 + $0xb8] sm:$0xff]   ;;  %s438_s8 = scalar_lea.vmem %s5424_s6, %s3197_s13 }
  0x13   : > { %3459 = vmatprep.subr.bf16.mxu0 %v4052_v4  ;;  %4009 = vmatprep.subr.bf16.mxu1 %v4052_v4  ;;  %v670_v19 = vshrl.u32 %v4065_v14, 16  ;;  %v673_v20 = vshll.u32 %v4065_v14, 16  ;;  %v4070_v27 = vld [vmem:[%s4249_s20 + $0x68] sm:$0xff]   ;;  %v593_v32 = vshrl.u32 %v4069_v25, 16  ;;  %v4063_v33 = vld [vmem:[%s5421_s3 + $0xc0] sm:$0xff]   ;;  %v596_v39 = vshll.u32 %v4069_v25, 16 }
  0x14   : > { %v588_v17 = vrot.slane %v586_v12, 7  ;;  %v677_v40 = vshrl.u32 %v4070_v27, 16  ;;  %v680_v49 = vshll.u32 %v4070_v27, 16  ;;  %v4074_v62 = vld [vmem:[%s4249_s20 + $0x10] sm:$0xff]  }
  0x15   : > { %v672_v24 = vrot.slane %v670_v19, 7  ;;  %v595_v38 = vrot.slane %v593_v32, 7  ;;  %v4075_v63 = vld [vmem:[%s4249_s20 + $0x70] sm:$0xff]   ;;  %v603_v11 = vshll.u32 %v4074_v62, 16  ;;  %v4072_v32 = vld [vmem:[%s5421_s3 + $0x160] sm:$0xff]  }
  0x16   : > { %3460 = vmatpush3.bf16.msra.mxu0 %v4053_v5  ;;  %4017 = vmatpush3.bf16.msra.mxu1 %v4053_v5  ;;  %v591_v22 = vor.u32 %v589_v13, %v588_v17  ;;  %v4275_v23 = vsel %vm4266_vm2, %v588_v17, 0  ;;  %v679_v48 = vrot.slane %v677_v40, 7  ;;  %v4073_v3 = vld [vmem:[%s5421_s3 + $0xb0] sm:$0xff]   ;;  %v684_v12 = vshrl.u32 %v4075_v63, 16 }
  0x17   : > { %3461 = vmatprep.subr.bf16.mxu0 %v4054_v6  ;;  %4010 = vmatprep.subr.bf16.mxu1 %v4054_v6  ;;  %v800_v26 = vshll.u32 %v4275_v23, 16  ;;  %v675_v30 = vor.u32 %v673_v20, %v672_v24  ;;  %v4289_v31 = vsel %vm4266_vm2, %v672_v24, 0  ;;  %v598_v46 = vor.u32 %v596_v39, %v595_v38  ;;  %v4068_v5 = vld [vmem:[%s5421_s3 + $0x170] sm:$0xff]  }
  0x18   : > { %v4285_v29 = vsel %vm4266_vm2, 0, %v591_v22  ;;  %v944_v36 = vshll.u32 %v4289_v31, 16  ;;  %v4308_v47 = vsel %vm4266_vm2, %v595_v38, 0  ;;  %v682_v56 = vor.u32 %v680_v49, %v679_v48  ;;  %v4078_v22 = vld [vmem:[%s4249_s20 + $0x18] sm:$0xff]  }
  0x19   : > { %v793_v34 = vshrl.u32 %v4285_v29, 16  ;;  %v795_v35 = vshll.u32 %v4285_v29, 16  ;;  %v4299_v37 = vsel %vm4266_vm2, 0, %v675_v30  ;;  %v802_v42 = vrot.slane %v800_v26, 1 }
  0x1a   : > { %3462 = vmatpush3.bf16.msra.mxu0 %v4055_v7  ;;  %4018 = vmatpush3.bf16.msra.mxu1 %v4055_v7  ;;  %v937_v43 = vshrl.u32 %v4299_v37, 16  ;;  %v939_v44 = vshll.u32 %v4299_v37, 16  ;;  %v946_v52 = vrot.slane %v944_v36, 1  ;;  %v812_v54 = vshll.u32 %v4308_v47, 16  ;;  %v4081_v36 = vld [vmem:[%s5421_s3 + $0xa8] sm:$0xff]  }
  0x1b   : > { %3463 = vmatprep.subr.bf16.mxu0 %v4056_v8  ;;  %4011 = vmatprep.subr.bf16.mxu1 %v4056_v8  ;;  %v797_v41 = vrot.slane %v795_v35, 1  ;;  %v4316_v55 = vsel %vm4266_vm2, 0, %v598_v46  ;;  %v4320_v57 = vsel %vm4266_vm2, %v679_v48, 0  ;;  %v4332_v1 = vsel %vm4266_vm2, 0, %v682_v56 }
  0x1c   : > { %v941_v51 = vrot.slane %v939_v44, 1  ;;  %v805_v60 = vshrl.u32 %v4316_v55, 16  ;;  %v807_v61 = vshll.u32 %v4316_v55, 16  ;;  %v814_v0 = vrot.slane %v812_v54, 1 }
  0x1d   : > { %v798_v50 = vor.u32 %v797_v41, %v793_v34  ;;  %v956_v2 = vshll.u32 %v4320_v57, 16  ;;  %v949_v7 = vshrl.u32 %v4332_v1, 16  ;;  %v951_v8 = vshll.u32 %v4332_v1, 16 }
  0x1e   : > { %3464 = vmatpush3.bf16.msra.mxu0 %v4057_v9  ;;  %4019 = vmatpush3.bf16.msra.mxu1 %v4057_v9  ;;  %v942_v59 = vor.u32 %v941_v51, %v937_v43  ;;  %v809_v6 = vrot.slane %v807_v61, 1  ;;  %v686_v19 = vrot.slane %v684_v12, 7  ;;  %v607_v35 = vshrl.u32 %v4078_v22, 16  ;;  %v4076_v61 = vld [vmem:[%s5421_s3 + $0x158] sm:$0xff]   ;;  %v4086_v12 = vld [vmem:[%s5421_s3 + $0xa0] sm:$0xff]  }
  0x1f   : > { %3465 = vmatprep.subr.bf16.mxu0 %v4058_v10  ;;  %4012 = vmatprep.subr.bf16.mxu1 %v4058_v10  ;;  %v4323_v58 = vsel %vm779_vm3, %v798_v50, %v802_v42  ;;  %v958_v9 = vrot.slane %v956_v2, 1  ;;  %v600_v10 = vshrl.u32 %v4074_v62, 16  ;;  %v953_v14 = vrot.slane %v951_v8, 1  ;;  %v4083_v2 = vld [vmem:[%s4249_s20 + $0x20] sm:$0xff]   ;;  %v4077_v8 = vld [vmem:[%s5421_s3 + $0x150] sm:$0xff]  }
  0x20   : > { %1443 = vmatprep.mubr.bf16.mxu0 %v4323_v58  ;;  %v4339_v4 = vsel %vm779_vm3, %v942_v59, %v946_v52  ;;  %v810_v13 = vor.u32 %v809_v6, %v805_v60  ;;  %v4363_v27 = vsel %vm4266_vm2, %v686_v19, 0  ;;  %v610_v40 = vshll.u32 %v4078_v22, 16 }
  0x21   : > { %1539 = vmatprep.mubr.bf16.mxu1 %v4339_v4  ;;  %v602_v17 = vrot.slane %v600_v10, 7  ;;  %v968_v34 = vshll.u32 %v4363_v27, 16  ;;  %v609_v49 = vrot.slane %v607_v35, 7  ;;  %v1054_v6 = vrot.slane %v4285_v29, 1 }
  0x22   : > { %3466 = vmatpush3.bf16.msra.mxu0 %v4059_v15  ;;  %4020 = vmatpush3.bf16.msra.mxu1 %v4059_v15  ;;  %v4071_v15 = vld [vmem:[%s5421_s3 + $0x168] sm:$0xff]   ;;  %v4353_v20 = vsel %vm779_vm3, %v810_v13, %v814_v0 }
  0x23   : > { %3467 = vmatprep.subr.bf16.mxu0 %v4060_v16  ;;  %4013 = vmatprep.subr.bf16.mxu1 %v4060_v16  ;;  %v687_v16 = vshll.u32 %v4075_v63, 16  ;;  %v605_v24 = vor.u32 %v603_v11, %v602_v17  ;;  %v4359_v25 = vsel %vm4266_vm2, %v602_v17, 0  ;;  %v970_v48 = vrot.slane %v968_v34, 1  ;;  %v4087_v17 = vld [vmem:[%s4249_s20 + $0x28] sm:$0xff]  }
  0x24   : > { %v612_v54 = vor.u32 %v610_v40, %v609_v49  ;;  %v4394_v56 = vsel %vm4266_vm2, %v609_v49, 0  ;;  %v624_v34 = vshll.u32 %v4087_v17, 16  ;;  %v1055_v40 = vrot.slane %v4275_v23, 1 }
  0x25   : > { %v689_v26 = vor.u32 %v687_v16, %v686_v19  ;;  %v4380_v38 = vsel %vm4266_vm2, 0, %v605_v24  ;;  %v836_v62 = vshll.u32 %v4394_v56, 16  ;;  %v614_v16 = vshrl.u32 %v4083_v2, 16 }
  0x26   : > { %3468 = vmatpush3.bf16.msra.mxu0 %v4061_v21  ;;  %4021 = vmatpush3.bf16.msra.mxu1 %v4061_v21  ;;  %v954_v21 = vor.u32 %v953_v14, %v949_v7  ;;  %v817_v42 = vshrl.u32 %v4380_v38, 16  ;;  %v819_v43 = vshll.u32 %v4380_v38, 16  ;;  %v617_v24 = vshll.u32 %v4083_v2, 16 }
  0x27   : > { %3469 = vmatprep.subr.bf16.mxu0 %v4062_v28  ;;  %4014 = vmatprep.subr.bf16.mxu1 %v4062_v28  ;;  %v4079_v28 = vld [vmem:[%s4249_s20 + $0x78] sm:$0xff]   ;;  %v4384_v39 = vsel %vm4266_vm2, 0, %v689_v26  ;;  %v838_v11 = vrot.slane %v836_v62, 1  ;;  %v616_v26 = vrot.slane %v614_v16, 7 }
  0x28   : > { %v4367_v30 = vsel %vm779_vm3, %v954_v21, %v958_v9  ;;  %v691_v41 = vshrl.u32 %v4079_v28, 16  ;;  %v963_v46 = vshll.u32 %v4384_v39, 16  ;;  %v821_v51 = vrot.slane %v819_v43, 1 }
  0x29   : > { %v694_v52 = vshll.u32 %v4079_v28, 16  ;;  %v621_v28 = vshrl.u32 %v4087_v17, 16  ;;  %v619_v35 = vor.u32 %v617_v24, %v616_v26 }
  0x2a   : > { %3470 = vmatpush3.bf16.msra.mxu0 %v4063_v33  ;;  %4022 = vmatpush3.bf16.msra.mxu1 %v4063_v33  ;;  %v824_v33 = vshll.u32 %v4359_v25, 16  ;;  %v693_v50 = vrot.slane %v691_v41, 7  ;;  %v822_v60 = vor.u32 %v821_v51, %v817_v42 }
  0x2b   : > { %3863 = vmatprep.subr.bf16.mxu1 %v4066_v45  ;;  %3911 = vmatprep.subr.bf16.mxu0 %v4067_v53  ;;  %v623_v41 = vrot.slane %v621_v28, 7  ;;  %v4094_v28 = vld [vmem:[%s4249_s20 + $0x38] sm:$0xff]  }
  0x2c   : > { %v826_v44 = vrot.slane %v824_v33, 1  ;;  %v4398_v59 = vsel %vm4266_vm2, %v693_v50, 0  ;;  %v696_v63 = vor.u32 %v694_v52, %v693_v50  ;;  %v4090_v52 = vld [vmem:[%s4249_s20 + $0x30] sm:$0xff]  }
  0x2d   : > { %1444 = vmatmul.mubr.bf16.vlgmr.msra.gmra.mxu0 %v4285_v29  ;;  %1540 = vmatmul.mubr.bf16.vlgmr.msra.gmra.mxu1 %v4299_v37  ;;  %v980_v0 = vshll.u32 %v4398_v59, 16  ;;  %v4455_v23 = vsel %vm4266_vm2, %v623_v41, 0 }
  0x2e   : > { %3912 = vmatpush3.bf16.msra.mxu0 %v4067_v53  ;;  %3864 = vmatpush3.bf16.msra.mxu1 %v4066_v45  ;;  %v961_v45 = vshrl.u32 %v4384_v39, 16  ;;  %v965_v53 = vrot.slane %v963_v46, 1  ;;  %v4412_v7 = vsel %vm779_vm3, %v822_v60, %v826_v44  ;;  %v4428_v14 = vsel %vm4266_vm2, 0, %v696_v63  ;;  %v4080_v44 = vld [vmem:[%s5421_s3 + $0x148] sm:$0xff]  }
  0x2f   : > { %3913 = vmatprep.subr.bf16.mxu0 %v4073_v3  ;;  %3865 = vmatprep.subr.bf16.mxu1 %v4068_v5  ;;  %v973_v21 = vshrl.u32 %v4428_v14, 16  ;;  %v975_v22 = vshll.u32 %v4428_v14, 16  ;;  %v4451_v46 = vsel %vm4266_vm2, 0, %v619_v35  ;;  %v4468_v60 = vsel %vm1050_vm4, %v1054_v6, %v1055_v40 }
  0x30   : > { %1451 = vmatprep.mubr.bf16.mxu0 %v4353_v20  ;;  %1547 = vmatprep.mubr.bf16.mxu1 %v4367_v30  ;;  %v841_v50 = vshrl.u32 %v4451_v46, 16  ;;  %v843_v51 = vshll.u32 %v4451_v46, 16  ;;  %v860_v62 = vshll.u32 %v4455_v23, 16  ;;  %v1057_v6 = vrot.slane %v4316_v55, 1 }
  0x31   : > { %v977_v33 = vrot.slane %v975_v22, 1  ;;  %v638_v35 = vshll.u32 %v4094_v28, 16  ;;  %v1099_v18 = vrot.slane %v4428_v14, 1 }
  0x32   : > { %3914 = vmatpush3.bf16.msra.mxu0 %v4073_v3  ;;  %3866 = vmatpush3.bf16.msra.mxu1 %v4068_v5  ;;  %v966_v3 = vor.u32 %v965_v53, %v961_v45  ;;  %v4408_v5 = vsel %vm4266_vm2, 0, %v612_v54  ;;  %v4082_v53 = vld [vmem:[%s5421_s3 + $0x140] sm:$0xff]   ;;  %v845_v63 = vrot.slane %v843_v51, 1  ;;  %v862_v17 = vrot.slane %v860_v62, 1 }
  0x33   : > { %3867 = vmatprep.subr.bf16.mxu1 %v4071_v15  ;;  %3915 = vmatprep.subr.bf16.mxu0 %v4081_v36  ;;  %v829_v9 = vshrl.u32 %v4408_v5, 16  ;;  %v831_v10 = vshll.u32 %v4408_v5, 16  ;;  %v978_v43 = vor.u32 %v977_v33, %v973_v21  ;;  %v1064_v62 = vrot.slane %v4394_v56, 1 }
  0x34   : > { %v4424_v13 = vsel %vm779_vm3, %v966_v3, %v970_v48  ;;  %v626_v48 = vor.u32 %v624_v34, %v623_v41  ;;  %v628_v3 = vshrl.u32 %v4090_v52, 16  ;;  %v635_v34 = vshrl.u32 %v4094_v28, 16  ;;  %v4088_v41 = vld [vmem:[%s5421_s3 + $0x70] sm:$0xff]  }
  0x35   : > { %1452 = vmatmul.mubr.bf16.gmra.mxu0 %v4316_v55  ;;  %1548 = vmatmul.mubr.bf16.gmra.mxu1 %v4332_v1  ;;  %5430 = vst [vmem:[#allocation2_spill] sm:$0xff] %v4424_v13  ;;  %v833_v19 = vrot.slane %v831_v10, 1  ;;  %v846_v10 = vor.u32 %v845_v63, %v841_v50  ;;  %v1063_v50 = vrot.slane %v4408_v5, 1  ;;  %v4091_v63 = vld [vmem:[%s5421_s3 + $0x68] sm:$0xff]  }
  0x36   : > { %3916 = vmatpush3.bf16.msra.mxu0 %v4081_v36  ;;  %3868 = vmatpush3.bf16.msra.mxu1 %v4071_v15  ;;  %v982_v15 = vrot.slane %v980_v0, 1  ;;  %v4438_v36 = vsel %vm4266_vm2, %v616_v26, 0  ;;  %v630_v16 = vrot.slane %v628_v3, 7  ;;  %v637_v51 = vrot.slane %v635_v34, 7 }
  0x37   : > { %3869 = vmatprep.subr.bf16.mxu1 %v4072_v32  ;;  %1459 = vmatprep.mubr.bf16.mxu0 %v4412_v7  ;;  %v848_v45 = vshll.u32 %v4438_v36, 16  ;;  %v1067_v56 = vrot.slane %v4438_v36, 1  ;;  %v4554_v36 = vsel %vm1050_vm4, %v1063_v50, %v1064_v62  ;;  %v4096_v62 = vld [vmem:[%s5421_s3 + $0x20] sm:$0xff]  }
  0x38   : > { %1555 = vmatprep.mubr.bf16.mxu1 %v4424_v13  ;;  %3917 = vmatprep.subr.bf16.mxu0 %v4086_v12  ;;  %v4458_v49 = vsel %vm779_vm3, %v978_v43, %v982_v15  ;;  %v1060_v15 = vrot.slane %v4380_v38, 1  ;;  %v4495_v26 = vsel %vm4266_vm2, %v630_v16, 0 }
  0x39   : > { %5431 = vst [vmem:[#allocation3_spill] sm:$0xff] %v4458_v49  ;;  %v850_v54 = vrot.slane %v848_v45, 1  ;;  %v872_v45 = vshll.u32 %v4495_v26, 16 }
  0x3a   : > { %3870 = vmatpush3.bf16.msra.mxu1 %v4072_v32  ;;  %v834_v32 = vor.u32 %v833_v19, %v829_v9  ;;  %3918 = vmatpush3.bf16.msra.mxu0 %v4086_v12  ;;  %v631_v9 = vshll.u32 %v4090_v52, 16  ;;  %v1061_v19 = vrot.slane %v4359_v25, 1  ;;  %v4085_v25 = vld [vmem:[%s5421_s3 + $0x38] sm:$0xff]   ;;  %v4089_v52 = vld [vmem:[%s5421_s3 + $0x30] sm:$0xff]  }
  0x3b   : > { %3871 = vmatprep.subr.bf16.mxu1 %v4076_v61  ;;  %v4491_v21 = vsel %vm779_vm3, %v846_v10, %v850_v54  ;;  %v4097_v54 = vld [vmem:[%s5421_s3 + $0x90] sm:$0xff]   ;;  %v4099_v10 = vld [vmem:[%s4249_s20 + $0x48] sm:$0xff]  }
  0x3c   : > { %v4442_v42 = vsel %vm779_vm3, %v834_v32, %v838_v11  ;;  %v4084_v11 = vld [vmem:[%s5421_s3 + $0x78] sm:$0xff]   ;;  %v633_v24 = vor.u32 %v631_v9, %v630_v16  ;;  %v4540_v9 = vsel %vm4266_vm2, %v637_v51, 0 }
  0x3d   : > { %1460 = vmatmul.mubr.bf16.gmra.mxu0 %v4380_v38  ;;  %1556 = vmatmul.mubr.bf16.gmra.mxu1 %v4384_v39 }
  0x3e   : > { %3872 = vmatpush3.bf16.msra.mxu1 %v4076_v61  ;;  %1467 = vmatprep.mubr.bf16.mxu0 %v4442_v42  ;;  %v4472_v61 = vsel %vm4266_vm2, 0, %v626_v48  ;;  %v4507_v33 = vsel %vm4266_vm2, 0, %v633_v24  ;;  %v4519_v48 = vsel %vm1050_vm4, %v1060_v15, %v1061_v19 }
  0x3f   : > { %3873 = vmatprep.subr.bf16.mxu1 %v4077_v8  ;;  %1563 = vmatprep.mubr.bf16.mxu1 %v4458_v49  ;;  %v853_v0 = vshrl.u32 %v4472_v61, 16  ;;  %v855_v2 = vshll.u32 %v4472_v61, 16  ;;  %v865_v43 = vshrl.u32 %v4507_v33, 16 }
  0x41   : > { %v857_v12 = vrot.slane %v855_v2, 1  ;;  %v4098_v2 = vld [vmem:[%s4249_s20 + $0x40] sm:$0xff]  }
  0x42   : > { %3874 = vmatpush3.bf16.msra.mxu1 %v4077_v8  ;;  %v1058_v8 = vrot.slane %v4308_v47, 1  ;;  %v4093_v47 = vld [vmem:[%s5421_s3 + $0x98] sm:$0xff]   ;;  %v645_v15 = vshll.u32 %v4098_v2, 16 }
  0x43   : > { %3875 = vmatprep.subr.bf16.mxu1 %v4080_v44  ;;  %v858_v22 = vor.u32 %v857_v12, %v853_v0  ;;  %3919 = vmatprep.subr.bf16.mxu0 %v4093_v47  ;;  %v640_v0 = vor.u32 %v638_v35, %v637_v51  ;;  %v642_v12 = vshrl.u32 %v4098_v2, 16  ;;  %v4095_v35 = vld [vmem:[%s5421_s3 + $0x60] sm:$0xff]   ;;  %v1073_v2 = vrot.slane %v4495_v26, 1  ;;  %v4101_v26 = vld [vmem:[%s5421_s3 + $0x18] sm:$0xff]  }
  0x44   : > { %3920 = vmatpush3.bf16.msra.mxu0 %v4093_v47  ;;  %v4500_v32 = vsel %vm1050_vm4, %v1057_v6, %v1058_v8  ;;  %v874_v8 = vrot.slane %v872_v45, 1  ;;  %v1066_v6 = vrot.slane %v4451_v46, 1  ;;  %v4092_v47 = vld [vmem:[%s5421_s3 + $0x28] sm:$0xff]   ;;  %v1070_v45 = vrot.slane %v4455_v23, 1 }
  0x45   : > { %1468 = vmatmul.mubr.bf16.gmra.mxu0 %v4408_v5  ;;  %1564 = vmatmul.mubr.bf16.gmra.mxu1 %v4428_v14  ;;  %v4510_v40 = vsel %vm779_vm3, %v858_v22, %v862_v17  ;;  %v884_v17 = vshll.u32 %v4540_v9, 16  ;;  %v644_v19 = vrot.slane %v642_v12, 7  ;;  %v649_v22 = vshrl.u32 %v4099_v10, 16 }
  0x46   : > { %3876 = vmatpush3.bf16.msra.mxu1 %v4080_v44  ;;  %3879 = vmatprep.mubr.bf16.mxu1 %v4468_v60  ;;  %v867_v44 = vshll.u32 %v4507_v33, 16  ;;  %v4561_v34 = vsel %vm1050_vm4, %v1066_v6, %v1067_v56 }
  0x47   : > { %3877 = vmatprep.subr.bf16.mxu1 %v4082_v53  ;;  %1475 = vmatprep.mubr.bf16.mxu0 %v4491_v21  ;;  %v651_v51 = vrot.slane %v649_v22, 7  ;;  %v4104_v22 = vld [vmem:[%s5421_s3 + $0x50] sm:$0xff]  }
  0x48   : > { %3921 = vmatprep.subr.bf16.mxu0 %v4097_v54 }
  0x49   : > { %3922 = vmatpush3.bf16.msra.mxu0 %v4097_v54  ;;  %v886_v54 = vrot.slane %v884_v17, 1 }
  0x4a   : > { %3878 = vmatpush3.bf16.msra.mxu1 %v4082_v53  ;;  %v869_v53 = vrot.slane %v867_v44, 1  ;;  %v4102_v44 = vld [vmem:[%s4249_s20 + $0x50] sm:$0xff]  }
  0x4b   : > { %3591 = vmatprep.subr.bf16.mxu1 %v4084_v11  ;;  %v4546_v11 = vsel %vm4266_vm2, 0, %v640_v0  ;;  %v1072_v0 = vrot.slane %v4507_v33, 1 }
  0x4c   : > { %v870_v3 = vor.u32 %v869_v53, %v865_v43  ;;  %v879_v16 = vshll.u32 %v4546_v11, 16  ;;  %v877_v28 = vshrl.u32 %v4546_v11, 16  ;;  %v1069_v43 = vrot.slane %v4472_v61, 1 }
  0x4d   : > { %1476 = vmatmul.mubr.bf16.gmra.mxu0 %v4451_v46  ;;  %3880 = vmatmul.mubr.bf16.vlgmr.msra.gmra.mxu1 %v4500_v32  ;;  %v4602_v17 = vsel %vm1050_vm4, %v1072_v0, %v1073_v2  ;;  %v4107_v0 = vld [vmem:[%s5421_s3 + $0x48] sm:$0xff]   ;;  %v771_v2 = vsel %vm4266_vm2, %v651_v51, 0 }
  0x4e   : > { %1483 = vmatprep.mubr.bf16.mxu0 %v4510_v40  ;;  %3592 = vmatpush3.bf16.msra.mxu1 %v4085_v25  ;;  %v4557_v24 = vsel %vm779_vm3, %v870_v3, %v874_v8  ;;  %v881_v25 = vrot.slane %v879_v16, 1  ;;  %v4100_v3 = vld [vmem:[%s5421_s3 + $0x58] sm:$0xff]   ;;  %v656_v8 = vshrl.u32 %v4102_v44, 16  ;;  %v4589_v56 = vsel %vm1050_vm4, %v1069_v43, %v1070_v45 }
  0x4f   : > { %3883 = vmatprep.mubr.bf16.mxu1 %v4519_v48  ;;  %3593 = vmatprep.subr.bf16.mxu1 %v4088_v41  ;;  %v647_v41 = vor.u32 %v645_v15, %v644_v19 }
  0x50   : > { %v882_v53 = vor.u32 %v881_v25, %v877_v28  ;;  %v658_v28 = vrot.slane %v656_v8, 7  ;;  %v659_v25 = vshll.u32 %v4102_v44, 16  ;;  %v4160_v8 = vmov 0  }
  0x51   : > { %v4574_v50 = vsel %vm4266_vm2, 0, %v647_v41  ;;  %v1076_v41 = vrot.slane %v4540_v9, 1 }
  0x52   : > { %3594 = vmatpush3.bf16.msra.mxu1 %v4089_v52  ;;  %v652_v52 = vshll.u32 %v4099_v10, 16  ;;  %v891_v23 = vshll.u32 %v4574_v50, 16  ;;  %v4592_v12 = vsel %vm779_vm3, %v882_v53, %v886_v54  ;;  %v889_v15 = vshrl.u32 %v4574_v50, 16  ;;  %v4105_v54 = vld [vmem:[%s5421_s3 + $0x10] sm:$0xff]  }
  0x53   : > { %3595 = vmatprep.subr.bf16.mxu1 %v4091_v63  ;;  %v770_v63 = vsel %vm4266_vm2, %v644_v19, 0  ;;  %v4103_v19 = vld [vmem:[%s4249_s20 + $0x58] sm:$0xff]   ;;  %v1078_v9 = vrot.slane %v4574_v50, 1 }
  0x54   : > { %v896_v6 = vshll.u32 %v770_v63, 16  ;;  %v654_v10 = vor.u32 %v652_v52, %v651_v51  ;;  %v893_v16 = vrot.slane %v891_v23, 1  ;;  %v4109_v52 = vld [vmem:[%s5421_s3 + $0x80] sm:$0xff]   ;;  %v663_v23 = vshrl.u32 %v4103_v19, 16  ;;  %v4108_v51 = vld [vmem:[%s5421_s3 + $0x8] sm:$0xff]  }
  0x55   : > { %1484 = vmatmul.mubr.bf16.gmra.mxu0 %v4472_v61  ;;  %3884 = vmatmul.mubr.bf16.gmra.mxu1 %v4554_v36 }
  0x56   : > { %1491 = vmatprep.mubr.bf16.mxu0 %v4557_v24  ;;  %3887 = vmatprep.mubr.bf16.mxu1 %v4561_v34  ;;  %v898_v43 = vrot.slane %v896_v6, 1  ;;  %v4615_v45 = vsel %vm4266_vm2, 0, %v654_v10  ;;  %v894_v44 = vor.u32 %v893_v16, %v889_v15  ;;  %v3198_v6 = vcombine.low %v4160_v8, %v4160_v8 }
  0x57   : > { %3596 = vmatpush3.bf16.msra.mxu1 %v4092_v47  ;;  %v4106_v47 = vld [vmem:[%s5421_s3 + $0x88] sm:$0xff]   ;;  %v903_v53 = vshll.u32 %v4615_v45, 16  ;;  %v908_v15 = vshll.u32 %v771_v2, 16  ;;  %v901_v16 = vshrl.u32 %v4615_v45, 16 }
  0x58   : > { %3597 = vmatprep.subr.bf16.mxu1 %v4095_v35  ;;  %3923 = vmatprep.subr.bf16.mxu0 %v4106_v47  ;;  %v1075_v35 = vrot.slane %v4546_v11, 1 }
  0x59   : > { %3924 = vmatpush3.bf16.msra.mxu0 %v4106_v47  ;;  %v772_v47 = vsel %vm4266_vm2, %v658_v28, 0 }
  0x5a   : > { %3925 = vmatprep.subr.bf16.mxu0 %v4109_v52  ;;  %v4632_v10 = vsel %vm1050_vm4, %v1075_v35, %v1076_v41  ;;  %v666_v35 = vshll.u32 %v4103_v19, 16  ;;  %v4110_v41 = vld [vmem:[%s5421_s3 + $0x40] sm:$0xff]   ;;  %v1081_v19 = vrot.slane %v4615_v45, 1 }
  0x5b   : > { %3598 = vmatpush3.bf16.msra.mxu1 %v4096_v62  ;;  %v1079_v62 = vrot.slane %v770_v63, 1  ;;  %v4635_v63 = vsel %vm779_vm3, %v894_v44, %v898_v43  ;;  %v579_v44 = vshrl.u32 %v3198_v6, 16 }
  0x5c   : > { %3599 = vmatprep.subr.bf16.mxu1 %v4100_v3  ;;  %v661_v3 = vor.u32 %v659_v25, %v658_v28  ;;  %v665_v25 = vrot.slane %v663_v23, 7  ;;  %v4113_v28 = vld [vmem:[%s5421_s3 + $0x1f8] sm:$0xff]   ;;  %v4111_v23 = vld [vmem:[%s5421_s3] sm:$0xff]  }
  0x5d   : > { %1492 = vmatmul.mubr.bf16.gmra.mxu0 %v4507_v33  ;;  %3888 = vmatmul.mubr.bf16.gmra.mxu1 %v4589_v56 }
  0x5e   : > { %1499 = vmatprep.mubr.bf16.mxu0 %v4592_v12  ;;  %3891 = vmatprep.mubr.bf16.mxu1 %v4602_v17  ;;  %v4655_v43 = vsel %vm4266_vm2, 0, %v661_v3  ;;  %v668_v3 = vor.u32 %v666_v35, %v665_v25 }
  0x5f   : > { %3600 = vmatpush3.bf16.msra.mxu1 %v4101_v26  ;;  %v905_v26 = vrot.slane %v903_v53, 1  ;;  %3926 = vmatpush3.bf16.msra.mxu0 %v4109_v52  ;;  %v1082_v52 = vrot.slane %v771_v2, 1  ;;  %v910_v53 = vrot.slane %v908_v15, 1  ;;  %v4669_v2 = vld [vmem:[%s5421_s3 + $0x238] sm:$0xff]   ;;  %v913_v8 = vshrl.u32 %v4655_v43, 16 }
  0x60   : > { %3601 = vmatprep.subr.bf16.mxu1 %v4104_v22  ;;  %v4644_v22 = vsel %vm1050_vm4, %v1078_v9, %v1079_v62  ;;  %v915_v62 = vshll.u32 %v4655_v43, 16  ;;  %3727 = vmatprep.subr.bf16.mxu0 %v4113_v28  ;;  %v920_v15 = vshll.u32 %v772_v47, 16  ;;  %v4685_v28 = vsel %vm4266_vm2, 0, %v668_v3 }
  0x61   : > { %v906_v9 = vor.u32 %v905_v26, %v901_v16  ;;  %v4673_v16 = vsel %vm1050_vm4, %v1081_v19, %v1082_v52  ;;  %v582_v19 = vshll.u32 %v3198_v6, 16 }
  0x62   : > { %v917_v35 = vrot.slane %v915_v62, 1  ;;  %v922_v52 = vrot.slane %v920_v15, 1  ;;  %v1090_v62 = vrot.slane %v4299_v37, 1  ;;  %v925_v15 = vshrl.u32 %v4685_v28, 16 }
  0x63   : > { %3602 = vmatpush3.bf16.msra.mxu1 %v4105_v54  ;;  %v1085_v54 = vrot.slane %v772_v47, 1  ;;  %v4676_v26 = vsel %vm779_vm3, %v906_v9, %v910_v53  ;;  %v581_v47 = vrot.slane %v579_v44, 7  ;;  %v1087_v53 = vrot.slane %v4685_v28, 1 }
  0x64   : > { %3603 = vmatprep.subr.bf16.mxu1 %v4107_v0  ;;  %v1084_v0 = vrot.slane %v4655_v43, 1  ;;  %v927_v9 = vshll.u32 %v4685_v28, 16 }
  0x65   : > { %1500 = vmatmul.mubr.bf16.gmra.mxu0 %v4546_v11  ;;  %3892 = vmatmul.mubr.bf16.gmra.mxu1 %v4632_v10 }
  0x66   : > { %1507 = vmatprep.mubr.bf16.mxu0 %v4635_v63  ;;  %3895 = vmatprep.mubr.bf16.mxu1 %v4644_v22  ;;  %v929_v49 = vrot.slane %v927_v9, 1 }
  0x67   : > { %3604 = vmatpush3.bf16.msra.mxu1 %v4108_v51  ;;  %v773_v51 = vsel %vm4266_vm2, %v665_v25, 0 }
  0x68   : > { %3605 = vmatprep.subr.bf16.mxu1 %v4110_v41  ;;  %v4681_v41 = vsel %vm1050_vm4, %v1084_v0, %v1085_v54  ;;  %v1088_v25 = vrot.slane %v773_v51, 1  ;;  %v918_v54 = vor.u32 %v917_v35, %v913_v8  ;;  %v584_v0 = vor.u32 %v582_v19, %v581_v47 }
  0x69   : > { %v932_v44 = vshll.u32 %v773_v51, 16  ;;  %v1094_v51 = vrot.slane %v4320_v57, 1  ;;  %v930_v35 = vor.u32 %v929_v49, %v925_v15 }
  0x6a   : > { %v4697_v6 = vsel %vm1050_vm4, %v1087_v53, %v1088_v25  ;;  %v4700_v3 = vsel %vm779_vm3, %v918_v54, %v922_v52  ;;  %v4709_v8 = vsel %vm4266_vm2, 0, %v584_v0  ;;  %v1096_v25 = vrot.slane %v4384_v39, 1 }
  0x6b   : > { %3606 = vmatpush3.bf16.msra.mxu1 %v4111_v23  ;;  %v1091_v23 = vrot.slane %v4289_v31, 1  ;;  %v1093_v31 = vrot.slane %v4332_v1, 1  ;;  %v934_v19 = vrot.slane %v932_v44, 1  ;;  %v1097_v52 = vrot.slane %v4363_v27, 1 }
  0x6c   : > { %3959 = vmatprep.subr.bf16.mxu1 %v4669_v2  ;;  %v783_v53 = vshll.u32 %v4709_v8, 16  ;;  %v761_v54 = vsel %vm4266_vm2, %v581_v47, 0  ;;  %v781_v49 = vshrl.u32 %v4709_v8, 16  ;;  %v1100_v27 = vrot.slane %v4398_v59, 1  ;;  %v4114_v59 = vld [vmem:[%s5421_s3 + $0x1b8] sm:$0xff]  }
  0x6d   : > { %1508 = vmatmul.mubr.bf16.gmra.mxu0 %v4574_v50  ;;  %3896 = vmatmul.mubr.bf16.gmra.mxu1 %v4673_v16  ;;  %v4704_v13 = vsel %vm1050_vm4, %v1090_v62, %v1091_v23  ;;  %v4722_v9 = vsel %vm1050_vm4, %v1093_v31, %v1094_v51  ;;  %v4725_v62 = vsel %vm779_vm3, %v930_v35, %v934_v19  ;;  %v788_v0 = vshll.u32 %v761_v54, 16 }
  0x6e   : > { %1515 = vmatprep.mubr.bf16.mxu0 %v4676_v26  ;;  %3899 = vmatprep.mubr.bf16.mxu1 %v4681_v41  ;;  %v4728_v57 = vsel %vm1050_vm4, %v1096_v25, %v1097_v52  ;;  %v785_v23 = vrot.slane %v783_v53, 1  ;;  %v1051_v47 = vrot.slane %v4709_v8, 1  ;;  %v1052_v44 = vrot.slane %v761_v54, 1  ;;  %v4115_v25 = vld [vmem:[%s5421_s3 + $0x1f0] sm:$0xff]   ;;  %v4118_v54 = vld [vmem:[%s5421_s3 + $0x1e8] sm:$0xff]  }
  0x6f   : > { %v790_v31 = vrot.slane %v788_v0, 1  ;;  %v4739_v51 = vsel %vm1050_vm4, %v1099_v18, %v1100_v27  ;;  %v4117_v52 = vld [vmem:[%s5421_s3 + $0x230] sm:$0xff]   ;;  %v4123_v0 = vld [vmem:[%s5421_s3 + $0x1d8] sm:$0xff]  }
  0x70   : > { %v786_v15 = vor.u32 %v785_v23, %v781_v49  ;;  %v4742_v35 = vsel %vm1050_vm4, %v1051_v47, %v1052_v44  ;;  %v4116_v53 = vld [vmem:[%s5421_s3 + $0x1b0] sm:$0xff]   ;;  %v4127_v49 = vld [vmem:[%s5421_s3 + $0x220] sm:$0xff]   ;;  %v4124_v18 = vld [vmem:[%s5421_s3 + $0x198] sm:$0xff]  }
  0x71   : > { %v4121_v23 = vld [vmem:[%s5421_s3 + $0x1a0] sm:$0xff]   ;;  %v4125_v27 = vld [vmem:[%s5421_s3 + $0x1d0] sm:$0xff]  }
  0x72   : > { %v4745_v19 = vsel %vm779_vm3, %v786_v15, %v790_v31  ;;  %v4133_v47 = vld [vmem:[%s5421_s3 + $0x210] sm:$0xff]   ;;  %v4128_v15 = vld [vmem:[%s5421_s3 + $0x1c8] sm:$0xff]  }
  0x73   : > { %v4126_v44 = vld [vmem:[%s5421_s3 + $0x190] sm:$0xff]   ;;  %v4134_v31 = vld [vmem:[%s5421_s3 + $0x208] sm:$0xff]  }
  0x75   : > { %1516 = vmatmul.mubr.bf16.gmra.mxu0 %v4615_v45  ;;  %3900 = vmatmul.mubr.bf16.gmra.mxu1 %v4697_v6 }
  0x76   : > { %1523 = vmatprep.mubr.bf16.mxu0 %v4700_v3  ;;  %3903 = vmatprep.mubr.bf16.mxu1 %v4704_v13 }
  0x7d   : > { %1524 = vmatmul.mubr.bf16.gmra.mxu0 %v4655_v43  ;;  %3904 = vmatmul.mubr.bf16.gmra.mxu1 %v4722_v9 }
  0x7e   : > { %1531 = vmatprep.mubr.bf16.mxu0 %v4725_v62  ;;  %3907 = vmatprep.mubr.bf16.mxu1 %v4728_v57 }
  0x85   : > { %1532 = vmatmul.mubr.bf16.gmra.mxu0 %v4685_v28  ;;  %3908 = vmatmul.mubr.bf16.gmra.mxu1 %v4739_v51 }
  0x86   : > { %3927 = vmatprep.mubr.bf16.mxu0 %v4742_v35  ;;  %1909 = vmatprep.mubr.bf16.mxu1 %v4745_v19 }
  0x8d   : > { %3928 = vmatmul.mubr.bf16.vlgmr.msra.gmra.mxu0 %v4468_v60  ;;  %1910 = vmatmul.mubr.bf16.vlgmr.msra.gmra.mxu1 %v4709_v8  ;;  %v4122_v60 = vld [vmem:[%s5421_s3 + $0x228] sm:$0xff]  }
  0x8e   : > { %3728 = vmatpush3.bf16.msra.mxu0 %v4114_v59  ;;  %3960 = vmatpush3.bf16.msra.mxu1 %v4669_v2  ;;  %v4119_v2 = vld [vmem:[%s5421_s3 + $0x1a8] sm:$0xff]  }
  0x8f   : > { %1917 = vmatprep.mubr.bf16.mxu1 %v4323_v58  ;;  %3931 = vmatprep.mubr.bf16.mxu0 %v4500_v32  ;;  %v4120_v58 = vld [vmem:[%s5421_s3 + $0x1e0] sm:$0xff]   ;;  %v4129_v59 = vld [vmem:[%s5421_s3 + $0x188] sm:$0xff]  }
  0x90   : > { %3729 = vmatprep.subr.bf16.mxu0 %v4115_v25  ;;  %3961 = vmatprep.subr.bf16.mxu1 %v4117_v52  ;;  %v4130_v25 = vld [vmem:[%s5421_s3 + $0x1c0] sm:$0xff]  }
  0x92   : > { %3730 = vmatpush3.bf16.msra.mxu0 %v4116_v53  ;;  %3962 = vmatpush3.bf16.msra.mxu1 %v4117_v52  ;;  %v4135_v52 = vld [vmem:[%s5421_s3 + $0x200] sm:$0xff]  }
  0x93   : > { %3731 = vmatprep.subr.bf16.mxu0 %v4118_v54  ;;  %3963 = vmatprep.subr.bf16.mxu1 %v4122_v60  ;;  %v4131_v53 = vld [vmem:[%s5421_s3 + $0x180] sm:$0xff]  }
  0x95   : > { %3932 = vmatmul.mubr.bf16.gmra.mxu0 %v4519_v48  ;;  %1918 = vmatmul.mubr.bf16.gmra.mxu1 %v4285_v29  ;;  %v4132_v29 = vld [vmem:[%s5421_s3 + $0x218] sm:$0xff]  }
  0x96   : > { %3935 = vmatprep.mubr.bf16.mxu0 %v4554_v36  ;;  %1925 = vmatprep.mubr.bf16.mxu1 %v4353_v20 }
  0x97   : > { %3732 = vmatpush3.bf16.msra.mxu0 %v4119_v2  ;;  %3964 = vmatpush3.bf16.msra.mxu1 %v4122_v60 }
  0x98   : > { %3733 = vmatprep.subr.bf16.mxu0 %v4120_v58  ;;  %3965 = vmatprep.subr.bf16.mxu1 %v4127_v49 }
  0x9b   : > { %3734 = vmatpush3.bf16.msra.mxu0 %v4121_v23  ;;  %3966 = vmatpush3.bf16.msra.mxu1 %v4127_v49 }
  0x9c   : > { %3735 = vmatprep.subr.bf16.mxu0 %v4123_v0  ;;  %3967 = vmatprep.subr.bf16.mxu1 %v4132_v29 }
  0x9d   : > { %3936 = vmatmul.mubr.bf16.gmra.mxu0 %v4561_v34  ;;  %1926 = vmatmul.mubr.bf16.gmra.mxu1 %v4316_v55 }
  0x9e   : > { %3939 = vmatprep.mubr.bf16.mxu0 %v4589_v56  ;;  %1933 = vmatprep.mubr.bf16.mxu1 %v4412_v7 }
  0x9f   : > { %3736 = vmatpush3.bf16.msra.mxu0 %v4124_v18  ;;  %3968 = vmatpush3.bf16.msra.mxu1 %v4132_v29 }
  0xa0   : > { %3737 = vmatprep.subr.bf16.mxu0 %v4125_v27  ;;  %3969 = vmatprep.subr.bf16.mxu1 %v4133_v47 }
  0xa3   : > { %3738 = vmatpush3.bf16.msra.mxu0 %v4126_v44  ;;  %3970 = vmatpush3.bf16.msra.mxu1 %v4133_v47 }
  0xa4   : > { %3739 = vmatprep.subr.bf16.mxu0 %v4128_v15  ;;  %3971 = vmatprep.subr.bf16.mxu1 %v4134_v31 }
  0xa5   : > { %3940 = vmatmul.mubr.bf16.gmra.mxu0 %v4602_v17  ;;  %1934 = vmatmul.mubr.bf16.gmra.mxu1 %v4380_v38 }
  0xa6   : > { %3943 = vmatprep.mubr.bf16.mxu0 %v4632_v10  ;;  %1941 = vmatprep.mubr.bf16.mxu1 %v4442_v42 }
  0xa7   : > { %3740 = vmatpush3.bf16.msra.mxu0 %v4129_v59  ;;  %3972 = vmatpush3.bf16.msra.mxu1 %v4134_v31  ;;  %v5432_v59 = vld [vmem:[#allocation2_spill] sm:$0xff] }
  0xa8   : > { %3741 = vmatprep.subr.bf16.mxu0 %v4130_v25  ;;  %3973 = vmatprep.subr.bf16.mxu1 %v4135_v52 }
  0xab   : > { %3742 = vmatpush3.bf16.msra.mxu0 %v4131_v53  ;;  %3974 = vmatpush3.bf16.msra.mxu1 %v4135_v52 }
  0xad   : > { %3944 = vmatmul.mubr.bf16.gmra.mxu0 %v4644_v22  ;;  %1942 = vmatmul.mubr.bf16.gmra.mxu1 %v4408_v5 }
  0xae   : > { %3947 = vmatprep.mubr.bf16.mxu0 %v4673_v16  ;;  %1949 = vmatprep.mubr.bf16.mxu1 %v4491_v21 }
  0xb5   : > { %3948 = vmatmul.mubr.bf16.gmra.mxu0 %v4681_v41  ;;  %1950 = vmatmul.mubr.bf16.gmra.mxu1 %v4451_v46 }
  0xb6   : > { %3951 = vmatprep.mubr.bf16.mxu0 %v4697_v6  ;;  %1957 = vmatprep.mubr.bf16.mxu1 %v4510_v40 }
  0xbd   : > { %3952 = vmatmul.mubr.bf16.gmra.mxu0 %v4704_v13  ;;  %1958 = vmatmul.mubr.bf16.gmra.mxu1 %v4472_v61 }
  0xbe   : > { %3955 = vmatprep.mubr.bf16.mxu0 %v4722_v9  ;;  %1965 = vmatprep.mubr.bf16.mxu1 %v4557_v24 }
  0xc5   : > { %3956 = vmatmul.mubr.bf16.gmra.mxu0 %v4728_v57  ;;  %1966 = vmatmul.mubr.bf16.gmra.mxu1 %v4507_v33 }
  0xc6   : > { %2375 = vmatprep.mubr.bf16.mxu0 %v4353_v20  ;;  %1973 = vmatprep.mubr.bf16.mxu1 %v4592_v12 }
  0xcd   : > { %2376 = vmatmul.mubr.bf16.vlgmr.msra.gmra.mxu0 %v4316_v55  ;;  %1974 = vmatmul.mubr.bf16.gmra.mxu1 %v4546_v11 }
  0xce   : > { %2383 = vmatprep.mubr.bf16.mxu0 %v4412_v7  ;;  %1981 = vmatprep.mubr.bf16.mxu1 %v4635_v63 }
  0xd5   : > { %2384 = vmatmul.mubr.bf16.gmra.mxu0 %v4380_v38  ;;  %1982 = vmatmul.mubr.bf16.gmra.mxu1 %v4574_v50 }
  0xd6   : > { %2391 = vmatprep.mubr.bf16.mxu0 %v4442_v42  ;;  %1989 = vmatprep.mubr.bf16.mxu1 %v4676_v26 }
  0xdd   : > { %2392 = vmatmul.mubr.bf16.gmra.mxu0 %v4408_v5  ;;  %1990 = vmatmul.mubr.bf16.gmra.mxu1 %v4615_v45 }
  0xde   : > { %2399 = vmatprep.mubr.bf16.mxu0 %v4491_v21  ;;  %1997 = vmatprep.mubr.bf16.mxu1 %v4700_v3 }
  0xe5   : > { %2400 = vmatmul.mubr.bf16.gmra.mxu0 %v4451_v46  ;;  %1998 = vmatmul.mubr.bf16.gmra.mxu1 %v4655_v43 }
  0xe6   : > { %2407 = vmatprep.mubr.bf16.mxu0 %v4510_v40  ;;  %2005 = vmatprep.mubr.bf16.mxu1 %v4725_v62 }
  0xed   : > { %v3471_v55 = vpop.f32.mrf.mxu0  ;;  %2408 = vmatmul.mubr.bf16.gmra.mxu0 %v4472_v61  ;;  %v3543_v20 = vpop.f32.mrf.mxu1  ;;  %2006 = vmatmul.mubr.bf16.gmra.mxu1 %v4685_v28 }
  0xee   : > { %2415 = vmatprep.mubr.bf16.mxu0 %v4557_v24  ;;  %2013 = vmatprep.mubr.bf16.mxu1 %v4339_v4 }
  0xef   : > { %v3472_v38 = vpop.f32.mrf.mxu0  ;;  %v3544_v7 = vpop.f32.mrf.mxu1 }
  0xf0   : > { %v4870_v5 = vadd.f32 %v3472_v38, %v3471_v55  ;;  %v4872_v42 = vadd.f32 %v3544_v7, %v3543_v20 }
  0xf1   : > { %v3474_v46 = vpop.f32.mrf.mxu0  ;;  %v3546_v21 = vpop.f32.mrf.mxu1 }
  0xf3   : > { %v3475_v40 = vpop.f32.mrf.mxu0  ;;  %v3547_v60 = vpop.f32.mrf.mxu1 }
  0xf4   : > { %v4874_v54 = vadd.f32 %v3475_v40, %v3474_v46  ;;  %v4876_v61 = vadd.f32 %v3547_v60, %v3546_v21 }
  0xf5   : > { %v3477_v2 = vpop.f32.mrf.mxu0  ;;  %2416 = vmatmul.mubr.bf16.gmra.mxu0 %v4507_v33  ;;  %v3549_v24 = vpop.f32.mrf.mxu1  ;;  %2014 = vmatmul.mubr.bf16.gmra.mxu1 %v4299_v37 }
  0xf6   : > { %2423 = vmatprep.mubr.bf16.mxu0 %v4592_v12  ;;  %2021 = vmatprep.mubr.bf16.mxu1 %v4367_v30 }
  0xf7   : > { %v3478_v58 = vpop.f32.mrf.mxu0  ;;  %v3550_v23 = vpop.f32.mrf.mxu1 }
  0xf8   : > { %v3479_v49 = vadd.f32 %v3478_v58, %v3477_v2  ;;  %v4882_v0 = vadd.f32 %v3550_v23, %v3549_v24 }
  0xf9   : > { %v3480_v29 = vpop.f32.mrf.mxu0  ;;  %v3552_v18 = vpop.f32.mrf.mxu1 }
  0xfb   : > { %v3481_v27 = vpop.f32.mrf.mxu0  ;;  %v3553_v44 = vpop.f32.mrf.mxu1 }
  0xfc   : > { %v3482_v47 = vadd.f32 %v3481_v27, %v3480_v29  ;;  %v4884_v15 = vadd.f32 %v3553_v44, %v3552_v18 }
  0xfd   : > { %v3483_v33 = vpop.f32.mrf.mxu0  ;;  %2424 = vmatmul.mubr.bf16.gmra.mxu0 %v4546_v11  ;;  %v3555_v31 = vpop.f32.mrf.mxu1  ;;  %2022 = vmatmul.mubr.bf16.gmra.mxu1 %v4332_v1 }
  0xfe   : > { %2431 = vmatprep.mubr.bf16.mxu0 %v4635_v63  ;;  %2029 = vmatprep.mubr.bf16.mxu1 %v5432_v59 }
  0xff   : > { %v3484_v12 = vpop.f32.mrf.mxu0  ;;  %v3556_v52 = vpop.f32.mrf.mxu1 }
 0x100   : > { %v3485_v25 = vadd.f32 %v3484_v12, %v3483_v33  ;;  %v4890_v53 = vadd.f32 %v3556_v52, %v3555_v31 }
 0x101   : > { %v3486_v55 = vpop.f32.mrf.mxu0  ;;  %v3558_v20 = vpop.f32.mrf.mxu1 }
 0x103   : > { %v3487_v38 = vpop.f32.mrf.mxu0  ;;  %v3559_v46 = vpop.f32.mrf.mxu1 }
 0x104   : > { %v3488_v7 = vadd.f32 %v3487_v38, %v3486_v55  ;;  %v4892_v21 = vadd.f32 %v3559_v46, %v3558_v20 }
 0x105   : > { %v3489_v11 = vpop.f32.mrf.mxu0  ;;  %2432 = vmatmul.mubr.bf16.gmra.mxu0 %v4574_v50  ;;  %v3561_v40 = vpop.f32.mrf.mxu1  ;;  %2030 = vmatmul.mubr.bf16.gmra.mxu1 %v4384_v39 }
 0x106   : > { %2439 = vmatprep.mubr.bf16.mxu0 %v4676_v26  ;;  %3975 = vmatprep.mubr.bf16.mxu1 %v4500_v32 }
 0x107   : > { %v3490_v63 = vpop.f32.mrf.mxu0  ;;  %v3562_v2 = vpop.f32.mrf.mxu1 }
 0x108   : > { %v3491_v60 = vadd.f32 %v3490_v63, %v3489_v11  ;;  %v4898_v24 = vadd.f32 %v3562_v2, %v3561_v40 }
 0x109   : > { %v3492_v58 = vpop.f32.mrf.mxu0  ;;  %v3564_v23 = vpop.f32.mrf.mxu1 }
 0x10b   : > { %v3493_v29 = vpop.f32.mrf.mxu0  ;;  %v3565_v27 = vpop.f32.mrf.mxu1 }
 0x10c   : > { %v3494_v18 = vadd.f32 %v3493_v29, %v3492_v58  ;;  %v4900_v44 = vadd.f32 %v3565_v27, %v3564_v23 }
 0x10d   : > { %v3495_v50 = vpop.f32.mrf.mxu0  ;;  %2440 = vmatmul.mubr.bf16.gmra.mxu0 %v4615_v45  ;;  %v3881_v33 = vpop.f32.mrf.mxu1  ;;  %3976 = vmatmul.mubr.bf16.vlgmr.msra.gmra.mxu1 %v4519_v48 }
 0x10e   : > { %2447 = vmatprep.mubr.bf16.mxu0 %v4700_v3  ;;  %v4905_v32 = vadd.f32 %v3881_v33, %v3479_v49  ;;  %3979 = vmatprep.mubr.bf16.mxu1 %v4554_v36 }
 0x10f   : > { %v3496_v26 = vpop.f32.mrf.mxu0  ;;  %v1606_v12 = vpop.f32.mrf.mxu1 }
 0x110   : > { %v3497_v31 = vadd.f32 %v3496_v26, %v3495_v50  ;;  %v4909_v52 = vadd.f32 %v4870_v5, %v1606_v12 }
 0x111   : > { %v3498_v55 = vpop.f32.mrf.mxu0  ;;  %v3882_v20 = vpop.f32.mrf.mxu1 }
 0x112   : > { %v4911_v38 = vadd.f32 %v3882_v20, %v3482_v47 }
 0x113   : > { %v3499_v45 = vpop.f32.mrf.mxu0  ;;  %v1609_v11 = vpop.f32.mrf.mxu1 }
 0x114   : > { %v3500_v46 = vadd.f32 %v3499_v45, %v3498_v55  ;;  %v4914_v48 = vadd.f32 %v4874_v54, %v1609_v11 }
 0x115   : > { %v3501_v3 = vpop.f32.mrf.mxu0  ;;  %2448 = vmatmul.mubr.bf16.gmra.mxu0 %v4655_v43  ;;  %v3885_v49 = vpop.f32.mrf.mxu1  ;;  %3980 = vmatmul.mubr.bf16.gmra.mxu1 %v4561_v34 }
 0x116   : > { %2455 = vmatprep.mubr.bf16.mxu0 %v4725_v62  ;;  %v4919_v36 = vadd.f32 %v3885_v49, %v3491_v60  ;;  %3983 = vmatprep.mubr.bf16.mxu1 %v4589_v56 }
 0x117   : > { %v3502_v5 = vpop.f32.mrf.mxu0  ;;  %v1622_v40 = vpop.f32.mrf.mxu1 }
 0x118   : > { %v3503_v47 = vadd.f32 %v3502_v5, %v3501_v3  ;;  %v4922_v63 = vadd.f32 %v3485_v25, %v1622_v40 }
 0x119   : > { %v3504_v2 = vpop.f32.mrf.mxu0  ;;  %v3886_v54 = vpop.f32.mrf.mxu1 }
 0x11a   : > { %v4924_v58 = vadd.f32 %v3886_v54, %v3494_v18 }
 0x11b   : > { %v3505_v23 = vpop.f32.mrf.mxu0  ;;  %v1625_v29 = vpop.f32.mrf.mxu1 }
 0x11c   : > { %v3506_v43 = vadd.f32 %v3505_v23, %v3504_v2  ;;  %v4926_v27 = vadd.f32 %v3488_v7, %v1625_v29 }
 0x11d   : > { %v3507_v34 = vpop.f32.mrf.mxu0  ;;  %2456 = vmatmul.mubr.bf16.gmra.mxu0 %v4685_v28  ;;  %v3889_v62 = vpop.f32.mrf.mxu1  ;;  %3984 = vmatmul.mubr.bf16.gmra.mxu1 %v4602_v17 }
 0x11e   : > { %2463 = vmatprep.mubr.bf16.mxu0 %v4339_v4  ;;  %v4931_v56 = vadd.f32 %v3889_v62, %v3503_v47  ;;  %3987 = vmatprep.mubr.bf16.mxu1 %v4632_v10 }
 0x11f   : > { %v3508_v25 = vpop.f32.mrf.mxu0  ;;  %v1638_v18 = vpop.f32.mrf.mxu1 }
 0x120   : > { %v3509_v60 = vadd.f32 %v3508_v25, %v3507_v34  ;;  %v4934_v50 = vadd.f32 %v3497_v31, %v1638_v18 }
 0x121   : > { %v3510_v33 = vpop.f32.mrf.mxu0  ;;  %v3890_v7 = vpop.f32.mrf.mxu1 }
 0x122   : > { %v4936_v26 = vadd.f32 %v3890_v7, %v3506_v43 }
 0x123   : > { %v3511_v12 = vpop.f32.mrf.mxu0  ;;  %v1641_v55 = vpop.f32.mrf.mxu1 }
 0x124   : > { %v3512_v28 = vadd.f32 %v3511_v12, %v3510_v33  ;;  %v4938_v20 = vadd.f32 %v3500_v46, %v1641_v55 }
 0x125   : > { %v3513_v17 = vpop.f32.mrf.mxu0  ;;  %2464 = vmatmul.mubr.bf16.gmra.mxu0 %v4299_v37  ;;  %v3893_v4 = vpop.f32.mrf.mxu1  ;;  %3988 = vmatmul.mubr.bf16.gmra.mxu1 %v4644_v22 }
 0x126   : > { %2471 = vmatprep.mubr.bf16.mxu0 %v4367_v30  ;;  %3991 = vmatprep.mubr.bf16.mxu1 %v4673_v16 }
 0x127   : > { %v3514_v10 = vpop.f32.mrf.mxu0  ;;  %v1654_v45 = vpop.f32.mrf.mxu1 }
 0x128   : > { %v3515_v31 = vadd.f32 %v3514_v10, %v3513_v17  ;;  %v4944_v11 = vadd.f32 %v3509_v60, %v1654_v45 }
 0x129   : > { %v3516_v3 = vpop.f32.mrf.mxu0  ;;  %v3894_v46 = vpop.f32.mrf.mxu1 }
 0x12a   : > { %v4946_v49 = vadd.f32 %v3893_v4, %v3515_v31 }
 0x12b   : > { %v3517_v5 = vpop.f32.mrf.mxu0  ;;  %v1657_v40 = vpop.f32.mrf.mxu1 }
 0x12c   : > { %v3518_v47 = vadd.f32 %v3517_v5, %v3516_v3  ;;  %v4948_v37 = vadd.f32 %v3512_v28, %v1657_v40 }
 0x12d   : > { %v3519_v2 = vpop.f32.mrf.mxu0  ;;  %2472 = vmatmul.mubr.bf16.gmra.mxu0 %v4332_v1  ;;  %v3897_v22 = vpop.f32.mrf.mxu1  ;;  %3992 = vmatmul.mubr.bf16.gmra.mxu1 %v4681_v41 }
 0x12e   : > { %v4951_v30 = vadd.f32 %v3894_v46, %v3518_v47  ;;  %2479 = vmatprep.mubr.bf16.mxu0 %v5432_v59  ;;  %3995 = vmatprep.mubr.bf16.mxu1 %v4697_v6  ;;  %v5433_v59 = vld [vmem:[#allocation3_spill] sm:$0xff] }
 0x12f   : > { %v3520_v16 = vpop.f32.mrf.mxu0  ;;  %v1670_v23 = vpop.f32.mrf.mxu1 }
 0x130   : > { %v3521_v54 = vadd.f32 %v3520_v16, %v3519_v2 }
 0x131   : > { %v3522_v43 = vpop.f32.mrf.mxu0  ;;  %v3898_v34 = vpop.f32.mrf.mxu1 }
 0x132   : > { %v4956_v29 = vadd.f32 %v3521_v54, %v1670_v23 }
 0x133   : > { %v3523_v62 = vpop.f32.mrf.mxu0  ;;  %v1673_v60 = vpop.f32.mrf.mxu1 }
 0x134   : > { %v3524_v25 = vadd.f32 %v3523_v62, %v3522_v43 }
 0x135   : > { %v3525_v1 = vpop.f32.mrf.mxu0  ;;  %2480 = vmatmul.mubr.bf16.gmra.mxu0 %v4384_v39  ;;  %v3901_v41 = vpop.f32.mrf.mxu1  ;;  %3996 = vmatmul.mubr.bf16.gmra.mxu1 %v4704_v13 }
 0x136   : > { %v4959_v18 = vadd.f32 %v3524_v25, %v1673_v60  ;;  %2487 = vmatprep.mubr.bf16.mxu0 %v5433_v59  ;;  %3999 = vmatprep.mubr.bf16.mxu1 %v4722_v9 }
 0x137   : > { %v3526_v6 = vpop.f32.mrf.mxu0  ;;  %v1686_v7 = vpop.f32.mrf.mxu1 }
 0x138   : > { %v3527_v33 = vadd.f32 %v3526_v6, %v3525_v1 }
 0x139   : > { %v3528_v12 = vpop.f32.mrf.mxu0  ;;  %v3902_v55 = vpop.f32.mrf.mxu1 }
 0x13a   : > { %v4964_v28 = vadd.f32 %v3897_v22, %v3527_v33 }
 0x13b   : > { %v3529_v17 = vpop.f32.mrf.mxu0  ;;  %v1689_v10 = vpop.f32.mrf.mxu1 }
 0x13c   : > { %v3530_v4 = vadd.f32 %v3529_v17, %v3528_v12 }
 0x13d   : > { %v3531_v39 = vpop.f32.mrf.mxu0  ;;  %2488 = vmatmul.mubr.bf16.gmra.mxu0 %v4428_v14  ;;  %v3905_v13 = vpop.f32.mrf.mxu1  ;;  %4000 = vmatmul.mubr.bf16.gmra.mxu1 %v4728_v57 }
 0x13e   : > { %v4967_v31 = vadd.f32 %v3898_v34, %v3530_v4  ;;  %2495 = vmatprep.mubr.bf16.mxu0 %v4745_v19  ;;  %v4972_v9 = vadd.f32 %v3905_v13, %v4882_v0  ;;  %4003 = vmatprep.mubr.bf16.mxu1 %v4739_v51 }
 0x13f   : > { %v3532_v45 = vpop.f32.mrf.mxu0  ;;  %v1702_v46 = vpop.f32.mrf.mxu1 }
 0x140   : > { %v3533_v3 = vadd.f32 %v3532_v45, %v3531_v39  ;;  %v4976_v5 = vadd.f32 %v4872_v42, %v1702_v46 }
 0x141   : > { %v3534_v47 = vpop.f32.mrf.mxu0  ;;  %v3906_v40 = vpop.f32.mrf.mxu1 }
 0x142   : > { %v4978_v14 = vadd.f32 %v3533_v3, %v1686_v7  ;;  %v4981_v2 = vadd.f32 %v3906_v40, %v4884_v15 }
 0x143   : > { %v3535_v57 = vpop.f32.mrf.mxu0  ;;  %v1705_v22 = vpop.f32.mrf.mxu1 }
 0x144   : > { %v3536_v19 = vadd.f32 %v3535_v57, %v3534_v47  ;;  %v4984_v0 = vadd.f32 %v4876_v61, %v1705_v22 }
 0x145   : > { %v3537_v16 = vpop.f32.mrf.mxu0  ;;  %2496 = vmatmul.mubr.bf16.gmra.mxu0 %v4709_v8  ;;  %v3909_v42 = vpop.f32.mrf.mxu1  ;;  %4004 = vmatmul.mubr.bf16.gmra.mxu1 %v4742_v35 }
 0x146   : > { %v4987_v51 = vadd.f32 %v3536_v19, %v1689_v10  ;;  %v4991_v54 = vadd.f32 %v3909_v42, %v4898_v24 }
 0x147   : > { %v3538_v23 = vpop.f32.mrf.mxu0  ;;  %v1718_v43 = vpop.f32.mrf.mxu1 }
 0x148   : > { %v3539_v15 = vadd.f32 %v3538_v23, %v3537_v16  ;;  %v4994_v34 = vadd.f32 %v4890_v53, %v1718_v43 }
 0x149   : > { %v3540_v62 = vpop.f32.mrf.mxu0  ;;  %v3910_v25 = vpop.f32.mrf.mxu1 }
 0x14a   : > { %v4996_v61 = vadd.f32 %v3901_v41, %v3539_v15  ;;  %v4999_v8 = vadd.f32 %v3910_v25, %v4900_v44 }
 0x14b   : > { %v3541_v60 = vpop.f32.mrf.mxu0  ;;  %v1721_v59 = vpop.f32.mrf.mxu1 }
 0x14c   : > { %5434 = vst [vmem:[#allocation2_spill] sm:$0xff] %v4999_v8  ;;  %v3542_v1 = vadd.f32 %v3541_v60, %v3540_v62  ;;  %v5002_v35 = vadd.f32 %v4892_v21, %v1721_v59 }
 0x14d   : > { %v3929_v24 = vpop.f32.mrf.mxu0  ;;  %v3607_v33 = vpop.f32.mrf.mxu1 }
 0x14e   : > { %v5004_v6 = vadd.f32 %v3902_v55, %v3542_v1 }
 0x14f   : > { %v2072_v7 = vpop.f32.mrf.mxu0  ;;  %v3608_v53 = vpop.f32.mrf.mxu1 }
 0x150   : > { %v3609_v12 = vadd.f32 %v3608_v53, %v3607_v33 }
 0x151   : > { %v3930_v17 = vpop.f32.mrf.mxu0  ;;  %v3610_v41 = vpop.f32.mrf.mxu1 }
 0x152   : > { %v1912_v4 = vadd.f32 %v3609_v12, %v4909_v52 }
 0x153   : > { %v2075_v10 = vpop.f32.mrf.mxu0  ;;  %v3611_v44 = vpop.f32.mrf.mxu1 }
 0x154   : > { %v5007_v39 = vadd.f32 %v2072_v7, %v1912_v4  ;;  %v3612_v13 = vadd.f32 %v3611_v44, %v3610_v41 }
 0x155   : > { %v3933_v45 = vpop.f32.mrf.mxu0  ;;  %v3613_v3 = vpop.f32.mrf.mxu1 }
 0x156   : > { %v1915_v21 = vadd.f32 %v3612_v13, %v4914_v48 }
 0x157   : > { %v2088_v46 = vpop.f32.mrf.mxu0  ;;  %v3614_v55 = vpop.f32.mrf.mxu1 }
 0x158   : > { %v5010_v47 = vadd.f32 %v2075_v10, %v1915_v21  ;;  %v3615_v40 = vadd.f32 %v3614_v55, %v3613_v3 }
 0x159   : > { %v3934_v57 = vpop.f32.mrf.mxu0  ;;  %v3616_v19 = vpop.f32.mrf.mxu1 }
 0x15a   : > { %v1920_v22 = vadd.f32 %v3615_v40, %v4905_v32 }
 0x15b   : > { %v2091_v16 = vpop.f32.mrf.mxu0  ;;  %v3617_v52 = vpop.f32.mrf.mxu1 }
 0x15c   : > { %v3618_v42 = vadd.f32 %v3617_v52, %v3616_v19  ;;  %v5013_v15 = vadd.f32 %v3929_v24, %v1920_v22 }
 0x15d   : > { %v3937_v23 = vpop.f32.mrf.mxu0  ;;  %v3619_v43 = vpop.f32.mrf.mxu1 }
 0x15e   : > { %v1923_v62 = vadd.f32 %v3618_v42, %v4911_v38 }
 0x15f   : > { %v2104_v25 = vpop.f32.mrf.mxu0  ;;  %v3620_v48 = vpop.f32.mrf.mxu1 }
 0x160   : > { %v3621_v60 = vadd.f32 %v3620_v48, %v3619_v43  ;;  %v5016_v59 = vadd.f32 %v3930_v17, %v1923_v62 }
 0x161   : > { %v3938_v1 = vpop.f32.mrf.mxu0  ;;  %v3622_v33 = vpop.f32.mrf.mxu1 }
 0x162   : > { %v1928_v7 = vadd.f32 %v3621_v60, %v4922_v63 }
 0x163   : > { %v2107_v53 = vpop.f32.mrf.mxu0  ;;  %v3623_v32 = vpop.f32.mrf.mxu1 }
 0x164   : > { %v3624_v12 = vadd.f32 %v3623_v32, %v3622_v33  ;;  %v5021_v4 = vadd.f32 %v2088_v46, %v1928_v7 }
 0x165   : > { %v5019_v41 = vpop.f32.mrf.mxu0  ;;  %v3625_v24 = vpop.f32.mrf.mxu1 }
 0x166   : > { %v1931_v10 = vadd.f32 %v3624_v12, %v4926_v27 }
 0x167   : > { %v2120_v38 = vpop.f32.mrf.mxu0  ;;  %v3626_v44 = vpop.f32.mrf.mxu1 }
 0x168   : > { %v3627_v13 = vadd.f32 %v3626_v44, %v3625_v24  ;;  %v5026_v17 = vadd.f32 %v2091_v16, %v1931_v10 }
 0x169   : > { %v5024_v3 = vpop.f32.mrf.mxu0  ;;  %v3628_v21 = vpop.f32.mrf.mxu1 }
 0x16a   : > { %v1936_v63 = vadd.f32 %v3627_v13, %v4919_v36 }
 0x16b   : > { %v2123_v55 = vpop.f32.mrf.mxu0  ;;  %v3629_v40 = vpop.f32.mrf.mxu1 }
 0x16c   : > { %v3630_v19 = vadd.f32 %v3629_v40, %v3628_v21  ;;  %v5031_v46 = vadd.f32 %v3933_v45, %v1936_v63 }
 0x16d   : > { %v5029_v22 = vpop.f32.mrf.mxu0  ;;  %v3631_v52 = vpop.f32.mrf.mxu1 }
 0x16e   : > { %v1939_v27 = vadd.f32 %v3630_v19, %v4924_v58 }
 0x16f   : > { %v5034_v42 = vpop.f32.mrf.mxu0  ;;  %v3632_v43 = vpop.f32.mrf.mxu1 }
 0x170   : > { %v3633_v62 = vadd.f32 %v3632_v43, %v3631_v52  ;;  %v5038_v16 = vadd.f32 %v3934_v57, %v1939_v27 }
 0x171   : > { %v5036_v48 = vpop.f32.mrf.mxu0  ;;  %v3634_v60 = vpop.f32.mrf.mxu1 }
 0x172   : > { %v1944_v36 = vadd.f32 %v3633_v62, %v4934_v50 }
 0x173   : > { %v5041_v33 = vpop.f32.mrf.mxu0  ;;  %v3635_v7 = vpop.f32.mrf.mxu1 }
 0x174   : > { %v3636_v32 = vadd.f32 %v3635_v7, %v3634_v60  ;;  %v5045_v12 = vadd.f32 %v2104_v25, %v1944_v36 }
 0x175   : > { %v5043_v45 = vpop.f32.mrf.mxu0  ;;  %v3637_v58 = vpop.f32.mrf.mxu1 }
 0x176   : > { %v1947_v24 = vadd.f32 %v3636_v32, %v4938_v20 }
 0x177   : > { %v5048_v10 = vpop.f32.mrf.mxu0  ;;  %v3638_v44 = vpop.f32.mrf.mxu1 }
 0x178   : > { %v3639_v13 = vadd.f32 %v3638_v44, %v3637_v58  ;;  %v5052_v21 = vadd.f32 %v2107_v53, %v1947_v24 }
 0x179   : > { %v5050_v57 = vpop.f32.mrf.mxu0  ;;  %v3640_v50 = vpop.f32.mrf.mxu1 }
 0x17a   : > { %v1952_v63 = vadd.f32 %v3639_v13, %v4931_v56 }
 0x17b   : > { %v5055_v40 = vpop.f32.mrf.mxu0  ;;  %v3641_v19 = vpop.f32.mrf.mxu1 }
 0x17c   : > { %v3642_v52 = vadd.f32 %v3641_v19, %v3640_v50  ;;  %v5059_v27 = vadd.f32 %v3937_v23, %v1952_v63 }
 0x17d   : > { %v5057_v25 = vpop.f32.mrf.mxu0  ;;  %v3643_v20 = vpop.f32.mrf.mxu1 }
 0x17e   : > { %v1955_v43 = vadd.f32 %v3642_v52, %v4936_v26 }
 0x17f   : > { %v5062_v62 = vpop.f32.mrf.mxu0  ;;  %v3644_v60 = vpop.f32.mrf.mxu1 }
 0x180   : > { %v3645_v36 = vadd.f32 %v3644_v60, %v3643_v20  ;;  %v5066_v7 = vadd.f32 %v3938_v1, %v1955_v43 }
 0x181   : > { %v5064_v53 = vpop.f32.mrf.mxu0  ;;  %v3646_v56 = vpop.f32.mrf.mxu1 }
 0x182   : > { %v1960_v32 = vadd.f32 %v3645_v36, %v4944_v11 }
 0x183   : > { %v5069_v58 = vpop.f32.mrf.mxu0  ;;  %v3647_v24 = vpop.f32.mrf.mxu1 }
 0x184   : > { %v3648_v44 = vadd.f32 %v3647_v24, %v3646_v56  ;;  %v5073_v13 = vadd.f32 %v2120_v38, %v1960_v32 }
 0x185   : > { %v5071_v23 = vpop.f32.mrf.mxu0  ;;  %v3649_v26 = vpop.f32.mrf.mxu1 }
 0x186   : > { %5435 = vst [vmem:[#allocation3_spill] sm:$0xff] %v5071_v23  ;;  %v1963_v50 = vadd.f32 %v3648_v44, %v4948_v37 }
 0x187   : > { %v5076_v63 = vpop.f32.mrf.mxu0  ;;  %v3650_v19 = vpop.f32.mrf.mxu1 }
 0x188   : > { %v3651_v52 = vadd.f32 %v3650_v19, %v3649_v26  ;;  %v5080_v20 = vadd.f32 %v2123_v55, %v1963_v50 }
 0x189   : > { %v5078_v1 = vpop.f32.mrf.mxu0  ;;  %v3652_v11 = vpop.f32.mrf.mxu1 }
 0x18a   : > { %5436 = vst [vmem:[#allocation4_spill] sm:$0xff] %v5078_v1  ;;  %v1968_v43 = vadd.f32 %v3651_v52, %v4946_v49 }
 0x18b   : > { %v5083_v60 = vpop.f32.mrf.mxu0  ;;  %v3653_v36 = vpop.f32.mrf.mxu1 }
 0x18c   : > { %v3654_v56 = vadd.f32 %v3653_v36, %v3652_v11  ;;  %v5086_v32 = vadd.f32 %v5019_v41, %v1968_v43 }
 0x18d   : > { %v3743_v38 = vpop.f32.mrf.mxu0  ;;  %v3655_v37 = vpop.f32.mrf.mxu1 }
 0x18e   : > { %v1971_v24 = vadd.f32 %v3654_v56, %v4951_v30 }
 0x18f   : > { %v3744_v44 = vpop.f32.mrf.mxu0  ;;  %v3656_v26 = vpop.f32.mrf.mxu1 }
 0x190   : > { %v5089_v19 = vadd.f32 %v3744_v44, %v3743_v38  ;;  %v3657_v55 = vadd.f32 %v3656_v26, %v3655_v37  ;;  %v5094_v49 = vadd.f32 %v5024_v3, %v1971_v24 }
 0x191   : > { %v5091_v50 = vpop.f32.mrf.mxu0  ;;  %v3658_v52 = vpop.f32.mrf.mxu1 }
 0x192   : > { %v1976_v11 = vadd.f32 %v3657_v55, %v4956_v29 }
 0x193   : > { %v5097_v36 = vpop.f32.mrf.mxu0  ;;  %v3659_v41 = vpop.f32.mrf.mxu1 }
 0x194   : > { %v3660_v43 = vadd.f32 %v3659_v41, %v3658_v52  ;;  %v5102_v30 = vadd.f32 %v5034_v42, %v1976_v11 }
 0x195   : > { %v5099_v1 = vpop.f32.mrf.mxu0  ;;  %v3661_v56 = vpop.f32.mrf.mxu1 }
 0x196   : > { %v1979_v38 = vadd.f32 %v3660_v43, %v4959_v18 }
 0x197   : > { %v5105_v37 = vpop.f32.mrf.mxu0  ;;  %v3662_v44 = vpop.f32.mrf.mxu1 }
 0x198   : > { %v3663_v3 = vadd.f32 %v3662_v44, %v3661_v56  ;;  %v5110_v29 = vadd.f32 %v5041_v33, %v1979_v38 }
 0x199   : > { %v5107_v24 = vpop.f32.mrf.mxu0  ;;  %v3664_v26 = vpop.f32.mrf.mxu1 }
 0x19a   : > { %5437 = vst [vmem:[#allocation5_spill] sm:$0xff] %v5110_v29  ;;  %v1984_v55 = vadd.f32 %v3663_v3, %v4964_v28 }
 0x19b   : > { %v5113_v52 = vpop.f32.mrf.mxu0  ;;  %v3665_v41 = vpop.f32.mrf.mxu1 }
 0x19c   : > { %v3666_v42 = vadd.f32 %v3665_v41, %v3664_v26  ;;  %v5118_v18 = vadd.f32 %v5029_v22, %v1984_v55 }
 0x19d   : > { %v5115_v11 = vpop.f32.mrf.mxu0  ;;  %v3667_v43 = vpop.f32.mrf.mxu1 }
 0x19e   : > { %v1987_v56 = vadd.f32 %v3666_v42, %v4967_v31 }
 0x19f   : > { %v5121_v44 = vpop.f32.mrf.mxu0  ;;  %v3668_v8 = vpop.f32.mrf.mxu1 }
 0x1a0   : > { %v3669_v33 = vadd.f32 %v3668_v8, %v3667_v43  ;;  %v5126_v28 = vadd.f32 %v5036_v48, %v1987_v56 }
 0x1a1   : > { %v5123_v38 = vpop.f32.mrf.mxu0  ;;  %v3670_v3 = vpop.f32.mrf.mxu1 }
 0x1a2   : > { %5438 = vst [vmem:[#allocation6_spill] sm:$0xff] %v5126_v28  ;;  %v1992_v26 = vadd.f32 %v3669_v33, %v4978_v14 }
 0x1a3   : > { %v5129_v41 = vpop.f32.mrf.mxu0  ;;  %v3671_v23 = vpop.f32.mrf.mxu1 }
 0x1a4   : > { %v3672_v22 = vadd.f32 %v3671_v23, %v3670_v3  ;;  %v5134_v31 = vadd.f32 %v5048_v10, %v1992_v26 }
 0x1a5   : > { %v5131_v55 = vpop.f32.mrf.mxu0  ;;  %v3673_v42 = vpop.f32.mrf.mxu1 }
 0x1a6   : > { %5439 = vst [vmem:[#allocation7_spill] sm:$0xff] %v5134_v31  ;;  %v1995_v8 = vadd.f32 %v3672_v22, %v4987_v51 }
 0x1a7   : > { %v5137_v43 = vpop.f32.mrf.mxu0  ;;  %v3674_v29 = vpop.f32.mrf.mxu1 }
 0x1a8   : > { %v3675_v48 = vadd.f32 %v3674_v29, %v3673_v42  ;;  %v5142_v14 = vadd.f32 %v5055_v40, %v1995_v8 }
 0x1a9   : > { %v5139_v56 = vpop.f32.mrf.mxu0  ;;  %v3676_v33 = vpop.f32.mrf.mxu1 }
 0x1aa   : > { %5440 = vst [vmem:[#allocation8_spill] sm:$0xff] %v5142_v14  ;;  %v2000_v23 = vadd.f32 %v3675_v48, %v4996_v61 }
 0x1ab   : > { %v5145_v3 = vpop.f32.mrf.mxu0  ;;  %v3677_v28 = vpop.f32.mrf.mxu1 }
 0x1ac   : > { %v3678_v10 = vadd.f32 %v3677_v28, %v3676_v33  ;;  %v5150_v51 = vadd.f32 %v5043_v45, %v2000_v23 }
 0x1ad   : > { %v5147_v26 = vpop.f32.mrf.mxu0  ;;  %v3679_v22 = vpop.f32.mrf.mxu1 }
 0x1ae   : > { %5441 = vst [vmem:[#allocation9_spill] sm:$0xff] %v5150_v51  ;;  %v2003_v29 = vadd.f32 %v3678_v10, %v5004_v6 }
 0x1af   : > { %v5153_v42 = vpop.f32.mrf.mxu0  ;;  %v3680_v31 = vpop.f32.mrf.mxu1 }
 0x1b0   : > { %v3681_v40 = vadd.f32 %v3680_v31, %v3679_v22  ;;  %v5158_v61 = vadd.f32 %v5050_v57, %v2003_v29 }
 0x1b1   : > { %v5155_v8 = vpop.f32.mrf.mxu0  ;;  %v3682_v48 = vpop.f32.mrf.mxu1 }
 0x1b2   : > { %5442 = vst [vmem:[#allocation10_spill] sm:$0xff] %v5158_v61  ;;  %v2008_v28 = vadd.f32 %v3681_v40, %v4976_v5 }
 0x1b3   : > { %v5161_v33 = vpop.f32.mrf.mxu0  ;;  %v3683_v14 = vpop.f32.mrf.mxu1 }
 0x1b4   : > { %v3684_v45 = vadd.f32 %v3683_v14, %v3682_v48  ;;  %v5166_v6 = vadd.f32 %v5062_v62, %v2008_v28 }
 0x1b5   : > { %v5163_v23 = vpop.f32.mrf.mxu0  ;;  %v3685_v10 = vpop.f32.mrf.mxu1 }
 0x1b6   : > { %5443 = vst [vmem:[#allocation11_spill] sm:$0xff] %v5166_v6  ;;  %v2011_v31 = vadd.f32 %v3684_v45, %v4984_v0 }
 0x1b7   : > { %v5169_v22 = vpop.f32.mrf.mxu0  ;;  %v3686_v51 = vpop.f32.mrf.mxu1 }
 0x1b8   : > { %v3687_v57 = vadd.f32 %v3686_v51, %v3685_v10  ;;  %v5174_v5 = vadd.f32 %v5069_v58, %v2011_v31 }
 0x1b9   : > { %v5171_v29 = vpop.f32.mrf.mxu0  ;;  %v3688_v40 = vpop.f32.mrf.mxu1 }
 0x1ba   : > { %5444 = vst [vmem:[#allocation12_spill] sm:$0xff] %v5174_v5  ;;  %v2016_v14 = vadd.f32 %v3687_v57, %v4972_v9 }
 0x1bb   : > { %v5177_v48 = vpop.f32.mrf.mxu0  ;;  %v3689_v61 = vpop.f32.mrf.mxu1 }
 0x1bc   : > { %v3690_v62 = vadd.f32 %v3689_v61, %v3688_v40  ;;  %v5182_v0 = vadd.f32 %v5057_v25, %v2016_v14 }
 0x1bd   : > { %v5179_v28 = vpop.f32.mrf.mxu0  ;;  %v3691_v45 = vpop.f32.mrf.mxu1 }
 0x1be   : > { %5445 = vst [vmem:[#allocation13_spill] sm:$0xff] %v5182_v0  ;;  %v2019_v51 = vadd.f32 %v3690_v62, %v4981_v2 }
 0x1bf   : > { %v5185_v10 = vpop.f32.mrf.mxu0  ;;  %v3692_v6 = vpop.f32.mrf.mxu1 }
 0x1c0   : > { %v3693_v58 = vadd.f32 %v3692_v6, %v3691_v45  ;;  %v5190_v9 = vadd.f32 %v5064_v53, %v2019_v51 }
 0x1c1   : > { %v5187_v31 = vpop.f32.mrf.mxu0  ;;  %v3694_v57 = vpop.f32.mrf.mxu1 }
 0x1c2   : > { %5446 = vst [vmem:[#allocation14_spill] sm:$0xff] %v5190_v9  ;;  %v2024_v61 = vadd.f32 %v3693_v58, %v4994_v34 }
 0x1c3   : > { %v5193_v40 = vpop.f32.mrf.mxu0  ;;  %v3695_v5 = vpop.f32.mrf.mxu1 }
 0x1c4   : > { %v3696_v25 = vadd.f32 %v3695_v5, %v3694_v57  ;;  %v5198_v2 = vadd.f32 %v5076_v63, %v2024_v61 }
 0x1c5   : > { %v5195_v14 = vpop.f32.mrf.mxu0  ;;  %v3697_v62 = vpop.f32.mrf.mxu1 }
 0x1c6   : > { %5447 = vst [vmem:[#allocation15_spill] sm:$0xff] %v5198_v2  ;;  %v2027_v6 = vadd.f32 %v3696_v25, %v5002_v35  ;;  %v3751_v35 = vadd.f32 %v5105_v37, %v5099_v1  ;;  %v3748_v2 = vadd.f32 %v5097_v36, %v5091_v50 }
 0x1c7   : > { %v5201_v45 = vpop.f32.mrf.mxu0  ;;  %v3698_v0 = vpop.f32.mrf.mxu1 }
 0x1c8   : > { %v3699_v53 = vadd.f32 %v3698_v0, %v3697_v62  ;;  %v5206_v34 = vadd.f32 %v5083_v60, %v2027_v6  ;;  %v3754_v6 = vadd.f32 %v5113_v52, %v5107_v24  ;;  %v5237_v24 = vld [vmem:[%s5422_s4] ss:$0 sm:$0xff] }
 0x1c9   : > { %v5203_v51 = vpop.f32.mrf.mxu0  ;;  %v5208_v58 = vpop.f32.mrf.mxu1 }
 0x1ca   : > { %5448 = vst [vmem:[#allocation16_spill] sm:$0xff] %v5206_v34  ;;  %5449 = vst [vmem:[#allocation17_spill] sm:$0xff] %v5208_v58  ;;  %v5211_v5 = vadd.f32 %v3699_v53, %v4991_v54 }
 0x1cb   : > { %v5213_v57 = vpop.f32.mrf.mxu0  ;;  %v5215_v63 = vpop.f32.mrf.mxu1 }
 0x1cc   : > { %5450 = vst [vmem:[#allocation18_spill] sm:$0xff] %v5211_v5  ;;  %5451 = vst [vmem:[#allocation19_spill] sm:$0xff] %v5215_v63 }
 0x1cd   : > { %v5219_v61 = vpop.f32.mrf.mxu0  ;;  %v3977_v0 = vpop.f32.mrf.mxu1 }
 0x1ce   : > { %v2547_v25 = vadd.f32 %v3977_v0, %v3751_v35 }
 0x1cf   : > { %v5221_v62 = vpop.f32.mrf.mxu0  ;;  %v2538_v60 = vpop.f32.mrf.mxu1 }
 0x1d0   : > { %v2539_v54 = vadd.f32 %v5089_v19, %v2538_v60  ;;  %v2667_v1 = vadd.f32 %v2547_v25, %v5013_v15  ;;  %v3763_v15 = vadd.f32 %v5137_v43, %v5131_v55 }
 0x1d1   : > { %v5226_v53 = vpop.f32.mrf.mxu0  ;;  %v3978_v34 = vpop.f32.mrf.mxu1 }
 0x1d2   : > { %v2665_v37 = vadd.f32 %v2539_v54, %v5007_v39  ;;  %v2550_v35 = vadd.f32 %v3978_v34, %v3754_v6  ;;  %v2706_v39 = vadd.f32 %v5237_v24, %v2667_v1 }
 0x1d3   : > { %v5232_v0 = vpop.f32.mrf.mxu0  ;;  %v2541_v19 = vpop.f32.mrf.mxu1 }
 0x1d4   : > { %v2668_v52 = vadd.f32 %v2550_v35, %v5016_v59  ;;  %v2542_v60 = vadd.f32 %v3748_v2, %v2541_v19  ;;  %v2704_v36 = vadd.f32 %v5237_v24, %v2665_v37  ;;  %v3757_v59 = vadd.f32 %v5121_v44, %v5115_v11 }
 0x1d5   : > { %v5240_v9 = vpop.f32.mrf.mxu0  ;;  %v3981_v50 = vpop.f32.mrf.mxu1  ;;  %v3766_v11 = vadd.f32 %v5145_v3, %v5139_v56 }
 0x1d6   : > { %v2707_v34 = vadd.f32 %v5237_v24, %v2668_v52  ;;  %v2666_v25 = vadd.f32 %v2542_v60, %v5010_v47  ;;  %v2563_v55 = vadd.f32 %v3981_v50, %v3763_v15  ;;  %v3760_v47 = vadd.f32 %v5129_v41, %v5123_v38 }
 0x1d7   : > { %v5248_v6 = vpop.f32.mrf.mxu0  ;;  %v2554_v43 = vpop.f32.mrf.mxu1  ;;  %v2773_v35 = vmul.f32 %v2704_v36, %v2704_v36  ;;  %v2775_v38 = vmul.f32 %v2706_v39, %v2706_v39 }
 0x1d8   : > { %v3368_v2 = vpack.c.bf16 %v2707_v34, %v2706_v39  ;;  %v2705_v54 = vadd.f32 %v5237_v24, %v2666_v25  ;;  %v2555_v44 = vadd.f32 %v3757_v59, %v2554_v43  ;;  %v2671_v50 = vadd.f32 %v2563_v55, %v5031_v46 }
 0x1d9   : > { %v5260_v1 = vpop.f32.mrf.mxu0  ;;  %v3982_v37 = vpop.f32.mrf.mxu1  ;;  %v3775_v59 = vadd.f32 %v5169_v22, %v5163_v23  ;;  %v2776_v46 = vmul.f32 %v2707_v34, %v2707_v34 }
 0x1da   : > { %3440 = vst [vmem:[%s5257_s29 + $0x8] sm:$0xff] %v3368_v2   ;;  %v2736_v19 = vadd.f32 %v2705_v54, %v2704_v36  ;;  %v2774_v52 = vmul.f32 %v2705_v54, %v2705_v54  ;;  %v3363_v60 = vpack.c.bf16 %v2705_v54, %v2704_v36  ;;  %v2669_v25 = vadd.f32 %v2555_v44, %v5021_v4 }
 0x1db   : > { %v5267_v15 = vpop.f32.mrf.mxu0  ;;  %v2566_v63 = vadd.f32 %v3982_v37, %v3766_v11  ;;  %v2557_v58 = vpop.f32.mrf.mxu1 }
 0x1dc   : > { %v2737_v41 = vadd.f32 %v2736_v19, %v2706_v39  ;;  %v2805_v5 = vadd.f32 %v2774_v52, %v2773_v35  ;;  %3364 = vst [vmem:[%s5257_s29] sm:$0xff] %v3363_v60   ;;  %v2558_v56 = vadd.f32 %v3760_v47, %v2557_v58  ;;  %v2708_v36 = vadd.f32 %v5237_v24, %v2669_v25 }
 0x1dd   : > { %v5272_v3 = vpop.f32.mrf.mxu0  ;;  %v2672_v43 = vadd.f32 %v2566_v63, %v5038_v16  ;;  %v3985_v2 = vpop.f32.mrf.mxu1  ;;  %v3769_v58 = vadd.f32 %v5153_v42, %v5147_v26  ;;  %v2710_v39 = vadd.f32 %v5237_v24, %v2671_v50  ;;  %v3778_v26 = vadd.f32 %v5177_v48, %v5171_v29 }
 0x1de   : > { %v2806_v55 = vadd.f32 %v2805_v5, %v2775_v38  ;;  %v2738_v4 = vadd.f32 %v2737_v41, %v2707_v34  ;;  %v2670_v54 = vadd.f32 %v2558_v56, %v5026_v17  ;;  %v2579_v23 = vadd.f32 %v3985_v2, %v3775_v59 }
 0x1df   : > { %v5279_v11 = vpop.f32.mrf.mxu0  ;;  %v2711_v47 = vadd.f32 %v5237_v24, %v2672_v43  ;;  %v2570_v22 = vpop.f32.mrf.mxu1  ;;  %v2777_v16 = vmul.f32 %v2708_v36, %v2708_v36  ;;  %v3772_v17 = vadd.f32 %v5161_v33, %v5155_v8  ;;  %v2779_v33 = vmul.f32 %v2710_v39, %v2710_v39 }
 0x1e0   : > { %v2739_v44 = vadd.f32 %v2738_v4, %v2708_v36  ;;  %v2807_v63 = vadd.f32 %v2806_v55, %v2776_v46  ;;  %v2709_v5 = vadd.f32 %v5237_v24, %v2670_v54  ;;  %v2571_v37 = vadd.f32 %v3769_v58, %v2570_v22 }
 0x1e1   : > { %v5286_v34 = vpop.f32.mrf.mxu0  ;;  %v3378_v42 = vpack.c.bf16 %v2711_v47, %v2710_v39  ;;  %v3986_v35 = vpop.f32.mrf.mxu1  ;;  %v2675_v38 = vadd.f32 %v2579_v23, %v5059_v27  ;;  %v3787_v2 = vadd.f32 %v5201_v45, %v5195_v14  ;;  %v2780_v27 = vmul.f32 %v2711_v47, %v2711_v47 }
 0x1e2   : > { %v2808_v19 = vadd.f32 %v2807_v63, %v2777_v16  ;;  %v2740_v52 = vadd.f32 %v2739_v44, %v2709_v5  ;;  %v2778_v60 = vmul.f32 %v2709_v5, %v2709_v5  ;;  %v3373_v50 = vpack.c.bf16 %v2709_v5, %v2708_v36 }
 0x1e3   : > { %v5292_v25 = vpop.f32.mrf.mxu0  ;;  %3442 = vst [vmem:[%s5257_s29 + $0x18] sm:$0xff] %v3378_v42   ;;  %v2673_v41 = vadd.f32 %v2571_v37, %v5045_v12  ;;  %v2582_v56 = vadd.f32 %v3986_v35, %v3778_v26  ;;  %v2573_v8 = vpop.f32.mrf.mxu1  ;;  %v2714_v23 = vadd.f32 %v5237_v24, %v2675_v38 }
 0x1e4   : > { %v2741_v59 = vadd.f32 %v2740_v52, %v2710_v39  ;;  %v2809_v29 = vadd.f32 %v2808_v19, %v2778_v60  ;;  %3441 = vst [vmem:[%s5257_s29 + $0x10] sm:$0xff] %v3373_v50   ;;  %v2574_v48 = vadd.f32 %v3772_v17, %v2573_v8  ;;  %v3781_v39 = vadd.f32 %v5185_v10, %v5179_v28 }
 0x1e5   : > { %v5298_v43 = vpop.f32.mrf.mxu0  ;;  %v2712_v36 = vadd.f32 %v5237_v24, %v2673_v41  ;;  %v2676_v46 = vadd.f32 %v2582_v56, %v5066_v7  ;;  %v3989_v55 = vpop.f32.mrf.mxu1  ;;  %v3790_v28 = vadd.f32 %v5213_v57, %v5203_v51  ;;  %v3799_v56 = vadd.f32 %v5248_v6, %v5240_v9 }
 0x1e6   : > { %v2810_v4 = vadd.f32 %v2809_v29, %v2779_v33  ;;  %v2742_v12 = vadd.f32 %v2741_v59, %v2711_v47  ;;  %v2674_v54 = vadd.f32 %v2574_v48, %v5052_v21  ;;  %v2595_v14 = vadd.f32 %v3989_v55, %v3787_v2 }
 0x1e7   : > { %v5305_v58 = vpop.f32.mrf.mxu0  ;;  %v2715_v22 = vadd.f32 %v5237_v24, %v2676_v46  ;;  %v2586_v45 = vpop.f32.mrf.mxu1  ;;  %v2781_v7 = vmul.f32 %v2712_v36, %v2712_v36  ;;  %v3784_v21 = vadd.f32 %v5193_v40, %v5187_v31  ;;  %v2783_v40 = vmul.f32 %v2714_v23, %v2714_v23 }
 0x1e8   : > { %v2743_v44 = vadd.f32 %v2742_v12, %v2712_v36  ;;  %v2811_v16 = vadd.f32 %v2810_v4, %v2780_v27  ;;  %v2713_v63 = vadd.f32 %v5237_v24, %v2674_v54  ;;  %v2587_v5 = vadd.f32 %v3781_v39, %v2586_v45 }
 0x1e9   : > { %v5312_v47 = vpop.f32.mrf.mxu0  ;;  %v3388_v10 = vpack.c.bf16 %v2715_v22, %v2714_v23  ;;  %v3990_v17 = vpop.f32.mrf.mxu1  ;;  %v2679_v52 = vadd.f32 %v2595_v14, %v5086_v32  ;;  %v2784_v32 = vmul.f32 %v2715_v22, %v2715_v22 }
 0x1ea   : > { %v2812_v26 = vadd.f32 %v2811_v16, %v2781_v7  ;;  %v2744_v42 = vadd.f32 %v2743_v44, %v2713_v63  ;;  %v2782_v37 = vmul.f32 %v2713_v63, %v2713_v63  ;;  %v3383_v35 = vpack.c.bf16 %v2713_v63, %v2712_v36 }
 0x1eb   : > { %v5318_v19 = vpop.f32.mrf.mxu0  ;;  %3444 = vst [vmem:[%s5257_s29 + $0x28] sm:$0xff] %v3388_v10   ;;  %v2677_v60 = vadd.f32 %v2587_v5, %v5073_v13  ;;  %v2598_v50 = vadd.f32 %v3990_v17, %v3790_v28  ;;  %v2589_v31 = vpop.f32.mrf.mxu1  ;;  %v3793_v36 = vadd.f32 %v5221_v62, %v5219_v61  ;;  %v2718_v46 = vadd.f32 %v5237_v24, %v2679_v52 }
 0x1ec   : > { %v2745_v38 = vadd.f32 %v2744_v42, %v2714_v23  ;;  %v2813_v51 = vadd.f32 %v2812_v26, %v2782_v37  ;;  %3443 = vst [vmem:[%s5257_s29 + $0x20] sm:$0xff] %v3383_v35   ;;  %v2590_v57 = vadd.f32 %v3784_v21, %v2589_v31  ;;  %v3802_v61 = vadd.f32 %v5267_v15, %v5260_v1  ;;  %v5452_v26 = vld [vmem:[#allocation6_spill] sm:$0xff] }
 0x1ed   : > { %v5324_v41 = vpop.f32.mrf.mxu0  ;;  %v2716_v8 = vadd.f32 %v5237_v24, %v2677_v60  ;;  %v2680_v33 = vadd.f32 %v2598_v50, %v5094_v49  ;;  %v3993_v59 = vpop.f32.mrf.mxu1  ;;  %v3811_v5 = vadd.f32 %v5305_v58, %v5298_v43  ;;  %v3805_v31 = vadd.f32 %v5279_v11, %v5272_v3 }
 0x1ee   : > { %v2814_v29 = vadd.f32 %v2813_v51, %v2783_v40  ;;  %v2746_v13 = vadd.f32 %v2745_v38, %v2715_v22  ;;  %v2678_v48 = vadd.f32 %v2590_v57, %v5080_v20  ;;  %v2611_v9 = vadd.f32 %v3993_v59, %v3799_v56 }
 0x1ef   : > { %v5331_v2 = vpop.f32.mrf.mxu0  ;;  %v2719_v55 = vadd.f32 %v5237_v24, %v2680_v33  ;;  %v2602_v6 = vpop.f32.mrf.mxu1  ;;  %v2785_v49 = vmul.f32 %v2716_v8, %v2716_v8  ;;  %v3796_v20 = vadd.f32 %v5232_v0, %v5226_v53  ;;  %v2787_v0 = vmul.f32 %v2718_v46, %v2718_v46 }
 0x1f0   : > { %v2747_v27 = vadd.f32 %v2746_v13, %v2716_v8  ;;  %v2815_v4 = vadd.f32 %v2814_v29, %v2784_v32  ;;  %v2717_v12 = vadd.f32 %v5237_v24, %v2678_v48  ;;  %v2603_v39 = vadd.f32 %v3793_v36, %v2602_v6 }
 0x1f1   : > { %v5338_v54 = vpop.f32.mrf.mxu0  ;;  %v3398_v62 = vpack.c.bf16 %v2719_v55, %v2718_v46  ;;  %v3994_v23 = vpop.f32.mrf.mxu1  ;;  %v2683_v16 = vadd.f32 %v2611_v9, %v5118_v18  ;;  %v2788_v35 = vmul.f32 %v2719_v55, %v2719_v55  ;;  %v3808_v59 = vadd.f32 %v5292_v25, %v5286_v34  ;;  %v5454_v9 = vld [vmem:[#allocation9_spill] sm:$0xff] }
 0x1f2   : > { %v2816_v22 = vadd.f32 %v2815_v4, %v2785_v49  ;;  %v2748_v14 = vadd.f32 %v2747_v27, %v2717_v12  ;;  %v2786_v45 = vmul.f32 %v2717_v12, %v2717_v12  ;;  %v3393_v44 = vpack.c.bf16 %v2717_v12, %v2716_v8  ;;  %v5455_v27 = vld [vmem:[#allocation7_spill] sm:$0xff] }
 0x1f3   : > { %v5344_v7 = vpop.f32.mrf.mxu0  ;;  %3446 = vst [vmem:[%s5257_s29 + $0x38] sm:$0xff] %v3398_v62   ;;  %v2681_v63 = vadd.f32 %v2603_v39, %v5102_v30  ;;  %v2614_v21 = vadd.f32 %v3994_v23, %v3802_v61  ;;  %v2605_v53 = vpop.f32.mrf.mxu1  ;;  %v5453_v30 = vld [vmem:[#allocation5_spill] sm:$0xff]  ;;  %v2722_v40 = vadd.f32 %v5237_v24, %v2683_v16  ;;  %v3814_v32 = vadd.f32 %v5318_v19, %v5312_v47  ;;  %v5456_v39 = vld [vmem:[#allocation10_spill] sm:$0xff]  ;;  %v5457_v16 = vld [vmem:[#allocation8_spill] sm:$0xff] }
 0x1f4   : > { %v2749_v28 = vadd.f32 %v2748_v14, %v2718_v46  ;;  %v2817_v1 = vadd.f32 %v2816_v22, %v2786_v45  ;;  %3445 = vst [vmem:[%s5257_s29 + $0x30] sm:$0xff] %v3393_v44   ;;  %v2606_v15 = vadd.f32 %v3796_v20, %v2605_v53  ;;  %v3817_v53 = vadd.f32 %v5331_v2, %v5324_v41 }
 0x1f5   : > { %v3821_v10 = vpop.f32.mrf.mxu0  ;;  %v2720_v17 = vadd.f32 %v5237_v24, %v2681_v63  ;;  %v2684_v42 = vadd.f32 %v2614_v21, %v5452_v26  ;;  %v3997_v37 = vpop.f32.mrf.mxu1  ;;  %v2791_v34 = vmul.f32 %v2722_v40, %v2722_v40 }
 0x1f6   : > { %v2818_v18 = vadd.f32 %v2817_v1, %v2787_v0  ;;  %v2750_v52 = vadd.f32 %v2749_v28, %v2719_v55  ;;  %v2682_v60 = vadd.f32 %v2606_v15, %v5453_v30  ;;  %v2627_v51 = vadd.f32 %v3997_v37, %v3811_v5 }
 0x1f7   : > { %v3822_v50 = vpop.f32.mrf.mxu0  ;;  %v2723_v38 = vadd.f32 %v5237_v24, %v2684_v42  ;;  %v2618_v43 = vpop.f32.mrf.mxu1  ;;  %v2789_v57 = vmul.f32 %v2720_v17, %v2720_v17  ;;  %v3820_v37 = vadd.f32 %v5344_v7, %v5338_v54 }
 0x1f8   : > { %v2751_v58 = vadd.f32 %v2750_v52, %v2720_v17  ;;  %v2819_v56 = vadd.f32 %v2818_v18, %v2788_v35  ;;  %v2721_v8 = vadd.f32 %v5237_v24, %v2682_v60  ;;  %v2619_v11 = vadd.f32 %v3805_v31, %v2618_v43  ;;  %v5460_v43 = vld [vmem:[#allocation13_spill] sm:$0xff] }
 0x1f9   : > { %v3824_v33 = vpop.f32.mrf.mxu0  ;;  %v3408_v3 = vpack.c.bf16 %v2723_v38, %v2722_v40  ;;  %v3998_v29 = vpop.f32.mrf.mxu1  ;;  %v2687_v6 = vadd.f32 %v2627_v51, %v5454_v9  ;;  %v3823_v61 = vadd.f32 %v3822_v50, %v3821_v10  ;;  %v2792_v14 = vmul.f32 %v2723_v38, %v2723_v38 }
 0x1fa   : > { %v2820_v13 = vadd.f32 %v2819_v56, %v2789_v57  ;;  %v2752_v48 = vadd.f32 %v2751_v58, %v2721_v8  ;;  %v2790_v36 = vmul.f32 %v2721_v8, %v2721_v8  ;;  %v3403_v46 = vpack.c.bf16 %v2721_v8, %v2720_v17  ;;  %v5461_v57 = vld [vmem:[#allocation11_spill] sm:$0xff] }
 0x1fb   : > { %v3825_v55 = vpop.f32.mrf.mxu0  ;;  %3448 = vst [vmem:[%s5257_s29 + $0x48] sm:$0xff] %v3408_v3   ;;  %v2685_v49 = vadd.f32 %v2619_v11, %v5455_v27  ;;  %v2630_v4 = vadd.f32 %v3998_v29, %v3814_v32  ;;  %v2621_v12 = vpop.f32.mrf.mxu1  ;;  %v2726_v0 = vadd.f32 %v5237_v24, %v2687_v6  ;;  %v5462_v11 = vld [vmem:[#allocation17_spill] sm:$0xff]  ;;  %v5463_v29 = vld [vmem:[#allocation19_spill] sm:$0xff] }
 0x1fc   : > { %v2753_v25 = vadd.f32 %v2752_v48, %v2722_v40  ;;  %v2821_v20 = vadd.f32 %v2820_v13, %v2790_v36  ;;  %3447 = vst [vmem:[%s5257_s29 + $0x40] sm:$0xff] %v3403_v46   ;;  %v2622_v47 = vadd.f32 %v3808_v59, %v2621_v12  ;;  %v3826_v18 = vadd.f32 %v3825_v55, %v3824_v33  ;;  %v5458_v40 = vld [vmem:[#allocation18_spill] sm:$0xff] }
 0x1fd   : > { %v3827_v19 = vpop.f32.mrf.mxu0  ;;  %v2724_v62 = vadd.f32 %v5237_v24, %v2685_v49  ;;  %v2688_v23 = vadd.f32 %v2630_v4, %v5456_v39  ;;  %v4001_v22 = vpop.f32.mrf.mxu1  ;;  %v2795_v7 = vmul.f32 %v2726_v0, %v2726_v0  ;;  %v3702_v13 = vadd.f32 %v5463_v29, %v5462_v11  ;;  %v5464_v46 = vld [vmem:[#allocation14_spill] sm:$0xff]  ;;  %v5465_v4 = vld [vmem:[#allocation12_spill] sm:$0xff] }
 0x1fe   : > { %v2822_v45 = vadd.f32 %v2821_v20, %v2791_v34  ;;  %v2754_v44 = vadd.f32 %v2753_v25, %v2723_v38  ;;  %v2686_v63 = vadd.f32 %v2622_v47, %v5457_v16  ;;  %v2643_v1 = vadd.f32 %v4001_v22, %v3823_v61  ;;  %v5459_v38 = vld [vmem:[#allocation3_spill] sm:$0xff] }
 0x1ff   : > { %v3828_v21 = vpop.f32.mrf.mxu0  ;;  %v2727_v28 = vadd.f32 %v5237_v24, %v2688_v23  ;;  %v2634_v15 = vpop.f32.mrf.mxu1  ;;  %v2793_v5 = vmul.f32 %v2724_v62, %v2724_v62  ;;  %v2193_v51 = vadd.f32 %v5459_v38, %v5458_v40 }
 0x200   : > { %v2755_v10 = vadd.f32 %v2754_v44, %v2724_v62  ;;  %v2823_v17 = vadd.f32 %v2822_v45, %v2792_v14  ;;  %v2725_v26 = vadd.f32 %v5237_v24, %v2686_v63  ;;  %v2635_v52 = vadd.f32 %v3817_v53, %v2634_v15  ;;  %v5466_v45 = vld [vmem:[#allocation2_spill] sm:$0xff] }
 0x201   : > { %v3830_v42 = vpop.f32.mrf.mxu0  ;;  %v3418_v35 = vpack.c.bf16 %v2727_v28, %v2726_v0  ;;  %v4002_v41 = vpop.f32.mrf.mxu1  ;;  %v2691_v58 = vadd.f32 %v2643_v1, %v5460_v43  ;;  %v3829_v48 = vadd.f32 %v3828_v21, %v3827_v19  ;;  %v2796_v6 = vmul.f32 %v2727_v28, %v2727_v28  ;;  %v5469_v43 = vld [vmem:[#allocation16_spill] sm:$0xff] }
 0x202   : > { %v2824_v2 = vadd.f32 %v2823_v17, %v2793_v5  ;;  %v2756_v30 = vadd.f32 %v2755_v10, %v2725_v26  ;;  %v2794_v60 = vmul.f32 %v2725_v26, %v2725_v26  ;;  %v3413_v50 = vpack.c.bf16 %v2725_v26, %v2724_v62  ;;  %v5467_v17 = vld [vmem:[#allocation15_spill] sm:$0xff] }
 0x203   : > { %v3831_v31 = vpop.f32.mrf.mxu0  ;;  %3450 = vst [vmem:[%s5257_s29 + $0x58] sm:$0xff] %v3418_v35   ;;  %v2689_v56 = vadd.f32 %v2635_v52, %v5461_v57  ;;  %v2646_v8 = vadd.f32 %v4002_v41, %v3826_v18  ;;  %v2637_v54 = vpop.f32.mrf.mxu1  ;;  %v2730_v25 = vadd.f32 %v5237_v24, %v2691_v58  ;;  %v2035_v44 = vadd.f32 %v3702_v13, %v5466_v45 }
 0x204   : > { %v2757_v33 = vadd.f32 %v2756_v30, %v2726_v0  ;;  %v2825_v59 = vadd.f32 %v2824_v2, %v2794_v60  ;;  %3449 = vst [vmem:[%s5257_s29 + $0x50] sm:$0xff] %v3413_v50   ;;  %v2638_v32 = vadd.f32 %v3820_v37, %v2637_v54  ;;  %v3832_v63 = vadd.f32 %v3831_v31, %v3830_v42  ;;  %v5468_v42 = vld [vmem:[#allocation4_spill] sm:$0xff] }
 0x205   : > { %v3833_v3 = vpop.f32.mrf.mxu0  ;;  %v2728_v36 = vadd.f32 %v5237_v24, %v2689_v56  ;;  %v2692_v55 = vadd.f32 %v2646_v8, %v5464_v46  ;;  %v4005_v9 = vpop.f32.mrf.mxu1  ;;  %v2799_v18 = vmul.f32 %v2730_v25, %v2730_v25  ;;  %v2196_v30 = vadd.f32 %v5468_v42, %v2035_v44 }
 0x206   : > { %v2826_v27 = vadd.f32 %v2825_v59, %v2795_v7  ;;  %v2758_v49 = vadd.f32 %v2757_v33, %v2727_v28  ;;  %v2690_v12 = vadd.f32 %v2638_v32, %v5465_v4 }
 0x207   : > { %v3834_v34 = vpop.f32.mrf.mxu0  ;;  %v2797_v20 = vmul.f32 %v2728_v36, %v2728_v36  ;;  %v2731_v47 = vadd.f32 %v5237_v24, %v2692_v55  ;;  %v2650_v62 = vpop.f32.mrf.mxu1 }
 0x208   : > { %v3835_v61 = vadd.f32 %v3834_v34, %v3833_v3  ;;  %v2759_v19 = vadd.f32 %v2758_v49, %v2728_v36  ;;  %v2827_v39 = vadd.f32 %v2826_v27, %v2796_v6  ;;  %v2729_v23 = vadd.f32 %v5237_v24, %v2690_v12 }
 0x209   : > { %v2651_v22 = vadd.f32 %v3829_v48, %v2650_v62  ;;  %v3836_v14 = vpop.f32.mrf.mxu0  ;;  %v3428_v16 = vpack.c.bf16 %v2731_v47, %v2730_v25  ;;  %v4006_v53 = vpop.f32.mrf.mxu1  ;;  %v2800_v31 = vmul.f32 %v2731_v47, %v2731_v47 }
 0x20a   : > { %v2659_v21 = vadd.f32 %v4005_v9, %v3835_v61  ;;  %v2828_v0 = vadd.f32 %v2827_v39, %v2797_v20  ;;  %v2760_v28 = vadd.f32 %v2759_v19, %v2729_v23  ;;  %v2798_v1 = vmul.f32 %v2729_v23, %v2729_v23 }
 0x20b   : > { %v3423_v15 = vpack.c.bf16 %v2729_v23, %v2728_v36  ;;  %v3837_v10 = vpop.f32.mrf.mxu0  ;;  %3452 = vst [vmem:[%s5257_s29 + $0x68] sm:$0xff] %v3428_v16   ;;  %v2693_v26 = vadd.f32 %v2651_v22, %v5467_v17  ;;  %v2653_v35 = vpop.f32.mrf.mxu1 }
 0x20c   : > { %v2695_v5 = vadd.f32 %v2659_v21, %v2193_v51  ;;  %v3838_v37 = vadd.f32 %v3837_v10, %v3836_v14  ;;  %v2761_v52 = vadd.f32 %v2760_v28, %v2730_v25  ;;  %v2829_v41 = vadd.f32 %v2828_v0, %v2798_v1 }
 0x20d   : > { %3451 = vst [vmem:[%s5257_s29 + $0x60] sm:$0xff] %v3423_v15   ;;  %v2654_v2 = vadd.f32 %v3832_v63, %v2653_v35  ;;  %v2732_v60 = vadd.f32 %v5237_v24, %v2693_v26 }
 0x20e   : > { %v2662_v50 = vadd.f32 %v4006_v53, %v3838_v37  ;;  %v2830_v40 = vadd.f32 %v2829_v41, %v2799_v18  ;;  %v2762_v38 = vadd.f32 %v2761_v52, %v2731_v47  ;;  %v2734_v51 = vadd.f32 %v5237_v24, %v2695_v5 }
 0x20f   : > { %v2694_v58 = vadd.f32 %v2654_v2, %v5469_v43  ;;  %v2801_v8 = vmul.f32 %v2732_v60, %v2732_v60 }
 0x210   : > { %v2696_v57 = vadd.f32 %v2662_v50, %v2196_v30  ;;  %v2763_v56 = vadd.f32 %v2762_v38, %v2732_v60  ;;  %v2831_v54 = vadd.f32 %v2830_v40, %v2800_v31  ;;  %v2803_v13 = vmul.f32 %v2734_v51, %v2734_v51 }
 0x211   : > { %v2733_v7 = vadd.f32 %v5237_v24, %v2694_v58 }
 0x212   : > { %v2735_v33 = vadd.f32 %v5237_v24, %v2696_v57  ;;  %v2832_v59 = vadd.f32 %v2831_v54, %v2801_v8 }
 0x213   : > { %v2764_v32 = vadd.f32 %v2763_v56, %v2733_v7  ;;  %v2802_v3 = vmul.f32 %v2733_v7, %v2733_v7  ;;  %v3433_v11 = vpack.c.bf16 %v2733_v7, %v2732_v60 }
 0x214   : > { %v3438_v29 = vpack.c.bf16 %v2735_v33, %v2734_v51  ;;  %v2804_v46 = vmul.f32 %v2735_v33, %v2735_v33 }
 0x215   : > { %v2765_v48 = vadd.f32 %v2764_v32, %v2734_v51  ;;  %v2833_v36 = vadd.f32 %v2832_v59, %v2802_v3  ;;  %3453 = vst [vmem:[%s5257_s29 + $0x70] sm:$0xff] %v3433_v11  }
 0x216   : > { %3454 = vst [vmem:[%s5257_s29 + $0x78] sm:$0xff] %v3438_v29  }
 0x217   : > { %v2766_v55 = vadd.f32 %v2765_v48, %v2735_v33  ;;  %v2834_v9 = vadd.f32 %v2833_v36, %v2803_v13 }
 0x219   : > { %v2767_v6 = vrot.slane %v2766_v55, 4  ;;  %v2835_v27 = vadd.f32 %v2834_v9, %v2804_v46 }
 0x21b   : > { %v2768_v49 = vadd.f32 %v2767_v6, %v2766_v55  ;;  %v2836_v4 = vrot.slane %v2835_v27, 4 }
 0x21d   : > { %v2769_v12 = vrot.slane %v2768_v49, 2  ;;  %v2837_v24 = vadd.f32 %v2836_v4, %v2835_v27 }
 0x21f   : > { %v2770_v34 = vadd.f32 %v2769_v12, %v2768_v49  ;;  %v2838_v25 = vrot.slane %v2837_v24, 2 }
 0x221   : > { %v2771_v20 = vrot.slane %v2770_v34, 1  ;;  %v2839_v47 = vadd.f32 %v2838_v25, %v2837_v24 }
 0x223   : > { %v2840_v61 = vrot.slane %v2839_v47, 1  ;;  %v2772_v62 = vadd.f32 %v2771_v20, %v2770_v34 }
 0x225   : > { %v2841_v19 = vadd.f32 %v2840_v61, %v2839_v47 }
 0x227   : > { %v2843_v39 = vsel %vm740_vm0, %v2772_v62, %v2841_v19 }
 0x228   : > { %2844 = vst [vmem:[%s438_s8] sm:$0x3] %v2843_v39 }
 0x229 PF: > { %s17_s1 = sadd.s32 1, %s4158_s1   ;;  %s5470_s21 = smov %s4154_s22 }
 0x22a   : > { %p14_p5 = scmp.ge.s32.totalorder %s17_s1, 4   ;;  %s5471_s22 = smov %s5473_s2 }
 0x22c   :  { %16 = sbr.rel (!%p14_p5) target bundleno = 2 (0x2), region = 88 }

// kernel: unet_conv2_forward.4
= control target key start
LH: loop header
LB: loop body
LE: loop exit
PB: predicated region body
PF: predicated region fallthrough
CT: control target
= control target key end

     0   :  { %s4393_s26 = smov 0   ;;  %s4395_s2 = smov 0   ;;  %s5684_s0 = inlined_call_operand.vmem [shape: bf16[2,16,16,128], index: 0, kind: input, shape index: {}, may-alias: {0,1,2}]   ;;  %s5685_s1 = inlined_call_operand.vmem [shape: bf16[2,16,16,128], index: 1, kind: input, shape index: {}, may-alias: {0,1,2}]   ;;  %s5686_s2 = inlined_call_operand.vmem [shape: bf16[2,16,16,128], index: 2, kind: input, shape index: {}, may-alias: {0,1,2}]   ;;  %s5687_s3 = inlined_call_operand.vmem [shape: f32[1,128], index: 3, kind: input, shape index: {}]   ;;  %s5688_s4 = inlined_call_operand.vmem [shape: f32[1,128], index: 4, kind: input, shape index: {}]   ;;  %s5689_s5 = inlined_call_operand.vmem [shape: bf16[3,384,128], index: 5, kind: input, shape index: {}]   ;;  %s5690_s6 = inlined_call_operand.vmem [shape: f32[1,128], index: 6, kind: input, shape index: {}]   ;;  %s5691_s7 = inlined_call_operand.vmem [shape: bf16[2,16,16,128], index: 7, kind: output, shape index: {0}]   ;;  %s5692_s8 = inlined_call_operand.vmem [shape: f32[2,1,2,128], index: 8, kind: output, shape index: {1}]  }
   0x1   :  { %s4397_s27 = smov 0  }
   0x2 LB: > { %s31_s28 = sadd.s32 1, %s4341_s2  ;;  %p3326_p0 = scmp.ge.s32.totalorder %s4345_s27, 1  ;;  %s4345_s27 = sphi %s4397_s27, %s19_s27   ;;  %s4341_s2 = sphi %s4395_s2, %s5733_s2   ;;  %s4337_s26 = sphi %s4393_s26, %s5732_s26  }
   0x3   : > { %p33_p1 = scmp.ge.s32.totalorder %s31_s28, 2  ;;  %p353_p2 = scmp.lt.s32.totalorder %s4345_s27, 3 }
   0x5   : > { %s5735_s28 = smov (%p33_p1, %s31_s28), 0  ;;  %p354_p3 = pnand %p3326_p0, %p353_p2 }
   0x7   : > { %357 = sbr.rel (%p354_p3) target bundleno = 560 (0x230), region = 48 }
   0xc   : > { %v4249_v0 = vld [vmem:[%s5689_s5 + $0x138] sm:$0xff]   ;;  %v4251_v2 = vld [vmem:[%s5689_s5 + $0x130] sm:$0xff]   ;;  %p431_p4 = scmp.lt.s32.totalorder %s4337_s26, 1  ;;  %v4253_v4 = vld [vmem:[%s5689_s5 + $0x128] sm:$0xff]   ;;  %vm878_vm0 = vcmask 1040384   ;;  %vm1188_vm4 = vcmask 1046528  }
   0xd   : > { %v4250_v1 = vld [vmem:[%s5689_s5 + $0xf8] sm:$0xff]   ;;  %3656 = vmatprep.subr.bf16.mxu0 %v4249_v0  ;;  %4208 = vmatprep.subr.bf16.mxu1 %v4249_v0  ;;  %v4252_v3 = vld [vmem:[%s5689_s5 + $0xf0] sm:$0xff]   ;;  %v4254_v5 = vld [vmem:[%s5689_s5 + $0xe8] sm:$0xff]   ;;  %vm879_vm1 = vsmask.f32 256 }
   0xe   : > { %3657 = vmatpush3.bf16.msra.mxu0 %v4250_v1  ;;  %4216 = vmatpush3.bf16.msra.mxu1 %v4250_v1  ;;  %s5737_s26 = smov (!%p431_p4, %s4337_s26), 1  ;;  %v4255_v6 = vld [vmem:[%s5689_s5 + $0x120] sm:$0xff]   ;;  %v4257_v8 = vld [vmem:[%s5689_s5 + $0x118] sm:$0xff]   ;;  %v4259_v10 = vld [vmem:[%s5689_s5 + $0x110] sm:$0xff]   ;;  %vm917_vm2 = vsmask.f32 7424 }
   0xf   : > { %3658 = vmatprep.subr.bf16.mxu0 %v4251_v2  ;;  %4209 = vmatprep.subr.bf16.mxu1 %v4251_v2  ;;  %s3445_s21 = sshll.u32 %s5737_s26, 7  ;;  %v4256_v7 = vld [vmem:[%s5689_s5 + $0xe0] sm:$0xff]   ;;  %v4258_v9 = vld [vmem:[%s5689_s5 + $0xd8] sm:$0xff]   ;;  %v4260_v19 = vld [vmem:[%s5689_s5 + $0xd0] sm:$0xff]  }
  0x10   : > { %s4446_s30 = scalar_lea.vmem %s5684_s0, %s3445_s21  ;;  %v4458_v12 = vld [vmem:[%s5687_s3] ss:$0 sm:$0xff]  ;;  %v4261_v22 = vld [vmem:[%s5689_s5 + $0x108] sm:$0xff]   ;;  %v4503_v58 = vld [vmem:[%s5689_s5 + $0x178] sm:$0xff]   ;;  %s5528_s17 = scalar_lea.vmem %s5691_s7, %s3445_s21 }
  0x11   : > { %v3483_v11 = vld [vmem:[%s4446_s30] sm:$0xff]   ;;  %v3626_v27 = vld [vmem:[%s4446_s30 + $0x8] sm:$0xff]   ;;  %v3627_v46 = vld [vmem:[%s4446_s30 + $0x10] sm:$0xff]   ;;  %s3335_s21 = sshll.u32 %s5737_s26, 1 }
  0x12   : > { %3659 = vmatpush3.bf16.msra.mxu0 %v4252_v3  ;;  %4217 = vmatpush3.bf16.msra.mxu1 %v4252_v3  ;;  %v3484_v13 = vunpack.c.l.bf16 %v3483_v11  ;;  %v3485_v14 = vunpack.c.h.bf16 %v3483_v11  ;;  %v3637_v15 = vld [vmem:[%s4446_s30 + $0x60] sm:$0xff]   ;;  %v3638_v28 = vld [vmem:[%s4446_s30 + $0x68] sm:$0xff]   ;;  %v3488_v31 = vunpack.c.l.bf16 %v3626_v27  ;;  %v3489_v32 = vunpack.c.h.bf16 %v3626_v27  ;;  %v4508_v59 = vld [vmem:[%s5689_s5 + $0xb8] sm:$0xff]   ;;  %s492_s20 = scalar_lea.vmem %s5692_s8, %s3335_s21 }
  0x13   : > { %3660 = vmatprep.subr.bf16.mxu0 %v4253_v4  ;;  %4210 = vmatprep.subr.bf16.mxu1 %v4253_v4  ;;  %v4464_v16 = vld [vmem:[%s5688_s4] ss:$0 sm:$0xff]  ;;  %v3532_v17 = vunpack.c.l.bf16 %v3637_v15  ;;  %v3533_v18 = vunpack.c.h.bf16 %v3637_v15  ;;  %v4262_v33 = vld [vmem:[%s5689_s5 + $0xc8] sm:$0xff]   ;;  %v3536_v37 = vunpack.c.l.bf16 %v3638_v28  ;;  %v3537_v38 = vunpack.c.h.bf16 %v3638_v28  ;;  %vm4512_vm3 = vmand %vm878_vm0, %vm879_vm1 }
  0x14   : > { %v570_v20 = vmul.f32 %v3484_v13, %v4458_v12  ;;  %v571_v21 = vmul.f32 %v3485_v14, %v4458_v12  ;;  %v4263_v34 = vld [vmem:[%s5689_s5 + $0x100] sm:$0xff]   ;;  %v572_v41 = vmul.f32 %v3488_v31, %v4458_v12  ;;  %v573_v42 = vmul.f32 %v3489_v32, %v4458_v12 }
  0x15   : > { %v594_v23 = vmul.f32 %v3532_v17, %v4458_v12  ;;  %v595_v24 = vmul.f32 %v3533_v18, %v4458_v12  ;;  %v596_v44 = vmul.f32 %v3536_v37, %v4458_v12  ;;  %v597_v45 = vmul.f32 %v3537_v38, %v4458_v12  ;;  %v4264_v51 = vld [vmem:[%s5689_s5 + $0xc0] sm:$0xff]  }
  0x16   : > { %3661 = vmatpush3.bf16.msra.mxu0 %v4254_v5  ;;  %4218 = vmatpush3.bf16.msra.mxu1 %v4254_v5  ;;  %v608_v25 = vadd.f32 %v4464_v16, %v570_v20  ;;  %v609_v26 = vadd.f32 %v4464_v16, %v571_v21  ;;  %v610_v48 = vadd.f32 %v4464_v16, %v572_v41  ;;  %v3492_v50 = vunpack.c.l.bf16 %v3627_v46  ;;  %v3639_v20 = vld [vmem:[%s4446_s30 + $0x70] sm:$0xff]  }
  0x17   : > { %3662 = vmatprep.subr.bf16.mxu0 %v4255_v6  ;;  %4211 = vmatprep.subr.bf16.mxu1 %v4255_v6  ;;  %v632_v29 = vadd.f32 %v4464_v16, %v594_v23  ;;  %v633_v30 = vadd.f32 %v4464_v16, %v595_v24  ;;  %v611_v49 = vadd.f32 %v4464_v16, %v573_v42  ;;  %v3493_v1 = vunpack.c.h.bf16 %v3627_v46 }
  0x18   : > { %v640_v35 = vmax.f32 %v608_v25, 0.0  ;;  %v641_v36 = vmax.f32 %v609_v26, 0.0  ;;  %v634_v54 = vadd.f32 %v4464_v16, %v596_v44  ;;  %v635_v55 = vadd.f32 %v4464_v16, %v597_v45  ;;  %v4270_v44 = vld [vmem:[%s5689_s5 + $0xb0] sm:$0xff]  }
  0x19   : > { %v664_v39 = vmax.f32 %v632_v29, 0.0  ;;  %v665_v40 = vmax.f32 %v633_v30, 0.0  ;;  %v642_v60 = vmax.f32 %v610_v48, 0.0  ;;  %v643_v61 = vmax.f32 %v611_v49, 0.0 }
  0x1a   : > { %3663 = vmatpush3.bf16.msra.mxu0 %v4256_v7  ;;  %4219 = vmatpush3.bf16.msra.mxu1 %v4256_v7  ;;  %v672_v43 = vpack.c.bf16 %v641_v36, %v640_v35  ;;  %v666_v63 = vmax.f32 %v634_v54, 0.0  ;;  %v667_v0 = vmax.f32 %v635_v55, 0.0  ;;  %v574_v5 = vmul.f32 %v3492_v50, %v4458_v12  ;;  %v3628_v50 = vld [vmem:[%s4446_s30 + $0x18] sm:$0xff]  }
  0x1b   : > { %3664 = vmatprep.subr.bf16.mxu0 %v4257_v8  ;;  %4212 = vmatprep.subr.bf16.mxu1 %v4257_v8  ;;  %v684_v47 = vpack.c.bf16 %v665_v40, %v664_v39  ;;  %v673_v4 = vpack.c.bf16 %v643_v61, %v642_v60  ;;  %v3540_v40 = vunpack.c.l.bf16 %v3639_v20  ;;  %v3541_v61 = vunpack.c.h.bf16 %v3639_v20 }
  0x1c   : > { %v724_v52 = vshrl.u32 %v672_v43, 16  ;;  %v727_v53 = vshll.u32 %v672_v43, 16  ;;  %v685_v8 = vpack.c.bf16 %v667_v0, %v666_v63  ;;  %v612_v32 = vadd.f32 %v4464_v16, %v574_v5 }
  0x1d   : > { %v808_v56 = vshrl.u32 %v684_v47, 16  ;;  %v811_v57 = vshll.u32 %v684_v47, 16  ;;  %v731_v14 = vshrl.u32 %v673_v4, 16  ;;  %v734_v18 = vshll.u32 %v673_v4, 16 }
  0x1e   : > { %3665 = vmatpush3.bf16.msra.mxu0 %v4258_v9  ;;  %4220 = vmatpush3.bf16.msra.mxu1 %v4258_v9  ;;  %v726_v62 = vrot.slane %v724_v52, 7  ;;  %v575_v9 = vmul.f32 %v3493_v1, %v4458_v12  ;;  %v818_v31 = vshll.u32 %v685_v8, 16  ;;  %v644_v45 = vmax.f32 %v612_v32, 0.0  ;;  %v4267_v52 = vld [vmem:[%s5689_s5 + $0x170] sm:$0xff]   ;;  %v4269_v32 = vld [vmem:[%s5689_s5 + $0x160] sm:$0xff]  }
  0x1f   : > { %3666 = vmatprep.subr.bf16.mxu0 %v4259_v10  ;;  %4213 = vmatprep.subr.bf16.mxu1 %v4259_v10  ;;  %v810_v3 = vrot.slane %v808_v56, 7  ;;  %v733_v28 = vrot.slane %v731_v14, 7  ;;  %v598_v0 = vmul.f32 %v3540_v40, %v4458_v12  ;;  %v3496_v1 = vunpack.c.l.bf16 %v3628_v50 }
  0x20   : > { %v729_v6 = vor.u32 %v727_v53, %v726_v62  ;;  %v4519_v7 = vsel %vm4512_vm3, %v726_v62, 0  ;;  %v613_v36 = vadd.f32 %v4464_v16, %v575_v9  ;;  %v4274_v9 = vld [vmem:[%s5689_s5 + $0xa8] sm:$0xff]  }
  0x21   : > { %v938_v10 = vshll.u32 %v4519_v7, 16  ;;  %v813_v11 = vor.u32 %v811_v57, %v810_v3  ;;  %v4525_v13 = vsel %vm4512_vm3, %v810_v3, 0  ;;  %v4546_v35 = vsel %vm4512_vm3, %v733_v28, 0  ;;  %v3640_v3 = vld [vmem:[%s4446_s30 + $0x78] sm:$0xff]  }
  0x22   : > { %3667 = vmatpush3.bf16.msra.mxu0 %v4260_v19  ;;  %4221 = vmatpush3.bf16.msra.mxu1 %v4260_v19  ;;  %v4531_v15 = vsel %vm4512_vm3, 0, %v729_v6  ;;  %v1082_v17 = vshll.u32 %v4525_v13, 16  ;;  %v815_v19 = vshrl.u32 %v685_v8, 16  ;;  %v950_v38 = vshll.u32 %v4546_v35, 16 }
  0x23   : > { %3668 = vmatprep.subr.bf16.mxu0 %v4261_v22  ;;  %4214 = vmatprep.subr.bf16.mxu1 %v4261_v22  ;;  %v931_v21 = vshrl.u32 %v4531_v15, 16  ;;  %v933_v22 = vshll.u32 %v4531_v15, 16  ;;  %v940_v23 = vrot.slane %v938_v10, 1  ;;  %v4539_v24 = vsel %vm4512_vm3, 0, %v813_v11 }
  0x24   : > { %v1075_v25 = vshrl.u32 %v4539_v24, 16  ;;  %v1077_v26 = vshll.u32 %v4539_v24, 16  ;;  %v1084_v27 = vrot.slane %v1082_v17, 1  ;;  %v817_v30 = vrot.slane %v815_v19, 7 }
  0x25   : > { %v935_v29 = vrot.slane %v933_v22, 1  ;;  %v952_v49 = vrot.slane %v950_v38, 1  ;;  %v645_v55 = vmax.f32 %v613_v36, 0.0  ;;  %v599_v6 = vmul.f32 %v3541_v61, %v4458_v12 }
  0x26   : > { %3669 = vmatpush3.bf16.msra.mxu0 %v4262_v33  ;;  %4222 = vmatpush3.bf16.msra.mxu1 %v4262_v33  ;;  %v1079_v33 = vrot.slane %v1077_v26, 1  ;;  %v820_v39 = vor.u32 %v818_v31, %v817_v30  ;;  %v4556_v43 = vsel %vm4512_vm3, %v817_v30, 0  ;;  %v3497_v8 = vunpack.c.h.bf16 %v3628_v50  ;;  %v3629_v26 = vld [vmem:[%s4446_s30 + $0x20] sm:$0xff]  }
  0x27   : > { %3670 = vmatprep.subr.bf16.mxu0 %v4263_v34  ;;  %4215 = vmatprep.subr.bf16.mxu1 %v4263_v34  ;;  %v736_v34 = vor.u32 %v734_v18, %v733_v28  ;;  %v936_v37 = vor.u32 %v935_v29, %v931_v21  ;;  %v1094_v54 = vshll.u32 %v4556_v43, 16  ;;  %v674_v63 = vpack.c.bf16 %v645_v55, %v644_v45  ;;  %v4278_v31 = vld [vmem:[%s5689_s5 + $0xa0] sm:$0xff]   ;;  %v4271_v55 = vld [vmem:[%s5689_s5 + $0x158] sm:$0xff]  }
  0x28   : > { %v1080_v41 = vor.u32 %v1079_v33, %v1075_v25  ;;  %v4576_v53 = vsel %vm4512_vm3, 0, %v820_v39  ;;  %v576_v14 = vmul.f32 %v3496_v1, %v4458_v12  ;;  %v637_v19 = vadd.f32 %v4464_v16, %v599_v6 }
  0x29   : > { %v4552_v42 = vsel %vm4512_vm3, 0, %v736_v34  ;;  %v4562_v46 = vsel %vm917_vm2, %v936_v37, %v940_v23  ;;  %v1087_v57 = vshrl.u32 %v4576_v53, 16  ;;  %v1089_v60 = vshll.u32 %v4576_v53, 16 }
  0x2a   : > { %3671 = vmatpush3.bf16.msra.mxu0 %v4264_v51  ;;  %4223 = vmatpush3.bf16.msra.mxu1 %v4264_v51  ;;  %v943_v47 = vshrl.u32 %v4552_v42, 16  ;;  %v945_v48 = vshll.u32 %v4552_v42, 16  ;;  %v4569_v51 = vsel %vm917_vm2, %v1080_v41, %v1084_v27  ;;  %v1096_v62 = vrot.slane %v1094_v54, 1 }
  0x2b   : > { %4064 = vmatprep.subr.bf16.mxu1 %v4503_v58  ;;  %4112 = vmatprep.subr.bf16.mxu0 %v4508_v59  ;;  %v1091_v5 = vrot.slane %v1089_v60, 1  ;;  %v738_v10 = vshrl.u32 %v674_v63, 16  ;;  %v741_v11 = vshll.u32 %v674_v63, 16  ;;  %v577_v20 = vmul.f32 %v3497_v8, %v4458_v12 }
  0x2c   : > { %1581 = vmatprep.mubr.bf16.mxu0 %v4562_v46  ;;  %1677 = vmatprep.mubr.bf16.mxu1 %v4569_v51  ;;  %v947_v56 = vrot.slane %v945_v48, 1  ;;  %v614_v23 = vadd.f32 %v4464_v16, %v576_v14  ;;  %v3544_v25 = vunpack.c.l.bf16 %v3640_v3  ;;  %v669_v28 = vmax.f32 %v637_v19, 0.0  ;;  %v4286_v14 = vld [vmem:[%s5689_s5 + $0x90] sm:$0xff]  }
  0x2d   : > { %1582 = vmatmul.mubr.bf16.vlgmr.msra.gmra.mxu0 %v4531_v15  ;;  %1678 = vmatmul.mubr.bf16.vlgmr.msra.gmra.mxu1 %v4539_v24  ;;  %v1092_v18 = vor.u32 %v1091_v5, %v1087_v57  ;;  %v740_v21 = vrot.slane %v738_v10, 7  ;;  %v615_v29 = vadd.f32 %v4464_v16, %v577_v20  ;;  %v3545_v30 = vunpack.c.h.bf16 %v3640_v3  ;;  %v4272_v5 = vld [vmem:[%s5689_s5 + $0x150] sm:$0xff]  }
  0x2e   : > { %4113 = vmatpush3.bf16.msra.mxu0 %v4508_v59  ;;  %4065 = vmatpush3.bf16.msra.mxu1 %v4503_v58  ;;  %v948_v4 = vor.u32 %v947_v56, %v943_v47  ;;  %v4268_v59 = vld [vmem:[%s5689_s5 + $0x168] sm:$0xff]   ;;  %v636_v58 = vadd.f32 %v4464_v16, %v598_v0  ;;  %v646_v36 = vmax.f32 %v614_v23, 0.0  ;;  %v600_v37 = vmul.f32 %v3544_v25, %v4458_v12  ;;  %v4283_v56 = vld [vmem:[%s5689_s5 + $0x98] sm:$0xff]  }
  0x2f   : > { %4114 = vmatprep.subr.bf16.mxu0 %v4270_v44  ;;  %4066 = vmatprep.subr.bf16.mxu1 %v4267_v52  ;;  %v4606_v27 = vsel %vm917_vm2, %v1092_v18, %v1096_v62  ;;  %v743_v33 = vor.u32 %v741_v11, %v740_v21  ;;  %v4618_v34 = vsel %vm4512_vm3, %v740_v21, 0  ;;  %v647_v40 = vmax.f32 %v615_v29, 0.0 }
  0x30   : > { %v4598_v17 = vsel %vm917_vm2, %v948_v4, %v952_v49  ;;  %v668_v22 = vmax.f32 %v636_v58, 0.0  ;;  %1685 = vmatprep.mubr.bf16.mxu1 %v4606_v27  ;;  %v962_v38 = vshll.u32 %v4618_v34, 16  ;;  %v601_v41 = vmul.f32 %v3545_v30, %v4458_v12 }
  0x31   : > { %1589 = vmatprep.mubr.bf16.mxu0 %v4598_v17  ;;  %v638_v45 = vadd.f32 %v4464_v16, %v600_v37  ;;  %v3500_v47 = vunpack.c.l.bf16 %v3629_v26  ;;  %v3501_v48 = vunpack.c.h.bf16 %v3629_v26  ;;  %v675_v60 = vpack.c.bf16 %v647_v40, %v646_v36  ;;  %v4291_v36 = vld [vmem:[%s5689_s5 + $0x88] sm:$0xff]  }
  0x32   : > { %4115 = vmatpush3.bf16.msra.mxu0 %v4270_v44  ;;  %4067 = vmatpush3.bf16.msra.mxu1 %v4267_v52  ;;  %v686_v39 = vpack.c.bf16 %v669_v28, %v668_v22  ;;  %v4627_v44 = vsel %vm4512_vm3, 0, %v743_v33  ;;  %v964_v52 = vrot.slane %v962_v38, 1  ;;  %v639_v61 = vadd.f32 %v4464_v16, %v601_v41  ;;  %v3630_v28 = vld [vmem:[%s4446_s30 + $0x28] sm:$0xff]  }
  0x33   : > { %4116 = vmatprep.subr.bf16.mxu0 %v4274_v9  ;;  %4068 = vmatprep.subr.bf16.mxu1 %v4268_v59  ;;  %v955_v49 = vshrl.u32 %v4627_v44, 16  ;;  %v957_v50 = vshll.u32 %v4627_v44, 16  ;;  %v670_v62 = vmax.f32 %v638_v45, 0.0  ;;  %v578_v1 = vmul.f32 %v3500_v47, %v4458_v12 }
  0x34   : > { %v822_v54 = vshrl.u32 %v686_v39, 16  ;;  %v825_v57 = vshll.u32 %v686_v39, 16  ;;  %v579_v3 = vmul.f32 %v3501_v48, %v4458_v12  ;;  %v1196_v4 = vrot.slane %v4546_v35, 1 }
  0x35   : > { %1590 = vmatmul.mubr.bf16.gmra.mxu0 %v4552_v42  ;;  %1686 = vmatmul.mubr.bf16.gmra.mxu1 %v4576_v53  ;;  %v959_v63 = vrot.slane %v957_v50, 1  ;;  %v745_v6 = vshrl.u32 %v675_v60, 16  ;;  %v748_v8 = vshll.u32 %v675_v60, 16  ;;  %v616_v58 = vadd.f32 %v4464_v16, %v578_v1  ;;  %v4294_v1 = vld [vmem:[%s5689_s5 + $0x80] sm:$0xff]  }
  0x36   : > { %4117 = vmatpush3.bf16.msra.mxu0 %v4274_v9  ;;  %4069 = vmatpush3.bf16.msra.mxu1 %v4268_v59  ;;  %v824_v0 = vrot.slane %v822_v54, 7  ;;  %v671_v9 = vmax.f32 %v639_v61, 0.0  ;;  %v617_v21 = vadd.f32 %v4464_v16, %v579_v3  ;;  %v1192_v26 = vrot.slane %v4531_v15, 1 }
  0x37   : > { %4118 = vmatprep.subr.bf16.mxu0 %v4278_v31  ;;  %4070 = vmatprep.subr.bf16.mxu1 %v4269_v32  ;;  %v960_v59 = vor.u32 %v959_v63, %v955_v49  ;;  %v747_v19 = vrot.slane %v745_v6, 7  ;;  %v648_v25 = vmax.f32 %v616_v58, 0.0  ;;  %v1193_v33 = vrot.slane %v4519_v7, 1 }
  0x38   : > { %v827_v10 = vor.u32 %v825_v57, %v824_v0  ;;  %v4647_v11 = vsel %vm4512_vm3, %v824_v0, 0  ;;  %v687_v20 = vpack.c.bf16 %v671_v9, %v670_v62  ;;  %v649_v40 = vmax.f32 %v617_v21, 0.0 }
  0x39   : > { %v1106_v18 = vshll.u32 %v4647_v11, 16  ;;  %v4656_v22 = vsel %vm917_vm2, %v960_v59, %v964_v52  ;;  %v4677_v37 = vsel %vm4512_vm3, %v747_v19, 0  ;;  %v1195_v57 = vrot.slane %v4552_v42, 1 }
  0x3a   : > { %4119 = vmatpush3.bf16.msra.mxu0 %v4278_v31  ;;  %4071 = vmatpush3.bf16.msra.mxu1 %v4269_v32  ;;  %v4660_v23 = vsel %vm4512_vm3, 0, %v827_v10  ;;  %v750_v31 = vor.u32 %v748_v8, %v747_v19  ;;  %v4273_v32 = vld [vmem:[%s5689_s5 + $0x148] sm:$0xff]   ;;  %v829_v38 = vshrl.u32 %v687_v20, 16  ;;  %v832_v39 = vshll.u32 %v687_v20, 16 }
  0x3b   : > { %4120 = vmatprep.subr.bf16.mxu0 %v4283_v56  ;;  %4072 = vmatprep.subr.bf16.mxu1 %v4271_v55  ;;  %v1099_v29 = vshrl.u32 %v4660_v23, 16  ;;  %v1101_v30 = vshll.u32 %v4660_v23, 16  ;;  %v1108_v45 = vrot.slane %v1106_v18, 1  ;;  %v974_v47 = vshll.u32 %v4677_v37, 16 }
  0x3c   : > { %1597 = vmatprep.mubr.bf16.mxu0 %v4656_v22  ;;  %v4681_v7 = vsel %vm4512_vm3, 0, %v750_v31  ;;  %v831_v50 = vrot.slane %v829_v38, 7  ;;  %v676_v52 = vpack.c.bf16 %v649_v40, %v648_v25  ;;  %v3504_v60 = vunpack.c.l.bf16 %v3630_v28 }
  0x3d   : > { %1598 = vmatmul.mubr.bf16.gmra.mxu0 %v4627_v44  ;;  %v1103_v41 = vrot.slane %v1101_v30, 1  ;;  %v967_v48 = vshrl.u32 %v4681_v7, 16  ;;  %v969_v49 = vshll.u32 %v4681_v7, 16  ;;  %v3505_v58 = vunpack.c.h.bf16 %v3630_v28 }
  0x3e   : > { %4121 = vmatpush3.bf16.msra.mxu0 %v4283_v56  ;;  %4073 = vmatpush3.bf16.msra.mxu1 %v4271_v55  ;;  %v976_v55 = vrot.slane %v974_v47, 1  ;;  %v4275_v56 = vld [vmem:[%s5689_s5 + $0x140] sm:$0xff]   ;;  %v834_v62 = vor.u32 %v832_v39, %v831_v50  ;;  %v4692_v63 = vsel %vm4512_vm3, %v831_v50, 0  ;;  %v752_v0 = vshrl.u32 %v676_v52, 16 }
  0x3f   : > { %4074 = vmatprep.subr.bf16.mxu1 %v4272_v5  ;;  %4122 = vmatprep.subr.bf16.mxu0 %v4286_v14  ;;  %v1104_v54 = vor.u32 %v1103_v41, %v1099_v29  ;;  %v971_v61 = vrot.slane %v969_v49, 1  ;;  %v1118_v6 = vshll.u32 %v4692_v63, 16  ;;  %v755_v8 = vshll.u32 %v676_v52, 16  ;;  %v4298_v29 = vld [vmem:[%s5689_s5 + $0x1f8] sm:$0xff]  }
  0x40   : > { %v4707_v59 = vsel %vm4512_vm3, 0, %v834_v62  ;;  %v754_v10 = vrot.slane %v752_v0, 7  ;;  %v580_v20 = vmul.f32 %v3504_v60, %v4458_v12  ;;  %v581_v28 = vmul.f32 %v3505_v58, %v4458_v12  ;;  %v3632_v52 = vld [vmem:[%s4446_s30 + $0x38] sm:$0xff]  }
  0x41   : > { %v4698_v3 = vsel %vm917_vm2, %v1104_v54, %v1108_v45  ;;  %v972_v9 = vor.u32 %v971_v61, %v967_v48  ;;  %v1113_v18 = vshll.u32 %v4707_v59, 16  ;;  %v1120_v19 = vrot.slane %v1118_v6, 1  ;;  %v3631_v45 = vld [vmem:[%s4446_s30 + $0x30] sm:$0xff]  }
  0x42   : > { %4123 = vmatpush3.bf16.msra.mxu0 %v4286_v14  ;;  %4075 = vmatpush3.bf16.msra.mxu1 %v4272_v5  ;;  %5698 = vst [vmem:[#allocation2_spill] sm:$0xff] %v4698_v3  ;;  %v4702_v5 = vsel %vm1188_vm4, %v1192_v26, %v1193_v33  ;;  %v1111_v14 = vshrl.u32 %v4707_v59, 16  ;;  %v757_v25 = vor.u32 %v755_v8, %v754_v10  ;;  %v4718_v26 = vsel %vm4512_vm3, %v754_v10, 0 }
  0x43   : > { %4124 = vmatprep.subr.bf16.mxu0 %v4291_v36  ;;  %4076 = vmatprep.subr.bf16.mxu1 %v4273_v32  ;;  %v4714_v21 = vsel %vm917_vm2, %v972_v9, %v976_v55  ;;  %v1115_v30 = vrot.slane %v1113_v18, 1  ;;  %v986_v31 = vshll.u32 %v4718_v26, 16  ;;  %v618_v33 = vadd.f32 %v4464_v16, %v580_v20  ;;  %v4767_v20 = vld [vmem:[%s4446_s30 + $0x48] sm:$0xff]  }
  0x44   : > { %1693 = vmatprep.mubr.bf16.mxu1 %v4698_v3  ;;  %1605 = vmatprep.mubr.bf16.mxu0 %v4714_v21  ;;  %v4734_v38 = vsel %vm4512_vm3, 0, %v757_v25  ;;  %v619_v39 = vadd.f32 %v4464_v16, %v581_v28  ;;  %v1199_v40 = vrot.slane %v4618_v34, 1  ;;  %v1201_v41 = vrot.slane %v4681_v7, 1 }
  0x45   : > { %1694 = vmatmul.mubr.bf16.gmra.mxu1 %v4660_v23  ;;  %1606 = vmatmul.mubr.bf16.gmra.mxu0 %v4681_v7  ;;  %v1116_v47 = vor.u32 %v1115_v30, %v1111_v14  ;;  %v979_v48 = vshrl.u32 %v4734_v38, 16  ;;  %v981_v49 = vshll.u32 %v4734_v38, 16  ;;  %v4745_v50 = vsel %vm1188_vm4, %v1195_v57, %v1196_v4 }
  0x46   : > { %4125 = vmatpush3.bf16.msra.mxu0 %v4291_v36  ;;  %4077 = vmatpush3.bf16.msra.mxu1 %v4273_v32  ;;  %v4276_v32 = vld [vmem:[%s5689_s5 + $0x78] sm:$0xff]   ;;  %v1198_v36 = vrot.slane %v4627_v44, 1  ;;  %v988_v54 = vrot.slane %v986_v31, 1  ;;  %v650_v55 = vmax.f32 %v618_v33, 0.0  ;;  %v651_v34 = vmax.f32 %v619_v39, 0.0 }
  0x47   : > { %4126 = vmatprep.subr.bf16.mxu0 %v4294_v1  ;;  %4078 = vmatprep.subr.bf16.mxu1 %v4275_v56  ;;  %v1202_v60 = vrot.slane %v4677_v37, 1  ;;  %v4750_v61 = vsel %vm917_vm2, %v1116_v47, %v1120_v19  ;;  %v983_v62 = vrot.slane %v981_v49, 1  ;;  %v3508_v0 = vunpack.c.l.bf16 %v3631_v45 }
  0x48   : > { %5699 = vst [vmem:[#allocation3_spill] sm:$0xff] %v4750_v61  ;;  %v3509_v35 = vunpack.c.h.bf16 %v3631_v45  ;;  %1701 = vmatprep.mubr.bf16.mxu1 %v4750_v61  ;;  %v677_v4 = vpack.c.bf16 %v651_v34, %v650_v55  ;;  %v1204_v37 = vrot.slane %v4734_v38, 1  ;;  %v3512_v10 = vunpack.c.l.bf16 %v3632_v52  ;;  %v4277_v45 = vld [vmem:[%s5689_s5 + $0x38] sm:$0xff]   ;;  %v4279_v55 = vld [vmem:[%s5689_s5 + $0x70] sm:$0xff]  }
  0x49   : > { %v4757_v57 = vsel %vm1188_vm4, %v1201_v41, %v1202_v60  ;;  %v984_v6 = vor.u32 %v983_v62, %v979_v48  ;;  %v582_v8 = vmul.f32 %v3508_v0, %v4458_v12  ;;  %v1205_v18 = vrot.slane %v4718_v26, 1 }
  0x4a   : > { %4127 = vmatpush3.bf16.msra.mxu0 %v4294_v1  ;;  %4079 = vmatpush3.bf16.msra.mxu1 %v4275_v56  ;;  %v4754_v56 = vsel %vm1188_vm4, %v1198_v36, %v1199_v40  ;;  %v3633_v1 = vld [vmem:[%s4446_s30 + $0x40] sm:$0xff]   ;;  %v583_v9 = vmul.f32 %v3509_v35, %v4458_v12  ;;  %v759_v58 = vshrl.u32 %v677_v4, 16  ;;  %v762_v14 = vshll.u32 %v677_v4, 16 }
  0x4b   : > { %3928 = vmatprep.subr.bf16.mxu0 %v4298_v29  ;;  %3792 = vmatprep.subr.bf16.mxu1 %v4276_v32  ;;  %v3513_v19 = vunpack.c.h.bf16 %v3632_v52  ;;  %v4770_v25 = vsel %vm917_vm2, %v984_v6, %v988_v54  ;;  %v620_v28 = vadd.f32 %v4464_v16, %v582_v8  ;;  %v584_v30 = vmul.f32 %v3512_v10, %v4458_v12 }
  0x4c   : > { %v621_v29 = vadd.f32 %v4464_v16, %v583_v9  ;;  %1613 = vmatprep.mubr.bf16.mxu0 %v4770_v25  ;;  %v761_v31 = vrot.slane %v759_v58, 7  ;;  %v3516_v33 = vunpack.c.l.bf16 %v3633_v1  ;;  %v3517_v36 = vunpack.c.h.bf16 %v3633_v1  ;;  %v4280_v58 = vld [vmem:[%s5689_s5 + $0x30] sm:$0xff]  }
  0x4d   : > { %1702 = vmatmul.mubr.bf16.gmra.mxu1 %v4707_v59  ;;  %v585_v32 = vmul.f32 %v3513_v19, %v4458_v12  ;;  %1614 = vmatmul.mubr.bf16.gmra.mxu0 %v4734_v38  ;;  %v652_v26 = vmax.f32 %v620_v28, 0.0  ;;  %v622_v40 = vadd.f32 %v4464_v16, %v584_v30  ;;  %v3520_v41 = vunpack.c.l.bf16 %v4767_v20 }
  0x4e   : > { %4080 = vmatprep.mubr.bf16.mxu1 %v4702_v5  ;;  %v653_v39 = vmax.f32 %v621_v29, 0.0  ;;  %v764_v47 = vor.u32 %v762_v14, %v761_v31  ;;  %v905_v48 = vsel %vm4512_vm3, %v761_v31, 0  ;;  %v586_v52 = vmul.f32 %v3516_v33, %v4458_v12 }
  0x4f   : > { %v623_v49 = vadd.f32 %v4464_v16, %v585_v32  ;;  %v998_v54 = vshll.u32 %v905_v48, 16  ;;  %v1208_v60 = vrot.slane %v905_v48, 1  ;;  %v654_v62 = vmax.f32 %v622_v40, 0.0  ;;  %v4281_v32 = vld [vmem:[%s5689_s5 + $0x68] sm:$0xff]  }
  0x50   : > { %v678_v34 = vpack.c.bf16 %v653_v39, %v652_v26  ;;  %v4792_v0 = vsel %vm4512_vm3, 0, %v764_v47  ;;  %v587_v4 = vmul.f32 %v3517_v36, %v4458_v12  ;;  %v624_v1 = vadd.f32 %v4464_v16, %v586_v52 }
  0x51   : > { %v655_v35 = vmax.f32 %v623_v49, 0.0  ;;  %v991_v6 = vshrl.u32 %v4792_v0, 16  ;;  %v993_v8 = vshll.u32 %v4792_v0, 16  ;;  %v1000_v9 = vrot.slane %v998_v54, 1 }
  0x52   : > { %v766_v10 = vshrl.u32 %v678_v34, 16  ;;  %v769_v14 = vshll.u32 %v678_v34, 16  ;;  %v1207_v19 = vrot.slane %v4792_v0, 1  ;;  %v625_v29 = vadd.f32 %v4464_v16, %v587_v4 }
  0x53   : > { %v679_v28 = vpack.c.bf16 %v655_v35, %v654_v62  ;;  %v995_v30 = vrot.slane %v993_v8, 1  ;;  %v656_v33 = vmax.f32 %v624_v1, 0.0  ;;  %v3521_v36 = vunpack.c.h.bf16 %v4767_v20  ;;  %v4284_v20 = vld [vmem:[%s5689_s5 + $0x60] sm:$0xff]  }
  0x54   : > { %v768_v31 = vrot.slane %v766_v10, 7  ;;  %v4810_v26 = vsel %vm1188_vm4, %v1204_v37, %v1205_v18  ;;  %v588_v52 = vmul.f32 %v3520_v41, %v4458_v12  ;;  %v4282_v37 = vld [vmem:[%s5689_s5 + $0x28] sm:$0xff]   ;;  %v4285_v8 = vld [vmem:[%s5689_s5 + $0x20] sm:$0xff]   ;;  %v3635_v10 = vld [vmem:[%s4446_s30 + $0x50] sm:$0xff]   ;;  %v1237_v2 = vrot.slane %v4707_v59, 1 }
  0x55   : > { %4081 = vmatmul.mubr.bf16.vlgmr.msra.gmra.mxu1 %v4745_v50  ;;  %v773_v39 = vshrl.u32 %v679_v28, 16  ;;  %v776_v40 = vshll.u32 %v679_v28, 16  ;;  %v996_v47 = vor.u32 %v995_v30, %v991_v6  ;;  %v589_v35 = vmul.f32 %v3521_v36, %v4458_v12  ;;  %v4287_v28 = vld [vmem:[%s5689_s5 + $0x58] sm:$0xff]  }
  0x56   : > { %3793 = vmatpush3.bf16.msra.mxu1 %v4277_v45  ;;  %4084 = vmatprep.mubr.bf16.mxu1 %v4754_v56  ;;  %v657_v45 = vmax.f32 %v625_v29, 0.0  ;;  %v771_v48 = vor.u32 %v769_v14, %v768_v31  ;;  %v906_v49 = vsel %vm4512_vm3, %v768_v31, 0 }
  0x57   : > { %3794 = vmatprep.subr.bf16.mxu1 %v4279_v55  ;;  %v1010_v54 = vshll.u32 %v906_v49, 16  ;;  %v4816_v55 = vsel %vm1188_vm4, %v1207_v19, %v1208_v60  ;;  %v775_v18 = vrot.slane %v773_v39, 7  ;;  %v4825_v62 = vsel %vm917_vm2, %v996_v47, %v1000_v9 }
  0x58   : > { %v680_v34 = vpack.c.bf16 %v657_v45, %v656_v33  ;;  %v4829_v41 = vsel %vm4512_vm3, 0, %v771_v48  ;;  %v1211_v60 = vrot.slane %v906_v49, 1  ;;  %1621 = vmatprep.mubr.bf16.mxu0 %v4825_v62  ;;  %v626_v9 = vadd.f32 %v4464_v16, %v588_v52  ;;  %v4321_v49 = vld [vmem:[%s5688_s4] ss:$0 sm:$0xff] }
  0x59   : > { %v1003_v4 = vshrl.u32 %v4829_v41, 16  ;;  %v1005_v1 = vshll.u32 %v4829_v41, 16  ;;  %v778_v6 = vor.u32 %v776_v40, %v775_v18  ;;  %1622 = vmatmul.mubr.bf16.gmra.mxu0 %v4792_v0  ;;  %v4844_v12 = vsel %vm4512_vm3, %v775_v18, 0  ;;  %v3636_v40 = vld [vmem:[%s4446_s30 + $0x58] sm:$0xff]  }
  0x5a   : > { %3795 = vmatpush3.bf16.msra.mxu1 %v4280_v58  ;;  %v1012_v58 = vrot.slane %v1010_v54, 1  ;;  %v1210_v14 = vrot.slane %v4829_v41, 1  ;;  %v780_v19 = vshrl.u32 %v680_v34, 16  ;;  %v1022_v30 = vshll.u32 %v4844_v12, 16 }
  0x5b   : > { %3796 = vmatprep.subr.bf16.mxu1 %v4281_v32  ;;  %v1007_v29 = vrot.slane %v1005_v1, 1  ;;  %v4853_v16 = vsel %vm4512_vm3, 0, %v778_v6  ;;  %v783_v31 = vshll.u32 %v680_v34, 16  ;;  %v1214_v39 = vrot.slane %v4844_v12, 1 }
  0x5c   : > { %v1015_v32 = vshrl.u32 %v4853_v16, 16  ;;  %v1017_v33 = vshll.u32 %v4853_v16, 16  ;;  %v1213_v36 = vrot.slane %v4853_v16, 1  ;;  %v1024_v47 = vrot.slane %v1022_v30, 1 }
  0x5d   : > { %4085 = vmatmul.mubr.bf16.gmra.mxu1 %v4757_v57  ;;  %v1008_v45 = vor.u32 %v1007_v29, %v1003_v4  ;;  %v782_v48 = vrot.slane %v780_v19, 7  ;;  %v627_v52 = vadd.f32 %v4321_v49, %v589_v35  ;;  %v658_v18 = vmax.f32 %v626_v9, 0.0 }
  0x5e   : > { %4088 = vmatprep.mubr.bf16.mxu1 %v4810_v26  ;;  %3797 = vmatpush3.bf16.msra.mxu1 %v4282_v37  ;;  %v1019_v54 = vrot.slane %v1017_v33, 1  ;;  %v4865_v37 = vsel %vm1188_vm4, %v1210_v14, %v1211_v60  ;;  %v3524_v34 = vunpack.c.l.bf16 %v3635_v10  ;;  %v4288_v60 = vld [vmem:[%s5689_s5 + $0x18] sm:$0xff]   ;;  %v3525_v9 = vunpack.c.h.bf16 %v3635_v10  ;;  %v4322_v14 = vld [vmem:[%s5687_s3] ss:$0 sm:$0xff] }
  0x5f   : > { %3798 = vmatprep.subr.bf16.mxu1 %v4284_v20  ;;  %v4868_v1 = vsel %vm917_vm2, %v1008_v45, %v1012_v58  ;;  %v785_v20 = vor.u32 %v783_v31, %v782_v48  ;;  %v908_v4 = vsel %vm4512_vm3, %v782_v48, 0  ;;  %v659_v6 = vmax.f32 %v627_v52, 0.0 }
  0x60   : > { %1629 = vmatprep.mubr.bf16.mxu0 %v4868_v1  ;;  %v1020_v12 = vor.u32 %v1019_v54, %v1015_v32  ;;  %v1034_v19 = vshll.u32 %v908_v4, 16  ;;  %v1217_v35 = vrot.slane %v908_v4, 1  ;;  %v590_v29 = vmul.f32 %v4322_v14, %v3524_v34  ;;  %v4290_v4 = vld [vmem:[%s5689_s5 + $0x10] sm:$0xff]  }
  0x61   : > { %v4878_v58 = vsel %vm4512_vm3, 0, %v785_v20  ;;  %v3528_v30 = vunpack.c.l.bf16 %v3636_v40  ;;  %1630 = vmatmul.mubr.bf16.gmra.mxu0 %v4829_v41  ;;  %v591_v54 = vmul.f32 %v4322_v14, %v3525_v9  ;;  %v3529_v20 = vunpack.c.h.bf16 %v3636_v40 }
  0x62   : > { %3799 = vmatpush3.bf16.msra.mxu1 %v4285_v8  ;;  %v681_v8 = vpack.c.bf16 %v659_v6, %v658_v18  ;;  %v4889_v10 = vsel %vm917_vm2, %v1020_v12, %v1024_v47  ;;  %v1027_v31 = vshrl.u32 %v4878_v58, 16  ;;  %v1029_v32 = vshll.u32 %v4878_v58, 16 }
  0x63   : > { %3800 = vmatprep.subr.bf16.mxu1 %v4287_v28  ;;  %v4289_v28 = vld [vmem:[%s5689_s5 + $0x50] sm:$0xff]   ;;  %v1036_v33 = vrot.slane %v1034_v19, 1  ;;  %1637 = vmatprep.mubr.bf16.mxu0 %v4889_v10  ;;  %v1216_v45 = vrot.slane %v4878_v58, 1  ;;  %v628_v34 = vadd.f32 %v4321_v49, %v590_v29  ;;  %v592_v47 = vmul.f32 %v4322_v14, %v3528_v30  ;;  %v4292_v19 = vld [vmem:[%s5689_s5 + $0x48] sm:$0xff]  }
  0x64   : > { %v787_v48 = vshrl.u32 %v681_v8, 16  ;;  %v790_v52 = vshll.u32 %v681_v8, 16  ;;  %v1031_v18 = vrot.slane %v1029_v32, 1  ;;  %v629_v12 = vadd.f32 %v4321_v49, %v591_v54 }
  0x65   : > { %4089 = vmatmul.mubr.bf16.gmra.mxu1 %v4816_v55  ;;  %v660_v3 = vmax.f32 %v628_v34, 0.0  ;;  %v593_v8 = vmul.f32 %v4322_v14, %v3529_v20  ;;  %v630_v9 = vadd.f32 %v4321_v49, %v592_v47  ;;  %v4293_v14 = vld [vmem:[%s5689_s5 + $0x8] sm:$0xff]   ;;  %v4296_v47 = vld [vmem:[%s5689_s5] sm:$0xff]  }
  0x66   : > { %4092 = vmatprep.mubr.bf16.mxu1 %v4865_v37  ;;  %3801 = vmatpush3.bf16.msra.mxu1 %v4288_v60  ;;  %v789_v6 = vrot.slane %v787_v48, 7  ;;  %v1032_v61 = vor.u32 %v1031_v18, %v1027_v31  ;;  %v4903_v60 = vsel %vm1188_vm4, %v1213_v36, %v1214_v39  ;;  %v661_v30 = vmax.f32 %v629_v12, 0.0  ;;  %v4936_v12 = vld [vmem:[%s5689_s5 + $0x238] sm:$0xff]  }
  0x67   : > { %3802 = vmatprep.subr.bf16.mxu1 %v4289_v28  ;;  %v4911_v28 = vsel %vm1188_vm4, %v1216_v45, %v1217_v35  ;;  %v631_v54 = vadd.f32 %v4321_v49, %v593_v8  ;;  %v662_v31 = vmax.f32 %v630_v9, 0.0 }
  0x68   : > { %v792_v40 = vor.u32 %v790_v52, %v789_v6  ;;  %v909_v29 = vsel %vm4512_vm3, %v789_v6, 0  ;;  %v4908_v32 = vsel %vm917_vm2, %v1032_v61, %v1036_v33  ;;  %v682_v39 = vpack.c.bf16 %v661_v30, %v660_v3  ;;  %v4295_v61 = vld [vmem:[%s5689_s5 + $0x40] sm:$0xff]  }
  0x69   : > { %v1046_v48 = vshll.u32 %v909_v29, 16  ;;  %1638 = vmatmul.mubr.bf16.gmra.mxu0 %v4853_v16  ;;  %v1220_v35 = vrot.slane %v909_v29, 1  ;;  %v663_v18 = vmax.f32 %v631_v54, 0.0 }
  0x6a   : > { %3803 = vmatpush3.bf16.msra.mxu1 %v4290_v4  ;;  %v4918_v36 = vsel %vm4512_vm3, 0, %v792_v40  ;;  %1645 = vmatprep.mubr.bf16.mxu0 %v4908_v32  ;;  %v794_v3 = vshrl.u32 %v682_v39, 16  ;;  %v797_v52 = vshll.u32 %v682_v39, 16 }
  0x6b   : > { %3804 = vmatprep.subr.bf16.mxu1 %v4292_v19  ;;  %v1219_v49 = vrot.slane %v4918_v36, 1  ;;  %v1039_v33 = vshrl.u32 %v4918_v36, 16  ;;  %v1041_v45 = vshll.u32 %v4918_v36, 16  ;;  %v1048_v20 = vrot.slane %v1046_v48, 1 }
  0x6c   : > { %v796_v4 = vrot.slane %v794_v3, 7  ;;  %v683_v6 = vpack.c.bf16 %v663_v18, %v662_v31  ;;  %v1228_v18 = vrot.slane %v4539_v24, 1 }
  0x6d   : > { %4093 = vmatmul.mubr.bf16.gmra.mxu1 %v4903_v60  ;;  %v1043_v34 = vrot.slane %v1041_v45, 1  ;;  %v4939_v19 = vsel %vm1188_vm4, %v1219_v49, %v1220_v35 }
  0x6e   : > { %4096 = vmatprep.mubr.bf16.mxu1 %v4911_v28  ;;  %3805 = vmatpush3.bf16.msra.mxu1 %v4293_v14  ;;  %v799_v9 = vor.u32 %v797_v52, %v796_v4  ;;  %v910_v40 = vsel %vm4512_vm3, %v796_v4, 0  ;;  %v801_v29 = vshrl.u32 %v683_v6, 16  ;;  %v804_v30 = vshll.u32 %v683_v6, 16 }
  0x6f   : > { %3806 = vmatprep.subr.bf16.mxu1 %v4295_v61  ;;  %v1044_v8 = vor.u32 %v1043_v34, %v1039_v33  ;;  %v1223_v54 = vrot.slane %v910_v40, 1  ;;  %v1058_v14 = vshll.u32 %v910_v40, 16  ;;  %v4347_v33 = vmov 0  }
  0x70   : > { %v4948_v39 = vsel %vm4512_vm3, 0, %v799_v9  ;;  %v803_v31 = vrot.slane %v801_v29, 7  ;;  %v719_v45 = vrot.slane %v4347_v33, 7  ;;  %v1229_v34 = vrot.slane %v4525_v13, 1 }
  0x71   : > { %v4944_v48 = vsel %vm917_vm2, %v1044_v8, %v1048_v20  ;;  %1646 = vmatmul.mubr.bf16.gmra.mxu0 %v4878_v58  ;;  %v1222_v61 = vrot.slane %v4948_v39, 1  ;;  %v1051_v49 = vshrl.u32 %v4948_v39, 16  ;;  %v1053_v35 = vshll.u32 %v4948_v39, 16 }
  0x72   : > { %3807 = vmatpush3.bf16.msra.mxu1 %v4296_v47  ;;  %1653 = vmatprep.mubr.bf16.mxu0 %v4944_v48  ;;  %v806_v3 = vor.u32 %v804_v30, %v803_v31  ;;  %v911_v52 = vsel %vm4512_vm3, %v803_v31, 0  ;;  %v1060_v6 = vrot.slane %v1058_v14, 1  ;;  %v4972_v30 = vsel %vm1188_vm4, %v1228_v18, %v1229_v34 }
  0x73   : > { %4160 = vmatprep.subr.bf16.mxu1 %v4936_v12  ;;  %v4962_v20 = vsel %vm1188_vm4, %v1222_v61, %v1223_v54  ;;  %v1226_v47 = vrot.slane %v911_v52, 1  ;;  %v1055_v4 = vrot.slane %v1053_v35, 1  ;;  %v1070_v13 = vshll.u32 %v911_v52, 16 }
  0x74   : > { %v4967_v8 = vsel %vm4512_vm3, 0, %v806_v3  ;;  %v4976_v54 = vsel %vm4512_vm3, 0, %v719_v45  ;;  %v1232_v33 = vrot.slane %v4556_v43, 1  ;;  %v1234_v34 = vrot.slane %v4660_v23, 1 }
  0x75   : > { %4097 = vmatmul.mubr.bf16.gmra.mxu1 %v4939_v19  ;;  %v1225_v9 = vrot.slane %v4967_v8, 1  ;;  %v1056_v40 = vor.u32 %v1055_v4, %v1051_v49  ;;  %v1065_v29 = vshll.u32 %v4967_v8, 16  ;;  %v1063_v61 = vshrl.u32 %v4967_v8, 16 }
  0x76   : > { %4100 = vmatprep.mubr.bf16.mxu1 %v4962_v20  ;;  %v1231_v49 = vrot.slane %v4576_v53, 1  ;;  %v921_v3 = vshll.u32 %v4976_v54, 16  ;;  %v1072_v18 = vrot.slane %v1070_v13, 1  ;;  %v899_v4 = vsel %vm4512_vm3, %v719_v45, 0 }
  0x77   : > { %v4979_v14 = vsel %vm1188_vm4, %v1225_v9, %v1226_v47  ;;  %v4982_v31 = vsel %vm917_vm2, %v1056_v40, %v1060_v6  ;;  %v1067_v35 = vrot.slane %v1065_v29, 1  ;;  %v1235_v47 = vrot.slane %v4647_v11, 1 }
  0x78   : > { %v4997_v6 = vsel %vm1188_vm4, %v1231_v49, %v1232_v33  ;;  %v919_v9 = vshrl.u32 %v4976_v54, 16  ;;  %v923_v29 = vrot.slane %v921_v3, 1  ;;  %v926_v13 = vshll.u32 %v899_v4, 16 }
  0x79   : > { %1654 = vmatmul.mubr.bf16.gmra.mxu0 %v4918_v36  ;;  %v1068_v52 = vor.u32 %v1067_v35, %v1063_v61  ;;  %v5004_v43 = vsel %vm1188_vm4, %v1234_v34, %v1235_v47  ;;  %v1238_v11 = vrot.slane %v4692_v63, 1  ;;  %v1189_v35 = vrot.slane %v4976_v54, 1  ;;  %v4299_v63 = vld [vmem:[%s5689_s5 + $0x1b8] sm:$0xff]   ;;  %v4302_v34 = vld [vmem:[%s5689_s5 + $0x230] sm:$0xff]  }
  0x7a   : > { %1661 = vmatprep.mubr.bf16.mxu0 %v4982_v31  ;;  %v924_v45 = vor.u32 %v923_v29, %v919_v9  ;;  %v928_v61 = vrot.slane %v926_v13, 1  ;;  %v1190_v49 = vrot.slane %v899_v4, 1  ;;  %v4301_v47 = vld [vmem:[%s5689_s5 + $0x1b0] sm:$0xff]   ;;  %v4303_v4 = vld [vmem:[%s5689_s5 + $0x1e8] sm:$0xff]   ;;  %v4306_v29 = vld [vmem:[%s5689_s5 + $0x1a0] sm:$0xff]  }
  0x7b   : > { %v5001_v40 = vsel %vm917_vm2, %v1068_v52, %v1072_v18  ;;  %v5014_v33 = vsel %vm1188_vm4, %v1237_v2, %v1238_v11  ;;  %v4300_v18 = vld [vmem:[%s5689_s5 + $0x1f0] sm:$0xff]   ;;  %v4307_v9 = vld [vmem:[%s5689_s5 + $0x228] sm:$0xff]   ;;  %v4308_v13 = vld [vmem:[%s5689_s5 + $0x1d8] sm:$0xff]  }
  0x7c   : > { %v5017_v3 = vsel %vm917_vm2, %v924_v45, %v928_v61  ;;  %v5020_v52 = vsel %vm1188_vm4, %v1189_v35, %v1190_v49  ;;  %v4309_v2 = vld [vmem:[%s5689_s5 + $0x198] sm:$0xff]   ;;  %v4310_v11 = vld [vmem:[%s5689_s5 + $0x1d0] sm:$0xff]   ;;  %v4313_v35 = vld [vmem:[%s5689_s5 + $0x1c8] sm:$0xff]  }
  0x7d   : > { %4101 = vmatmul.mubr.bf16.gmra.mxu1 %v4979_v14  ;;  %v4318_v45 = vld [vmem:[%s5689_s5 + $0x210] sm:$0xff]   ;;  %v4319_v49 = vld [vmem:[%s5689_s5 + $0x208] sm:$0xff]  }
  0x7e   : > { %4104 = vmatprep.mubr.bf16.mxu1 %v4972_v30  ;;  %v4311_v61 = vld [vmem:[%s5689_s5 + $0x190] sm:$0xff]  }
  0x81   : > { %1662 = vmatmul.mubr.bf16.gmra.mxu0 %v4948_v39 }
  0x82   : > { %1669 = vmatprep.mubr.bf16.mxu0 %v5001_v40 }
  0x85   : > { %4105 = vmatmul.mubr.bf16.gmra.mxu1 %v4997_v6 }
  0x86   : > { %4108 = vmatprep.mubr.bf16.mxu1 %v5004_v43 }
  0x89   : > { %1670 = vmatmul.mubr.bf16.gmra.mxu0 %v4967_v8 }
  0x8a   : > { %4128 = vmatprep.mubr.bf16.mxu0 %v5020_v52 }
  0x8d   : > { %4109 = vmatmul.mubr.bf16.gmra.mxu1 %v5014_v33 }
  0x8e   : > { %2047 = vmatprep.mubr.bf16.mxu1 %v5017_v3 }
  0x91   : > { %4129 = vmatmul.mubr.bf16.vlgmr.msra.gmra.mxu0 %v4702_v5  ;;  %v4304_v5 = vld [vmem:[%s5689_s5 + $0x1a8] sm:$0xff]  }
  0x92   : > { %3929 = vmatpush3.bf16.msra.mxu0 %v4299_v63  ;;  %4132 = vmatprep.mubr.bf16.mxu0 %v4745_v50  ;;  %v4314_v63 = vld [vmem:[%s5689_s5 + $0x188] sm:$0xff]  }
  0x93   : > { %3930 = vmatprep.subr.bf16.mxu0 %v4300_v18  ;;  %v4315_v18 = vld [vmem:[%s5689_s5 + $0x1c0] sm:$0xff]  }
  0x95   : > { %2048 = vmatmul.mubr.bf16.vlgmr.msra.gmra.mxu1 %v4976_v54 }
  0x96   : > { %4161 = vmatpush3.bf16.msra.mxu1 %v4936_v12  ;;  %2055 = vmatprep.mubr.bf16.mxu1 %v4562_v46  ;;  %v4305_v46 = vld [vmem:[%s5689_s5 + $0x1e0] sm:$0xff]  }
  0x97   : > { %4162 = vmatprep.subr.bf16.mxu1 %v4302_v34  ;;  %3931 = vmatpush3.bf16.msra.mxu0 %v4301_v47  ;;  %v4312_v12 = vld [vmem:[%s5689_s5 + $0x220] sm:$0xff]  }
  0x98   : > { %3932 = vmatprep.subr.bf16.mxu0 %v4303_v4  ;;  %v4316_v47 = vld [vmem:[%s5689_s5 + $0x180] sm:$0xff]  }
  0x99   : > { %4133 = vmatmul.mubr.bf16.gmra.mxu0 %v4754_v56 }
  0x9a   : > { %4163 = vmatpush3.bf16.msra.mxu1 %v4302_v34  ;;  %4136 = vmatprep.mubr.bf16.mxu0 %v4757_v57  ;;  %v4320_v34 = vld [vmem:[%s5689_s5 + $0x200] sm:$0xff]  }
  0x9b   : > { %4164 = vmatprep.subr.bf16.mxu1 %v4307_v9  ;;  %3933 = vmatpush3.bf16.msra.mxu0 %v4304_v5 }
  0x9c   : > { %3934 = vmatprep.subr.bf16.mxu0 %v4305_v46 }
  0x9d   : > { %2056 = vmatmul.mubr.bf16.gmra.mxu1 %v4531_v15  ;;  %v4317_v15 = vld [vmem:[%s5689_s5 + $0x218] sm:$0xff]  }
  0x9e   : > { %2063 = vmatprep.mubr.bf16.mxu1 %v4598_v17  ;;  %4165 = vmatpush3.bf16.msra.mxu1 %v4307_v9 }
  0x9f   : > { %4166 = vmatprep.subr.bf16.mxu1 %v4312_v12  ;;  %3935 = vmatpush3.bf16.msra.mxu0 %v4306_v29 }
  0xa0   : > { %3936 = vmatprep.subr.bf16.mxu0 %v4308_v13 }
  0xa1   : > { %4137 = vmatmul.mubr.bf16.gmra.mxu0 %v4810_v26 }
  0xa2   : > { %4167 = vmatpush3.bf16.msra.mxu1 %v4312_v12  ;;  %4140 = vmatprep.mubr.bf16.mxu0 %v4816_v55 }
  0xa3   : > { %4168 = vmatprep.subr.bf16.mxu1 %v4317_v15  ;;  %3937 = vmatpush3.bf16.msra.mxu0 %v4309_v2 }
  0xa4   : > { %3938 = vmatprep.subr.bf16.mxu0 %v4310_v11 }
  0xa5   : > { %2064 = vmatmul.mubr.bf16.gmra.mxu1 %v4552_v42 }
  0xa6   : > { %2071 = vmatprep.mubr.bf16.mxu1 %v4656_v22  ;;  %4169 = vmatpush3.bf16.msra.mxu1 %v4317_v15 }
  0xa7   : > { %4170 = vmatprep.subr.bf16.mxu1 %v4318_v45  ;;  %3939 = vmatpush3.bf16.msra.mxu0 %v4311_v61 }
  0xa8   : > { %3940 = vmatprep.subr.bf16.mxu0 %v4313_v35 }
  0xa9   : > { %4141 = vmatmul.mubr.bf16.gmra.mxu0 %v4865_v37 }
  0xaa   : > { %4171 = vmatpush3.bf16.msra.mxu1 %v4318_v45  ;;  %4144 = vmatprep.mubr.bf16.mxu0 %v4903_v60 }
  0xab   : > { %4172 = vmatprep.subr.bf16.mxu1 %v4319_v49  ;;  %3941 = vmatpush3.bf16.msra.mxu0 %v4314_v63 }
  0xac   : > { %3942 = vmatprep.subr.bf16.mxu0 %v4315_v18 }
  0xad   : > { %2072 = vmatmul.mubr.bf16.gmra.mxu1 %v4627_v44 }
  0xae   : > { %2079 = vmatprep.mubr.bf16.mxu1 %v4714_v21  ;;  %4173 = vmatpush3.bf16.msra.mxu1 %v4319_v49 }
  0xaf   : > { %4174 = vmatprep.subr.bf16.mxu1 %v4320_v34  ;;  %3943 = vmatpush3.bf16.msra.mxu0 %v4316_v47 }
  0xb1   : > { %4145 = vmatmul.mubr.bf16.gmra.mxu0 %v4911_v28 }
  0xb2   : > { %4175 = vmatpush3.bf16.msra.mxu1 %v4320_v34  ;;  %4148 = vmatprep.mubr.bf16.mxu0 %v4939_v19 }
  0xb5   : > { %2080 = vmatmul.mubr.bf16.gmra.mxu1 %v4681_v7 }
  0xb6   : > { %2087 = vmatprep.mubr.bf16.mxu1 %v4770_v25 }
  0xb9   : > { %4149 = vmatmul.mubr.bf16.gmra.mxu0 %v4962_v20 }
  0xba   : > { %4152 = vmatprep.mubr.bf16.mxu0 %v4979_v14 }
  0xbd   : > { %2088 = vmatmul.mubr.bf16.gmra.mxu1 %v4734_v38 }
  0xbe   : > { %2095 = vmatprep.mubr.bf16.mxu1 %v4825_v62 }
  0xc1   : > { %4153 = vmatmul.mubr.bf16.gmra.mxu0 %v4972_v30 }
  0xc2   : > { %4156 = vmatprep.mubr.bf16.mxu0 %v4997_v6 }
  0xc5   : > { %2096 = vmatmul.mubr.bf16.gmra.mxu1 %v4792_v0 }
  0xc6   : > { %2103 = vmatprep.mubr.bf16.mxu1 %v4868_v1 }
  0xc9   : > { %4157 = vmatmul.mubr.bf16.gmra.mxu0 %v5004_v43 }
  0xca   : > { %2513 = vmatprep.mubr.bf16.mxu0 %v4598_v17 }
  0xcd   : > { %2104 = vmatmul.mubr.bf16.gmra.mxu1 %v4829_v41 }
  0xce   : > { %2111 = vmatprep.mubr.bf16.mxu1 %v4889_v10 }
  0xd1   : > { %2514 = vmatmul.mubr.bf16.vlgmr.msra.gmra.mxu0 %v4552_v42 }
  0xd2   : > { %2521 = vmatprep.mubr.bf16.mxu0 %v4656_v22 }
  0xd5   : > { %2112 = vmatmul.mubr.bf16.gmra.mxu1 %v4853_v16 }
  0xd6   : > { %2119 = vmatprep.mubr.bf16.mxu1 %v4908_v32 }
  0xd9   : > { %2522 = vmatmul.mubr.bf16.gmra.mxu0 %v4627_v44 }
  0xda   : > { %2529 = vmatprep.mubr.bf16.mxu0 %v4714_v21 }
  0xdd   : > { %2120 = vmatmul.mubr.bf16.gmra.mxu1 %v4878_v58 }
  0xde   : > { %2127 = vmatprep.mubr.bf16.mxu1 %v4944_v48 }
  0xe1   : > { %2530 = vmatmul.mubr.bf16.gmra.mxu0 %v4681_v7 }
  0xe2   : > { %2537 = vmatprep.mubr.bf16.mxu0 %v4770_v25 }
  0xe5   : > { %2128 = vmatmul.mubr.bf16.gmra.mxu1 %v4918_v36 }
  0xe6   : > { %2135 = vmatprep.mubr.bf16.mxu1 %v4982_v31 }
  0xe9   : > { %2538 = vmatmul.mubr.bf16.gmra.mxu0 %v4734_v38 }
  0xea   : > { %2545 = vmatprep.mubr.bf16.mxu0 %v4825_v62 }
  0xed   : > { %v3672_v42 = vpop.f32.mrf.mxu0  ;;  %2136 = vmatmul.mubr.bf16.gmra.mxu1 %v4948_v39  ;;  %v3744_v17 = vpop.f32.mrf.mxu1 }
  0xee   : > { %2143 = vmatprep.mubr.bf16.mxu1 %v5001_v40 }
  0xef   : > { %v3673_v44 = vpop.f32.mrf.mxu0  ;;  %v3745_v21 = vpop.f32.mrf.mxu1 }
  0xf0   : > { %v5141_v22 = vadd.f32 %v3673_v44, %v3672_v42  ;;  %v5143_v4 = vadd.f32 %v3745_v21, %v3744_v17  ;;  %v5700_v44 = vld [vmem:[#allocation2_spill] sm:$0xff] }
  0xf1   : > { %v3675_v7 = vpop.f32.mrf.mxu0  ;;  %v3747_v9 = vpop.f32.mrf.mxu1  ;;  %2546 = vmatmul.mubr.bf16.gmra.mxu0 %v4792_v0 }
  0xf2   : > { %2553 = vmatprep.mubr.bf16.mxu0 %v4868_v1 }
  0xf3   : > { %v3676_v5 = vpop.f32.mrf.mxu0  ;;  %v3748_v46 = vpop.f32.mrf.mxu1 }
  0xf4   : > { %v5145_v25 = vadd.f32 %v3676_v5, %v3675_v7  ;;  %v5147_v12 = vadd.f32 %v3748_v46, %v3747_v9 }
  0xf5   : > { %v3678_v38 = vpop.f32.mrf.mxu0  ;;  %2144 = vmatmul.mubr.bf16.gmra.mxu1 %v4967_v8  ;;  %v3750_v62 = vpop.f32.mrf.mxu1 }
  0xf6   : > { %2151 = vmatprep.mubr.bf16.mxu1 %v4569_v51 }
  0xf7   : > { %v3679_v29 = vpop.f32.mrf.mxu0  ;;  %v3751_v15 = vpop.f32.mrf.mxu1 }
  0xf8   : > { %v3680_v13 = vadd.f32 %v3679_v29, %v3678_v38  ;;  %v5153_v2 = vadd.f32 %v3751_v15, %v3750_v62 }
  0xf9   : > { %v3681_v11 = vpop.f32.mrf.mxu0  ;;  %v3753_v45 = vpop.f32.mrf.mxu1  ;;  %2554 = vmatmul.mubr.bf16.gmra.mxu0 %v4829_v41 }
  0xfa   : > { %2561 = vmatprep.mubr.bf16.mxu0 %v4889_v10 }
  0xfb   : > { %v3682_v61 = vpop.f32.mrf.mxu0  ;;  %v3754_v49 = vpop.f32.mrf.mxu1 }
  0xfc   : > { %v3683_v35 = vadd.f32 %v3682_v61, %v3681_v11  ;;  %v5155_v63 = vadd.f32 %v3754_v49, %v3753_v45 }
  0xfd   : > { %2152 = vmatmul.mubr.bf16.gmra.mxu1 %v4539_v24  ;;  %v3684_v0 = vpop.f32.mrf.mxu0 }
  0xfe   : > { %2159 = vmatprep.mubr.bf16.mxu1 %v4606_v27 }
  0xff   : > { %v3685_v1 = vpop.f32.mrf.mxu0 }
 0x100   : > { %v3686_v18 = vadd.f32 %v3685_v1, %v3684_v0 }
 0x101   : > { %v3687_v34 = vpop.f32.mrf.mxu0  ;;  %2562 = vmatmul.mubr.bf16.gmra.mxu0 %v4853_v16 }
 0x102   : > { %2569 = vmatprep.mubr.bf16.mxu0 %v4908_v32 }
 0x103   : > { %v3688_v47 = vpop.f32.mrf.mxu0 }
 0x104   : > { %v3689_v17 = vadd.f32 %v3688_v47, %v3687_v34 }
 0x105   : > { %v3756_v42 = vpop.f32.mrf.mxu1  ;;  %2160 = vmatmul.mubr.bf16.gmra.mxu1 %v4576_v53  ;;  %v3690_v7 = vpop.f32.mrf.mxu0 }
 0x106   : > { %2167 = vmatprep.mubr.bf16.mxu1 %v5700_v44 }
 0x107   : > { %v3757_v41 = vpop.f32.mrf.mxu1  ;;  %v3691_v9 = vpop.f32.mrf.mxu0 }
 0x108   : > { %v5165_v21 = vadd.f32 %v3757_v41, %v3756_v42  ;;  %v3692_v46 = vadd.f32 %v3691_v9, %v3690_v7 }
 0x109   : > { %v3759_v10 = vpop.f32.mrf.mxu1  ;;  %v3693_v62 = vpop.f32.mrf.mxu0  ;;  %2570 = vmatmul.mubr.bf16.gmra.mxu0 %v4878_v58 }
 0x10a   : > { %2577 = vmatprep.mubr.bf16.mxu0 %v4944_v48 }
 0x10b   : > { %v3760_v5 = vpop.f32.mrf.mxu1  ;;  %v3694_v16 = vpop.f32.mrf.mxu0 }
 0x10c   : > { %v5167_v38 = vadd.f32 %v3760_v5, %v3759_v10  ;;  %v3695_v15 = vadd.f32 %v3694_v16, %v3693_v62 }
 0x10d   : > { %v3762_v29 = vpop.f32.mrf.mxu1  ;;  %2168 = vmatmul.mubr.bf16.gmra.mxu1 %v4660_v23  ;;  %v3696_v61 = vpop.f32.mrf.mxu0 }
 0x10e   : > { %4176 = vmatprep.mubr.bf16.mxu1 %v4745_v50 }
 0x10f   : > { %v3763_v32 = vpop.f32.mrf.mxu1  ;;  %v3697_v0 = vpop.f32.mrf.mxu0 }
 0x110   : > { %v5173_v11 = vadd.f32 %v3763_v32, %v3762_v29  ;;  %v3698_v34 = vadd.f32 %v3697_v0, %v3696_v61 }
 0x111   : > { %v3765_v45 = vpop.f32.mrf.mxu1  ;;  %2578 = vmatmul.mubr.bf16.gmra.mxu0 %v4918_v36  ;;  %v3699_v58 = vpop.f32.mrf.mxu0 }
 0x112   : > { %2585 = vmatprep.mubr.bf16.mxu0 %v4982_v31 }
 0x113   : > { %v3766_v49 = vpop.f32.mrf.mxu1  ;;  %v3700_v42 = vpop.f32.mrf.mxu0 }
 0x114   : > { %v5175_v1 = vadd.f32 %v3766_v49, %v3765_v45  ;;  %v3701_v7 = vadd.f32 %v3700_v42, %v3699_v58 }
 0x115   : > { %v4082_v47 = vpop.f32.mrf.mxu1  ;;  %4177 = vmatmul.mubr.bf16.vlgmr.msra.gmra.mxu1 %v4754_v56 }
 0x116   : > { %v5179_v48 = vadd.f32 %v4082_v47, %v3680_v13  ;;  %4180 = vmatprep.mubr.bf16.mxu1 %v4757_v57 }
 0x117   : > { %v1744_v50 = vpop.f32.mrf.mxu1 }
 0x118   : > { %v5184_v41 = vadd.f32 %v5141_v22, %v1744_v50 }
 0x119   : > { %v4083_v10 = vpop.f32.mrf.mxu1  ;;  %v3702_v56 = vpop.f32.mrf.mxu0  ;;  %2586 = vmatmul.mubr.bf16.gmra.mxu0 %v4948_v39 }
 0x11a   : > { %v5186_v9 = vadd.f32 %v4083_v10, %v3683_v35  ;;  %2593 = vmatprep.mubr.bf16.mxu0 %v5001_v40 }
 0x11b   : > { %v1747_v5 = vpop.f32.mrf.mxu1  ;;  %v3703_v31 = vpop.f32.mrf.mxu0 }
 0x11c   : > { %v5189_v36 = vadd.f32 %v5145_v25, %v1747_v5  ;;  %v3704_v35 = vadd.f32 %v3703_v31, %v3702_v56 }
 0x11d   : > { %v4086_v13 = vpop.f32.mrf.mxu1  ;;  %4181 = vmatmul.mubr.bf16.gmra.mxu1 %v4810_v26  ;;  %v3705_v29 = vpop.f32.mrf.mxu0 }
 0x11e   : > { %v5193_v57 = vadd.f32 %v4086_v13, %v3692_v46  ;;  %4184 = vmatprep.mubr.bf16.mxu1 %v4816_v55 }
 0x11f   : > { %v1760_v22 = vpop.f32.mrf.mxu1  ;;  %v3706_v32 = vpop.f32.mrf.mxu0 }
 0x120   : > { %v5197_v62 = vadd.f32 %v3686_v18, %v1760_v22  ;;  %v3707_v39 = vadd.f32 %v3706_v32, %v3705_v29 }
 0x121   : > { %v4087_v25 = vpop.f32.mrf.mxu1  ;;  %v3708_v26 = vpop.f32.mrf.mxu0  ;;  %2594 = vmatmul.mubr.bf16.gmra.mxu0 %v4967_v8 }
 0x122   : > { %v5199_v16 = vadd.f32 %v4087_v25, %v3695_v15  ;;  %2601 = vmatprep.mubr.bf16.mxu0 %v4569_v51 }
 0x123   : > { %v1763_v45 = vpop.f32.mrf.mxu1  ;;  %v3709_v40 = vpop.f32.mrf.mxu0 }
 0x124   : > { %v5201_v61 = vadd.f32 %v3689_v17, %v1763_v45  ;;  %v3710_v15 = vadd.f32 %v3709_v40, %v3708_v26 }
 0x125   : > { %v4090_v46 = vpop.f32.mrf.mxu1  ;;  %4185 = vmatmul.mubr.bf16.gmra.mxu1 %v4865_v37  ;;  %v3711_v0 = vpop.f32.mrf.mxu0 }
 0x126   : > { %v5205_v55 = vadd.f32 %v4090_v46, %v3704_v35  ;;  %4188 = vmatprep.mubr.bf16.mxu1 %v4903_v60 }
 0x127   : > { %v1776_v18 = vpop.f32.mrf.mxu1  ;;  %v3712_v58 = vpop.f32.mrf.mxu0 }
 0x128   : > { %v5209_v49 = vadd.f32 %v3698_v34, %v1776_v18  ;;  %v3713_v8 = vadd.f32 %v3712_v58, %v3711_v0 }
 0x129   : > { %v4091_v17 = vpop.f32.mrf.mxu1  ;;  %v3714_v37 = vpop.f32.mrf.mxu0  ;;  %2602 = vmatmul.mubr.bf16.gmra.mxu0 %v4539_v24 }
 0x12a   : > { %v5211_v47 = vadd.f32 %v4091_v17, %v3707_v39  ;;  %2609 = vmatprep.mubr.bf16.mxu0 %v4606_v27 }
 0x12b   : > { %v1779_v50 = vpop.f32.mrf.mxu1  ;;  %v3715_v51 = vpop.f32.mrf.mxu0 }
 0x12c   : > { %v5213_v42 = vadd.f32 %v3701_v7, %v1779_v50  ;;  %v3716_v34 = vadd.f32 %v3715_v51, %v3714_v37 }
 0x12d   : > { %v4094_v10 = vpop.f32.mrf.mxu1  ;;  %4189 = vmatmul.mubr.bf16.gmra.mxu1 %v4911_v28  ;;  %v3717_v56 = vpop.f32.mrf.mxu0 }
 0x12e   : > { %4192 = vmatprep.mubr.bf16.mxu1 %v4939_v19  ;;  %v5221_v31 = vadd.f32 %v4094_v10, %v3716_v34 }
 0x12f   : > { %v1792_v60 = vpop.f32.mrf.mxu1  ;;  %v3718_v7 = vpop.f32.mrf.mxu0 }
 0x130   : > { %v5219_v5 = vadd.f32 %v3710_v15, %v1792_v60  ;;  %v3719_v35 = vadd.f32 %v3718_v7, %v3717_v56 }
 0x131   : > { %v4095_v13 = vpop.f32.mrf.mxu1  ;;  %v3720_v24 = vpop.f32.mrf.mxu0  ;;  %2610 = vmatmul.mubr.bf16.gmra.mxu0 %v4576_v53 }
 0x132   : > { %v5227_v27 = vadd.f32 %v4095_v13, %v3719_v35  ;;  %2617 = vmatprep.mubr.bf16.mxu0 %v5700_v44  ;;  %v5701_v44 = vld [vmem:[#allocation3_spill] sm:$0xff] }
 0x133   : > { %v1795_v22 = vpop.f32.mrf.mxu1  ;;  %v3721_v19 = vpop.f32.mrf.mxu0 }
 0x134   : > { %v5223_v29 = vadd.f32 %v3713_v8, %v1795_v22  ;;  %v3722_v32 = vadd.f32 %v3721_v19, %v3720_v24 }
 0x135   : > { %v4098_v28 = vpop.f32.mrf.mxu1  ;;  %4193 = vmatmul.mubr.bf16.gmra.mxu1 %v4962_v20  ;;  %v3723_v45 = vpop.f32.mrf.mxu0 }
 0x136   : > { %4196 = vmatprep.mubr.bf16.mxu1 %v4979_v14 }
 0x137   : > { %v1808_v25 = vpop.f32.mrf.mxu1  ;;  %v3724_v46 = vpop.f32.mrf.mxu0 }
 0x138   : > { %v5231_v26 = vadd.f32 %v3722_v32, %v1808_v25  ;;  %v3725_v18 = vadd.f32 %v3724_v46, %v3723_v45 }
 0x139   : > { %v4099_v39 = vpop.f32.mrf.mxu1  ;;  %v3726_v15 = vpop.f32.mrf.mxu0  ;;  %2618 = vmatmul.mubr.bf16.gmra.mxu0 %v4660_v23 }
 0x13a   : > { %2625 = vmatprep.mubr.bf16.mxu0 %v5701_v44 }
 0x13b   : > { %v1811_v40 = vpop.f32.mrf.mxu1  ;;  %v3727_v14 = vpop.f32.mrf.mxu0 }
 0x13c   : > { %v5235_v20 = vadd.f32 %v3725_v18, %v1811_v40  ;;  %v3728_v17 = vadd.f32 %v3727_v14, %v3726_v15 }
 0x13d   : > { %v4102_v53 = vpop.f32.mrf.mxu1  ;;  %4197 = vmatmul.mubr.bf16.gmra.mxu1 %v4972_v30  ;;  %v3729_v58 = vpop.f32.mrf.mxu0 }
 0x13e   : > { %4200 = vmatprep.mubr.bf16.mxu1 %v4997_v6  ;;  %v5239_v8 = vadd.f32 %v4098_v28, %v3728_v17 }
 0x13f   : > { %v1824_v0 = vpop.f32.mrf.mxu1  ;;  %v3730_v37 = vpop.f32.mrf.mxu0 }
 0x140   : > { %v3731_v51 = vadd.f32 %v3730_v37, %v3729_v58 }
 0x141   : > { %v4103_v50 = vpop.f32.mrf.mxu1  ;;  %v3732_v60 = vpop.f32.mrf.mxu0  ;;  %2626 = vmatmul.mubr.bf16.gmra.mxu0 %v4707_v59 }
 0x142   : > { %v5243_v30 = vadd.f32 %v4099_v39, %v3731_v51  ;;  %2633 = vmatprep.mubr.bf16.mxu0 %v5017_v3 }
 0x143   : > { %v1827_v10 = vpop.f32.mrf.mxu1  ;;  %v3733_v34 = vpop.f32.mrf.mxu0 }
 0x144   : > { %v3734_v13 = vadd.f32 %v3733_v34, %v3732_v60 }
 0x145   : > { %v4106_v23 = vpop.f32.mrf.mxu1  ;;  %4201 = vmatmul.mubr.bf16.gmra.mxu1 %v5004_v43  ;;  %v3735_v22 = vpop.f32.mrf.mxu0 }
 0x146   : > { %v5246_v6 = vadd.f32 %v4106_v23, %v5153_v2  ;;  %4204 = vmatprep.mubr.bf16.mxu1 %v5014_v33  ;;  %v5253_v59 = vadd.f32 %v3734_v13, %v1824_v0 }
 0x147   : > { %v1840_v56 = vpop.f32.mrf.mxu1  ;;  %v3736_v24 = vpop.f32.mrf.mxu0 }
 0x148   : > { %v5251_v7 = vadd.f32 %v5143_v4, %v1840_v56  ;;  %v3737_v28 = vadd.f32 %v3736_v24, %v3735_v22 }
 0x149   : > { %v4107_v35 = vpop.f32.mrf.mxu1  ;;  %v3738_v33 = vpop.f32.mrf.mxu0  ;;  %2634 = vmatmul.mubr.bf16.gmra.mxu0 %v4976_v54 }
 0x14a   : > { %v5256_v43 = vadd.f32 %v4107_v35, %v5155_v63  ;;  %v5263_v4 = vadd.f32 %v3737_v28, %v1827_v10 }
 0x14b   : > { %v1843_v2 = vpop.f32.mrf.mxu1  ;;  %v3739_v32 = vpop.f32.mrf.mxu0 }
 0x14c   : > { %v5259_v3 = vadd.f32 %v5147_v12, %v1843_v2  ;;  %v3740_v45 = vadd.f32 %v3739_v32, %v3738_v33 }
 0x14d   : > { %v4110_v19 = vpop.f32.mrf.mxu1  ;;  %4205 = vmatmul.mubr.bf16.gmra.mxu1 %v5020_v52  ;;  %v3741_v46 = vpop.f32.mrf.mxu0 }
 0x14e   : > { %v5266_v25 = vadd.f32 %v4110_v19, %v5173_v11  ;;  %v5271_v40 = vadd.f32 %v4102_v53, %v3740_v45 }
 0x14f   : > { %v1856_v63 = vpop.f32.mrf.mxu1  ;;  %v3742_v54 = vpop.f32.mrf.mxu0 }
 0x150   : > { %v5269_v39 = vadd.f32 %v5165_v21, %v1856_v63  ;;  %v3743_v15 = vadd.f32 %v3742_v54, %v3741_v46 }
 0x151   : > { %v4111_v12 = vpop.f32.mrf.mxu1  ;;  %v4130_v14 = vpop.f32.mrf.mxu0 }
 0x152   : > { %v5274_v18 = vadd.f32 %v4111_v12, %v5175_v1  ;;  %v5279_v0 = vadd.f32 %v4103_v50, %v3743_v15 }
 0x153   : > { %v1859_v52 = vpop.f32.mrf.mxu1  ;;  %v2210_v21 = vpop.f32.mrf.mxu0 }
 0x154   : > { %v5277_v44 = vadd.f32 %v5167_v38, %v1859_v52 }
 0x155   : > { %v3808_v11 = vpop.f32.mrf.mxu1  ;;  %v4131_v10 = vpop.f32.mrf.mxu0 }
 0x157   : > { %v3809_v17 = vpop.f32.mrf.mxu1  ;;  %v2213_v1 = vpop.f32.mrf.mxu0 }
 0x158   : > { %v3810_v58 = vadd.f32 %v3809_v17, %v3808_v11 }
 0x159   : > { %v3811_v37 = vpop.f32.mrf.mxu1  ;;  %v4134_v56 = vpop.f32.mrf.mxu0 }
 0x15a   : > { %v2050_v53 = vadd.f32 %v3810_v58, %v5184_v41 }
 0x15b   : > { %v3812_v51 = vpop.f32.mrf.mxu1  ;;  %v2226_v22 = vpop.f32.mrf.mxu0 }
 0x15c   : > { %v5282_v60 = vadd.f32 %v2210_v21, %v2050_v53  ;;  %v3813_v23 = vadd.f32 %v3812_v51, %v3811_v37 }
 0x15d   : > { %v3814_v34 = vpop.f32.mrf.mxu1  ;;  %v4135_v2 = vpop.f32.mrf.mxu0 }
 0x15e   : > { %v2053_v38 = vadd.f32 %v3813_v23, %v5189_v36 }
 0x15f   : > { %v3815_v13 = vpop.f32.mrf.mxu1  ;;  %v2229_v41 = vpop.f32.mrf.mxu0 }
 0x160   : > { %v5285_v50 = vadd.f32 %v2213_v1, %v2053_v38  ;;  %v3816_v35 = vadd.f32 %v3815_v13, %v3814_v34 }
 0x161   : > { %v3817_v24 = vpop.f32.mrf.mxu1  ;;  %v4138_v45 = vpop.f32.mrf.mxu0 }
 0x162   : > { %v2058_v28 = vadd.f32 %v3816_v35, %v5179_v48 }
 0x163   : > { %v3818_v33 = vpop.f32.mrf.mxu1  ;;  %v2242_v36 = vpop.f32.mrf.mxu0 }
 0x164   : > { %v3819_v19 = vadd.f32 %v3818_v33, %v3817_v24  ;;  %v5288_v32 = vadd.f32 %v4130_v14, %v2058_v28 }
 0x165   : > { %v3820_v63 = vpop.f32.mrf.mxu1  ;;  %v4139_v11 = vpop.f32.mrf.mxu0 }
 0x166   : > { %v2061_v46 = vadd.f32 %v3819_v19, %v5186_v9 }
 0x167   : > { %v3821_v12 = vpop.f32.mrf.mxu1  ;;  %v2245_v48 = vpop.f32.mrf.mxu0 }
 0x168   : > { %v3822_v54 = vadd.f32 %v3821_v12, %v3820_v63  ;;  %v5291_v52 = vadd.f32 %v4131_v10, %v2061_v46 }
 0x169   : > { %v3823_v15 = vpop.f32.mrf.mxu1  ;;  %v5296_v53 = vpop.f32.mrf.mxu0 }
 0x16a   : > { %v2066_v17 = vadd.f32 %v3822_v54, %v5197_v62 }
 0x16b   : > { %v3824_v21 = vpop.f32.mrf.mxu1  ;;  %v2258_v1 = vpop.f32.mrf.mxu0 }
 0x16c   : > { %v3825_v58 = vadd.f32 %v3824_v21, %v3823_v15  ;;  %v5294_v37 = vadd.f32 %v2226_v22, %v2066_v17 }
 0x16d   : > { %v3826_v14 = vpop.f32.mrf.mxu1  ;;  %v5301_v38 = vpop.f32.mrf.mxu0 }
 0x16e   : > { %v2069_v51 = vadd.f32 %v3825_v58, %v5201_v61 }
 0x16f   : > { %v3827_v9 = vpop.f32.mrf.mxu1  ;;  %v2261_v35 = vpop.f32.mrf.mxu0 }
 0x170   : > { %v3828_v23 = vadd.f32 %v3827_v9, %v3826_v14  ;;  %v5299_v34 = vadd.f32 %v2229_v41, %v2069_v51 }
 0x171   : > { %v3829_v10 = vpop.f32.mrf.mxu1  ;;  %v5306_v33 = vpop.f32.mrf.mxu0 }
 0x172   : > { %v2074_v62 = vadd.f32 %v3828_v23, %v5193_v57 }
 0x173   : > { %v3830_v13 = vpop.f32.mrf.mxu1  ;;  %v5309_v63 = vpop.f32.mrf.mxu0 }
 0x174   : > { %v3831_v24 = vadd.f32 %v3830_v13, %v3829_v10  ;;  %v5304_v22 = vadd.f32 %v4134_v56, %v2074_v62 }
 0x175   : > { %v3832_v28 = vpop.f32.mrf.mxu1  ;;  %v5313_v54 = vpop.f32.mrf.mxu0 }
 0x176   : > { %v2077_v61 = vadd.f32 %v3831_v24, %v5199_v16 }
 0x177   : > { %v3833_v19 = vpop.f32.mrf.mxu1  ;;  %v5316_v17 = vpop.f32.mrf.mxu0 }
 0x178   : > { %v3834_v41 = vadd.f32 %v3833_v19, %v3832_v28  ;;  %v5311_v46 = vadd.f32 %v4135_v2, %v2077_v61 }
 0x179   : > { %v3835_v12 = vpop.f32.mrf.mxu1  ;;  %v5320_v14 = vpop.f32.mrf.mxu0 }
 0x17a   : > { %v2082_v57 = vadd.f32 %v3834_v41, %v5209_v49 }
 0x17b   : > { %v3836_v15 = vpop.f32.mrf.mxu1  ;;  %v5323_v9 = vpop.f32.mrf.mxu0 }
 0x17c   : > { %v3837_v56 = vadd.f32 %v3836_v15, %v3835_v12  ;;  %v5318_v21 = vadd.f32 %v2242_v36, %v2082_v57 }
 0x17d   : > { %v3838_v58 = vpop.f32.mrf.mxu1  ;;  %v5327_v62 = vpop.f32.mrf.mxu0 }
 0x17e   : > { %v2085_v16 = vadd.f32 %v3837_v56, %v5213_v42 }
 0x17f   : > { %v3839_v51 = vpop.f32.mrf.mxu1  ;;  %v5330_v24 = vpop.f32.mrf.mxu0 }
 0x180   : > { %v3840_v2 = vadd.f32 %v3839_v51, %v3838_v58  ;;  %v5325_v23 = vadd.f32 %v2245_v48, %v2085_v16 }
 0x181   : > { %v3841_v10 = vpop.f32.mrf.mxu1  ;;  %v5334_v19 = vpop.f32.mrf.mxu0 }
 0x182   : > { %v2090_v49 = vadd.f32 %v3840_v2, %v5205_v55 }
 0x183   : > { %v3842_v13 = vpop.f32.mrf.mxu1  ;;  %v5337_v12 = vpop.f32.mrf.mxu0 }
 0x184   : > { %v3843_v36 = vadd.f32 %v3842_v13, %v3841_v10  ;;  %v5332_v28 = vadd.f32 %v4138_v45, %v2090_v49 }
 0x185   : > { %v3844_v61 = vpop.f32.mrf.mxu1  ;;  %v5341_v56 = vpop.f32.mrf.mxu0 }
 0x186   : > { %v2093_v42 = vadd.f32 %v3843_v36, %v5211_v47 }
 0x187   : > { %v3845_v41 = vpop.f32.mrf.mxu1  ;;  %v5344_v16 = vpop.f32.mrf.mxu0 }
 0x188   : > { %v3846_v48 = vadd.f32 %v3845_v41, %v3844_v61  ;;  %v5339_v57 = vadd.f32 %v4139_v11, %v2093_v42 }
 0x189   : > { %v3847_v15 = vpop.f32.mrf.mxu1  ;;  %v5348_v10 = vpop.f32.mrf.mxu0 }
 0x18a   : > { %v2098_v55 = vadd.f32 %v3846_v48, %v5219_v5  ;;  %5702 = vst [vmem:[#allocation2_spill] sm:$0xff] %v5348_v10 }
 0x18b   : > { %v3848_v58 = vpop.f32.mrf.mxu1  ;;  %v5351_v13 = vpop.f32.mrf.mxu0 }
 0x18c   : > { %v3849_v45 = vadd.f32 %v3848_v58, %v3847_v15  ;;  %v5346_v51 = vadd.f32 %v2258_v1, %v2098_v55 }
 0x18d   : > { %v3850_v2 = vpop.f32.mrf.mxu1  ;;  %v5355_v42 = vpop.f32.mrf.mxu0 }
 0x18e   : > { %v2101_v47 = vadd.f32 %v3849_v45, %v5223_v29  ;;  %5703 = vst [vmem:[#allocation3_spill] sm:$0xff] %v5355_v42 }
 0x18f   : > { %v3851_v49 = vpop.f32.mrf.mxu1  ;;  %v5358_v48 = vpop.f32.mrf.mxu0 }
 0x190   : > { %v3852_v11 = vadd.f32 %v3851_v49, %v3850_v2  ;;  %v5353_v36 = vadd.f32 %v2261_v35, %v2101_v47 }
 0x191   : > { %v3853_v61 = vpop.f32.mrf.mxu1  ;;  %v3944_v29 = vpop.f32.mrf.mxu0 }
 0x192   : > { %v2106_v5 = vadd.f32 %v3852_v11, %v5221_v31 }
 0x193   : > { %v3854_v41 = vpop.f32.mrf.mxu1  ;;  %v3945_v2 = vpop.f32.mrf.mxu0 }
 0x194   : > { %v3855_v1 = vadd.f32 %v3854_v41, %v3853_v61  ;;  %v5361_v15 = vadd.f32 %v5296_v53, %v2106_v5  ;;  %v5364_v47 = vadd.f32 %v3945_v2, %v3944_v29 }
 0x195   : > { %v3856_v55 = vpop.f32.mrf.mxu1  ;;  %v5369_v11 = vpop.f32.mrf.mxu0 }
 0x196   : > { %v2109_v58 = vadd.f32 %v3855_v1, %v5227_v27 }
 0x197   : > { %v3857_v45 = vpop.f32.mrf.mxu1  ;;  %v5372_v53 = vpop.f32.mrf.mxu0 }
 0x198   : > { %v3858_v35 = vadd.f32 %v3857_v45, %v3856_v55  ;;  %v5367_v49 = vadd.f32 %v5301_v38, %v2109_v58 }
 0x199   : > { %v3859_v31 = vpop.f32.mrf.mxu1  ;;  %v5377_v1 = vpop.f32.mrf.mxu0 }
 0x19a   : > { %v2114_v61 = vadd.f32 %v3858_v35, %v5231_v26 }
 0x19b   : > { %v3860_v41 = vpop.f32.mrf.mxu1  ;;  %v5380_v38 = vpop.f32.mrf.mxu0 }
 0x19c   : > { %v3861_v5 = vadd.f32 %v3860_v41, %v3859_v31  ;;  %v5375_v42 = vadd.f32 %v5309_v63, %v2114_v61 }
 0x19d   : > { %v3862_v27 = vpop.f32.mrf.mxu1  ;;  %v5385_v2 = vpop.f32.mrf.mxu0 }
 0x19e   : > { %v2117_v55 = vadd.f32 %v3861_v5, %v5235_v20 }
 0x19f   : > { %v3863_v29 = vpop.f32.mrf.mxu1  ;;  %v5388_v63 = vpop.f32.mrf.mxu0 }
 0x1a0   : > { %v3864_v58 = vadd.f32 %v3863_v29, %v3862_v27  ;;  %v5383_v45 = vadd.f32 %v5316_v17, %v2117_v55 }
 0x1a1   : > { %v3865_v26 = vpop.f32.mrf.mxu1  ;;  %v5393_v5 = vpop.f32.mrf.mxu0 }
 0x1a2   : > { %5704 = vst [vmem:[#allocation4_spill] sm:$0xff] %v5383_v45  ;;  %v2122_v35 = vadd.f32 %v3864_v58, %v5239_v8 }
 0x1a3   : > { %v3866_v31 = vpop.f32.mrf.mxu1  ;;  %v5396_v17 = vpop.f32.mrf.mxu0 }
 0x1a4   : > { %v3867_v61 = vadd.f32 %v3866_v31, %v3865_v26  ;;  %v5391_v41 = vadd.f32 %v5306_v33, %v2122_v35 }
 0x1a5   : > { %v3868_v20 = vpop.f32.mrf.mxu1  ;;  %v5401_v58 = vpop.f32.mrf.mxu0 }
 0x1a6   : > { %v2125_v27 = vadd.f32 %v3867_v61, %v5243_v30 }
 0x1a7   : > { %v3869_v29 = vpop.f32.mrf.mxu1  ;;  %v5404_v33 = vpop.f32.mrf.mxu0 }
 0x1a8   : > { %v3870_v55 = vadd.f32 %v3869_v29, %v3868_v20  ;;  %v5399_v10 = vadd.f32 %v5313_v54, %v2125_v27 }
 0x1a9   : > { %v3871_v8 = vpop.f32.mrf.mxu1  ;;  %v5409_v61 = vpop.f32.mrf.mxu0 }
 0x1aa   : > { %5705 = vst [vmem:[#allocation5_spill] sm:$0xff] %v5399_v10  ;;  %v2130_v26 = vadd.f32 %v3870_v55, %v5253_v59 }
 0x1ab   : > { %v3872_v31 = vpop.f32.mrf.mxu1  ;;  %v5412_v54 = vpop.f32.mrf.mxu0 }
 0x1ac   : > { %v3873_v35 = vadd.f32 %v3872_v31, %v3871_v8  ;;  %v5407_v45 = vadd.f32 %v5323_v9, %v2130_v26 }
 0x1ad   : > { %v3874_v30 = vpop.f32.mrf.mxu1  ;;  %v5417_v55 = vpop.f32.mrf.mxu0 }
 0x1ae   : > { %5706 = vst [vmem:[#allocation6_spill] sm:$0xff] %v5407_v45  ;;  %v2133_v20 = vadd.f32 %v3873_v35, %v5263_v4 }
 0x1af   : > { %v3875_v29 = vpop.f32.mrf.mxu1  ;;  %v5420_v9 = vpop.f32.mrf.mxu0 }
 0x1b0   : > { %v3876_v27 = vadd.f32 %v3875_v29, %v3874_v30  ;;  %v5415_v10 = vadd.f32 %v5330_v24, %v2133_v20 }
 0x1b1   : > { %v3877_v59 = vpop.f32.mrf.mxu1  ;;  %v5425_v35 = vpop.f32.mrf.mxu0 }
 0x1b2   : > { %5707 = vst [vmem:[#allocation7_spill] sm:$0xff] %v5415_v10  ;;  %v2138_v8 = vadd.f32 %v3876_v27, %v5271_v40 }
 0x1b3   : > { %v3878_v31 = vpop.f32.mrf.mxu1  ;;  %v5428_v24 = vpop.f32.mrf.mxu0 }
 0x1b4   : > { %v3879_v26 = vadd.f32 %v3878_v31, %v3877_v59  ;;  %v5423_v45 = vadd.f32 %v5320_v14, %v2138_v8 }
 0x1b5   : > { %v3880_v4 = vpop.f32.mrf.mxu1  ;;  %v5433_v27 = vpop.f32.mrf.mxu0 }
 0x1b6   : > { %5708 = vst [vmem:[#allocation8_spill] sm:$0xff] %v5423_v45  ;;  %v2141_v30 = vadd.f32 %v3879_v26, %v5279_v0 }
 0x1b7   : > { %v3881_v29 = vpop.f32.mrf.mxu1  ;;  %v5436_v14 = vpop.f32.mrf.mxu0 }
 0x1b8   : > { %v3882_v20 = vadd.f32 %v3881_v29, %v3880_v4  ;;  %v5431_v10 = vadd.f32 %v5327_v62, %v2141_v30 }
 0x1b9   : > { %v3883_v40 = vpop.f32.mrf.mxu1  ;;  %v5441_v26 = vpop.f32.mrf.mxu0 }
 0x1ba   : > { %5709 = vst [vmem:[#allocation9_spill] sm:$0xff] %v5431_v10  ;;  %v2146_v59 = vadd.f32 %v3882_v20, %v5251_v7 }
 0x1bb   : > { %v3884_v31 = vpop.f32.mrf.mxu1  ;;  %v5444_v62 = vpop.f32.mrf.mxu0 }
 0x1bc   : > { %v3885_v8 = vadd.f32 %v3884_v31, %v3883_v40  ;;  %v5439_v45 = vadd.f32 %v5337_v12, %v2146_v59 }
 0x1bd   : > { %v3886_v0 = vpop.f32.mrf.mxu1  ;;  %v5449_v20 = vpop.f32.mrf.mxu0 }
 0x1be   : > { %5710 = vst [vmem:[#allocation10_spill] sm:$0xff] %v5439_v45  ;;  %v2149_v4 = vadd.f32 %v3885_v8, %v5259_v3 }
 0x1bf   : > { %v3887_v29 = vpop.f32.mrf.mxu1  ;;  %v5452_v12 = vpop.f32.mrf.mxu0 }
 0x1c0   : > { %v3888_v30 = vadd.f32 %v3887_v29, %v3886_v0  ;;  %v5447_v10 = vadd.f32 %v5344_v16, %v2149_v4 }
 0x1c1   : > { %v3889_v7 = vpop.f32.mrf.mxu1  ;;  %v5457_v8 = vpop.f32.mrf.mxu0 }
 0x1c2   : > { %5711 = vst [vmem:[#allocation11_spill] sm:$0xff] %v5447_v10  ;;  %v2154_v40 = vadd.f32 %v3888_v30, %v5246_v6 }
 0x1c3   : > { %v3890_v31 = vpop.f32.mrf.mxu1  ;;  %v5460_v16 = vpop.f32.mrf.mxu0 }
 0x1c4   : > { %v3891_v59 = vadd.f32 %v3890_v31, %v3889_v7  ;;  %v5455_v45 = vadd.f32 %v5334_v19, %v2154_v40 }
 0x1c5   : > { %v3892_v3 = vpop.f32.mrf.mxu1  ;;  %v5465_v30 = vpop.f32.mrf.mxu0 }
 0x1c6   : > { %5712 = vst [vmem:[#allocation12_spill] sm:$0xff] %v5455_v45  ;;  %v2157_v0 = vadd.f32 %v3891_v59, %v5256_v43 }
 0x1c7   : > { %v3893_v29 = vpop.f32.mrf.mxu1  ;;  %v5468_v19 = vpop.f32.mrf.mxu0 }
 0x1c8   : > { %v3894_v4 = vadd.f32 %v3893_v29, %v3892_v3  ;;  %v5463_v10 = vadd.f32 %v5341_v56, %v2157_v0 }
 0x1c9   : > { %v3895_v6 = vpop.f32.mrf.mxu1  ;;  %v5473_v59 = vpop.f32.mrf.mxu0 }
 0x1ca   : > { %5713 = vst [vmem:[#allocation13_spill] sm:$0xff] %v5463_v10  ;;  %v2162_v7 = vadd.f32 %v3894_v4, %v5269_v39 }
 0x1cb   : > { %v3896_v31 = vpop.f32.mrf.mxu1  ;;  %v5476_v56 = vpop.f32.mrf.mxu0 }
 0x1cc   : > { %v3897_v40 = vadd.f32 %v3896_v31, %v3895_v6  ;;  %v5471_v45 = vadd.f32 %v5351_v13, %v2162_v7  ;;  %v3952_v31 = vadd.f32 %v5380_v38, %v5377_v1 }
 0x1cd   : > { %v3898_v43 = vpop.f32.mrf.mxu1  ;;  %v5481_v4 = vpop.f32.mrf.mxu0 }
 0x1ce   : > { %5714 = vst [vmem:[#allocation14_spill] sm:$0xff] %v5471_v45  ;;  %v2165_v3 = vadd.f32 %v3897_v40, %v5277_v44 }
 0x1cf   : > { %v3899_v29 = vpop.f32.mrf.mxu1  ;;  %v5486_v7 = vpop.f32.mrf.mxu0 }
 0x1d0   : > { %v3900_v0 = vadd.f32 %v3899_v29, %v3898_v43  ;;  %v5479_v10 = vadd.f32 %v5358_v48, %v2165_v3 }
 0x1d1   : > { %v3901_v39 = vpop.f32.mrf.mxu1  ;;  %v5490_v40 = vpop.f32.mrf.mxu0 }
 0x1d2   : > { %5715 = vst [vmem:[#allocation15_spill] sm:$0xff] %v5479_v10  ;;  %v5484_v6 = vadd.f32 %v3900_v0, %v5266_v25  ;;  %v3955_v25 = vadd.f32 %v5388_v63, %v5385_v2  ;;  %v3964_v63 = vadd.f32 %v5412_v54, %v5409_v61 }
 0x1d3   : > { %v3902_v13 = vpop.f32.mrf.mxu1  ;;  %v5495_v3 = vpop.f32.mrf.mxu0 }
 0x1d4   : > { %5716 = vst [vmem:[#allocation16_spill] sm:$0xff] %v5484_v6  ;;  %v3903_v44 = vadd.f32 %v3902_v13, %v3901_v39 }
 0x1d5   : > { %v4178_v45 = vpop.f32.mrf.mxu1  ;;  %v5500_v10 = vpop.f32.mrf.mxu0 }
 0x1d6   : > { %v5493_v43 = vadd.f32 %v3903_v44, %v5274_v18  ;;  %v2685_v48 = vadd.f32 %v4178_v45, %v3952_v31  ;;  %v3949_v18 = vadd.f32 %v5372_v53, %v5369_v11  ;;  %v5509_v45 = vld [vmem:[%s5690_s6] ss:$0 sm:$0xff] }
 0x1d7   : > { %v2676_v29 = vpop.f32.mrf.mxu1  ;;  %v5511_v2 = vpop.f32.mrf.mxu0 }
 0x1d8   : > { %v2677_v0 = vadd.f32 %v5364_v47, %v2676_v29  ;;  %v2805_v1 = vadd.f32 %v2685_v48, %v5288_v32  ;;  %v3958_v48 = vadd.f32 %v5396_v17, %v5393_v5  ;;  %v3967_v29 = vadd.f32 %v5420_v9, %v5417_v55 }
 0x1d9   : > { %v4179_v6 = vpop.f32.mrf.mxu1 }
 0x1da   : > { %v2803_v38 = vadd.f32 %v2677_v0, %v5282_v60  ;;  %v2688_v39 = vadd.f32 %v4179_v6, %v3955_v25  ;;  %v5516_v60 = vpop.f32.mrf.mxu0  ;;  %v2844_v31 = vadd.f32 %v5509_v45, %v2805_v1 }
 0x1db   : > { %v2679_v47 = vpop.f32.mrf.mxu1 }
 0x1dc   : > { %v2806_v32 = vadd.f32 %v2688_v39, %v5291_v52  ;;  %v2680_v13 = vadd.f32 %v3949_v18, %v2679_v47  ;;  %v2842_v11 = vadd.f32 %v5509_v45, %v2803_v38  ;;  %v5531_v61 = vpop.f32.mrf.mxu0  ;;  %v3961_v38 = vadd.f32 %v5404_v33, %v5401_v58 }
 0x1dd   : > { %v4182_v6 = vpop.f32.mrf.mxu1  ;;  %v2913_v33 = vmul.f32 %v2844_v31, %v2844_v31 }
 0x1de   : > { %v2845_v53 = vadd.f32 %v5509_v45, %v2806_v32  ;;  %v2701_v44 = vadd.f32 %v4182_v6, %v3964_v63  ;;  %v2804_v52 = vadd.f32 %v2680_v13, %v5285_v50  ;;  %v5536_v5 = vpop.f32.mrf.mxu0  ;;  %v2911_v39 = vmul.f32 %v2842_v11, %v2842_v11 }
 0x1df   : > { %v2692_v54 = vpop.f32.mrf.mxu1  ;;  %v3976_v6 = vadd.f32 %v5444_v62, %v5441_v26 }
 0x1e0   : > { %v3554_v25 = vpack.c.bf16 %v2845_v53, %v2844_v31  ;;  %v2843_v0 = vadd.f32 %v5509_v45, %v2804_v52  ;;  %v2693_v1 = vadd.f32 %v3958_v48, %v2692_v54  ;;  %v2809_v50 = vadd.f32 %v2701_v44, %v5304_v22  ;;  %v5543_v9 = vpop.f32.mrf.mxu0 }
 0x1e1   : > { %v4183_v17 = vpop.f32.mrf.mxu1  ;;  %v2914_v26 = vmul.f32 %v2845_v53, %v2845_v53 }
 0x1e2   : > { %3641 = vst [vmem:[%s5528_s17 + $0x8] sm:$0xff] %v3554_v25   ;;  %v2704_v18 = vadd.f32 %v4183_v17, %v3967_v29  ;;  %v2874_v47 = vadd.f32 %v2843_v0, %v2842_v11  ;;  %v2912_v63 = vmul.f32 %v2843_v0, %v2843_v0  ;;  %v3549_v32 = vpack.c.bf16 %v2843_v0, %v2842_v11  ;;  %v5550_v44 = vpop.f32.mrf.mxu0 }
 0x1e3   : > { %v2807_v55 = vadd.f32 %v2693_v1, %v5294_v37  ;;  %v2695_v13 = vpop.f32.mrf.mxu1  ;;  %v2848_v37 = vadd.f32 %v5509_v45, %v2809_v50 }
 0x1e4   : > { %v2810_v48 = vadd.f32 %v2704_v18, %v5311_v46  ;;  %v2696_v58 = vadd.f32 %v3961_v38, %v2695_v13  ;;  %v2875_v52 = vadd.f32 %v2874_v47, %v2844_v31  ;;  %v2943_v54 = vadd.f32 %v2912_v63, %v2911_v39  ;;  %3550 = vst [vmem:[%s5528_s17] sm:$0xff] %v3549_v32   ;;  %v5557_v1 = vpop.f32.mrf.mxu0 }
 0x1e5   : > { %v2846_v22 = vadd.f32 %v5509_v45, %v2807_v55  ;;  %v4186_v11 = vpop.f32.mrf.mxu1  ;;  %v3970_v46 = vadd.f32 %v5428_v24, %v5425_v35  ;;  %v3973_v38 = vadd.f32 %v5436_v14, %v5433_v27  ;;  %v3979_v39 = vadd.f32 %v5452_v12, %v5449_v20 }
 0x1e6   : > { %v2849_v29 = vadd.f32 %v5509_v45, %v2810_v48  ;;  %v2808_v25 = vadd.f32 %v2696_v58, %v5299_v34  ;;  %v2717_v0 = vadd.f32 %v4186_v11, %v3976_v6  ;;  %v2944_v62 = vadd.f32 %v2943_v54, %v2913_v33  ;;  %v5564_v63 = vpop.f32.mrf.mxu0 }
 0x1e7   : > { %v2876_v31 = vadd.f32 %v2875_v52, %v2845_v53  ;;  %v2708_v17 = vpop.f32.mrf.mxu1  ;;  %v2915_v47 = vmul.f32 %v2846_v22, %v2846_v22  ;;  %v3988_v58 = vadd.f32 %v5476_v56, %v5473_v59  ;;  %v2917_v54 = vmul.f32 %v2848_v37, %v2848_v37 }
 0x1e8   : > { %v3564_v50 = vpack.c.bf16 %v2849_v29, %v2848_v37  ;;  %v2847_v34 = vadd.f32 %v5509_v45, %v2808_v25  ;;  %v2945_v35 = vadd.f32 %v2944_v62, %v2914_v26  ;;  %v2709_v24 = vadd.f32 %v3970_v46, %v2708_v17  ;;  %v5569_v12 = vpop.f32.mrf.mxu0 }
 0x1e9   : > { %v2877_v18 = vadd.f32 %v2876_v31, %v2846_v22  ;;  %v4187_v53 = vpop.f32.mrf.mxu1  ;;  %v2813_v13 = vadd.f32 %v2717_v0, %v5332_v28  ;;  %v3982_v59 = vadd.f32 %v5460_v16, %v5457_v8 }
 0x1ea   : > { %3643 = vst [vmem:[%s5528_s17 + $0x18] sm:$0xff] %v3564_v50   ;;  %v2916_v32 = vmul.f32 %v2847_v34, %v2847_v34  ;;  %v3559_v55 = vpack.c.bf16 %v2847_v34, %v2846_v22  ;;  %v2720_v27 = vadd.f32 %v4187_v53, %v3979_v39  ;;  %v2946_v14 = vadd.f32 %v2945_v35, %v2915_v47  ;;  %v5576_v25 = vpop.f32.mrf.mxu0 }
 0x1eb   : > { %v2878_v6 = vadd.f32 %v2877_v18, %v2847_v34  ;;  %v2811_v20 = vadd.f32 %v2709_v24, %v5318_v21  ;;  %v2711_v48 = vpop.f32.mrf.mxu1  ;;  %v2852_v21 = vadd.f32 %v5509_v45, %v2813_v13  ;;  %v3991_v39 = vadd.f32 %v5486_v7, %v5481_v4 }
 0x1ec   : > { %3642 = vst [vmem:[%s5528_s17 + $0x10] sm:$0xff] %v3559_v55   ;;  %v2814_v33 = vadd.f32 %v2720_v27, %v5339_v57  ;;  %v2712_v52 = vadd.f32 %v3973_v38, %v2711_v48  ;;  %v2947_v22 = vadd.f32 %v2946_v14, %v2916_v32  ;;  %v2918_v57 = vmul.f32 %v2849_v29, %v2849_v29  ;;  %v4011_v31 = vpop.f32.mrf.mxu0 }
 0x1ed   : > { %v2879_v11 = vadd.f32 %v2878_v6, %v2848_v37  ;;  %v2850_v28 = vadd.f32 %v5509_v45, %v2811_v20  ;;  %v4190_v0 = vpop.f32.mrf.mxu1  ;;  %v3985_v38 = vadd.f32 %v5468_v19, %v5465_v30  ;;  %v4000_v13 = vadd.f32 %v5531_v61, %v5516_v60 }
 0x1ee   : > { %v2853_v46 = vadd.f32 %v5509_v45, %v2814_v33  ;;  %v2812_v26 = vadd.f32 %v2712_v52, %v5325_v23  ;;  %v2733_v62 = vadd.f32 %v4190_v0, %v3988_v58  ;;  %v2948_v56 = vadd.f32 %v2947_v22, %v2917_v54  ;;  %v5588_v16 = vpop.f32.mrf.mxu0 }
 0x1ef   : > { %v2880_v37 = vadd.f32 %v2879_v11, %v2849_v29  ;;  %v2724_v17 = vpop.f32.mrf.mxu1  ;;  %v2919_v18 = vmul.f32 %v2850_v28, %v2850_v28  ;;  %v2921_v6 = vmul.f32 %v2852_v21, %v2852_v21  ;;  %v3994_v60 = vadd.f32 %v5495_v3, %v5490_v40 }
 0x1f0   : > { %v3574_v50 = vpack.c.bf16 %v2853_v46, %v2852_v21  ;;  %v2851_v34 = vadd.f32 %v5509_v45, %v2812_v26  ;;  %v2949_v47 = vadd.f32 %v2948_v56, %v2918_v57  ;;  %v2725_v8 = vadd.f32 %v3982_v59, %v2724_v17  ;;  %v5593_v7 = vpop.f32.mrf.mxu0 }
 0x1f1   : > { %v2881_v23 = vadd.f32 %v2880_v37, %v2850_v28  ;;  %v4191_v35 = vpop.f32.mrf.mxu1  ;;  %v2817_v53 = vadd.f32 %v2733_v62, %v5361_v15  ;;  %v4003_v26 = vadd.f32 %v5543_v9, %v5536_v5 }
 0x1f2   : > { %3645 = vst [vmem:[%s5528_s17 + $0x28] sm:$0xff] %v3574_v50   ;;  %v2920_v29 = vmul.f32 %v2851_v34, %v2851_v34  ;;  %v3569_v24 = vpack.c.bf16 %v2851_v34, %v2850_v28  ;;  %v2736_v30 = vadd.f32 %v4191_v35, %v3991_v39  ;;  %v2950_v19 = vadd.f32 %v2949_v47, %v2919_v18  ;;  %v5600_v58 = vpop.f32.mrf.mxu0 }
 0x1f3   : > { %v2882_v32 = vadd.f32 %v2881_v23, %v2851_v34  ;;  %v2815_v4 = vadd.f32 %v2725_v8, %v5346_v51  ;;  %v2727_v55 = vpop.f32.mrf.mxu1  ;;  %v2856_v51 = vadd.f32 %v5509_v45, %v2817_v53  ;;  %v4012_v34 = vadd.f32 %v4011_v31, %v5576_v25  ;;  %v5717_v23 = vld [vmem:[#allocation5_spill] sm:$0xff] }
 0x1f4   : > { %3644 = vst [vmem:[%s5528_s17 + $0x20] sm:$0xff] %v3569_v24   ;;  %v2818_v27 = vadd.f32 %v2736_v30, %v5367_v49  ;;  %v2728_v14 = vadd.f32 %v3985_v38, %v2727_v55  ;;  %v2951_v48 = vadd.f32 %v2950_v19, %v2920_v29  ;;  %v2922_v49 = vmul.f32 %v2853_v46, %v2853_v46  ;;  %v5607_v28 = vpop.f32.mrf.mxu0 }
 0x1f5   : > { %v2883_v20 = vadd.f32 %v2882_v32, %v2852_v21  ;;  %v2854_v15 = vadd.f32 %v5509_v45, %v2815_v4  ;;  %v4194_v33 = vpop.f32.mrf.mxu1  ;;  %v3997_v21 = vadd.f32 %v5511_v2, %v5500_v10  ;;  %v2925_v8 = vmul.f32 %v2856_v51, %v2856_v51 }
 0x1f6   : > { %v2857_v52 = vadd.f32 %v5509_v45, %v2818_v27  ;;  %v2816_v54 = vadd.f32 %v2728_v14, %v5353_v36  ;;  %v2749_v11 = vadd.f32 %v4194_v33, %v4000_v13  ;;  %v2952_v61 = vadd.f32 %v2951_v48, %v2921_v6  ;;  %v5614_v56 = vpop.f32.mrf.mxu0 }
 0x1f7   : > { %v2884_v22 = vadd.f32 %v2883_v20, %v2853_v46  ;;  %v2740_v0 = vpop.f32.mrf.mxu1  ;;  %v2923_v57 = vmul.f32 %v2854_v15, %v2854_v15  ;;  %v4006_v25 = vadd.f32 %v5557_v1, %v5550_v44  ;;  %v4009_v6 = vadd.f32 %v5569_v12, %v5564_v63 }
 0x1f8   : > { %v3584_v62 = vpack.c.bf16 %v2857_v52, %v2856_v51  ;;  %v2855_v36 = vadd.f32 %v5509_v45, %v2816_v54  ;;  %v2953_v40 = vadd.f32 %v2952_v61, %v2922_v49  ;;  %v2741_v3 = vadd.f32 %v3994_v60, %v2740_v0  ;;  %v4020_v9 = vpop.f32.mrf.mxu0  ;;  %v5719_v49 = vld [vmem:[#allocation8_spill] sm:$0xff]  ;;  %v5720_v0 = vld [vmem:[#allocation6_spill] sm:$0xff] }
 0x1f9   : > { %v2885_v59 = vadd.f32 %v2884_v22, %v2854_v15  ;;  %v4195_v46 = vpop.f32.mrf.mxu1  ;;  %v2821_v38 = vadd.f32 %v2749_v11, %v5391_v41  ;;  %v2926_v31 = vmul.f32 %v2857_v52, %v2857_v52  ;;  %v4015_v20 = vadd.f32 %v5593_v7, %v5588_v16 }
 0x1fa   : > { %3647 = vst [vmem:[%s5528_s17 + $0x38] sm:$0xff] %v3584_v62   ;;  %v2924_v37 = vmul.f32 %v2855_v36, %v2855_v36  ;;  %v3579_v17 = vpack.c.bf16 %v2855_v36, %v2854_v15  ;;  %v2752_v10 = vadd.f32 %v4195_v46, %v4003_v26  ;;  %v2954_v2 = vadd.f32 %v2953_v40, %v2923_v57  ;;  %v4022_v53 = vpop.f32.mrf.mxu0  ;;  %v5721_v62 = vld [vmem:[#allocation9_spill] sm:$0xff] }
 0x1fb   : > { %v2886_v39 = vadd.f32 %v2885_v59, %v2855_v36  ;;  %v2819_v5 = vadd.f32 %v2741_v3, %v5375_v42  ;;  %v2743_v50 = vpop.f32.mrf.mxu1  ;;  %v2860_v30 = vadd.f32 %v5509_v45, %v2821_v38  ;;  %v5718_v42 = vld [vmem:[#allocation4_spill] sm:$0xff] }
 0x1fc   : > { %3646 = vst [vmem:[%s5528_s17 + $0x30] sm:$0xff] %v3579_v17   ;;  %v2822_v18 = vadd.f32 %v2752_v10, %v5717_v23  ;;  %v2744_v47 = vadd.f32 %v3997_v21, %v2743_v50  ;;  %v2955_v29 = vadd.f32 %v2954_v2, %v2924_v37  ;;  %v4023_v27 = vpop.f32.mrf.mxu0  ;;  %v5722_v2 = vld [vmem:[#allocation7_spill] sm:$0xff]  ;;  %v4018_v50 = vadd.f32 %v5607_v28, %v5600_v58 }
 0x1fd   : > { %v2887_v35 = vadd.f32 %v2886_v39, %v2856_v51  ;;  %v2858_v24 = vadd.f32 %v5509_v45, %v2819_v5  ;;  %v4198_v41 = vpop.f32.mrf.mxu1  ;;  %v4024_v26 = vadd.f32 %v4023_v27, %v4022_v53  ;;  %v2929_v57 = vmul.f32 %v2860_v30, %v2860_v30 }
 0x1fe   : > { %v2861_v19 = vadd.f32 %v5509_v45, %v2822_v18  ;;  %v2820_v32 = vadd.f32 %v2744_v47, %v5718_v42  ;;  %v2765_v4 = vadd.f32 %v4198_v41, %v4012_v34  ;;  %v2956_v55 = vadd.f32 %v2955_v29, %v2925_v8  ;;  %v4025_v1 = vpop.f32.mrf.mxu0 }
 0x1ff   : > { %v2888_v13 = vadd.f32 %v2887_v35, %v2857_v52  ;;  %v2756_v14 = vpop.f32.mrf.mxu1  ;;  %v2927_v51 = vmul.f32 %v2858_v24, %v2858_v24  ;;  %v4021_v35 = vadd.f32 %v4020_v9, %v5614_v56  ;;  %v5724_v56 = vld [vmem:[#allocation10_spill] sm:$0xff] }
 0x200   : > { %v3594_v48 = vpack.c.bf16 %v2861_v19, %v2860_v30  ;;  %v2859_v15 = vadd.f32 %v5509_v45, %v2820_v32  ;;  %v2957_v54 = vadd.f32 %v2956_v55, %v2926_v31  ;;  %v2757_v44 = vadd.f32 %v4006_v25, %v2756_v14  ;;  %v4026_v7 = vpop.f32.mrf.mxu0  ;;  %v5723_v31 = vld [vmem:[#allocation12_spill] sm:$0xff] }
 0x201   : > { %v2889_v33 = vadd.f32 %v2888_v13, %v2858_v24  ;;  %v4199_v11 = vpop.f32.mrf.mxu1  ;;  %v2825_v61 = vadd.f32 %v2765_v4, %v5719_v49  ;;  %v2930_v34 = vmul.f32 %v2861_v19, %v2861_v19  ;;  %v5726_v49 = vld [vmem:[#allocation11_spill] sm:$0xff] }
 0x202   : > { %3649 = vst [vmem:[%s5528_s17 + $0x48] sm:$0xff] %v3594_v48   ;;  %v2928_v52 = vmul.f32 %v2859_v15, %v2859_v15  ;;  %v3589_v60 = vpack.c.bf16 %v2859_v15, %v2858_v24  ;;  %v2768_v22 = vadd.f32 %v4199_v11, %v4015_v20  ;;  %v2958_v63 = vadd.f32 %v2957_v54, %v2927_v51  ;;  %v4028_v37 = vpop.f32.mrf.mxu0  ;;  %v5725_v20 = vld [vmem:[#allocation13_spill] sm:$0xff] }
 0x203   : > { %v2890_v12 = vadd.f32 %v2889_v33, %v2859_v15  ;;  %v2823_v16 = vadd.f32 %v2757_v44, %v5720_v0  ;;  %v2759_v21 = vpop.f32.mrf.mxu1  ;;  %v2864_v38 = vadd.f32 %v5509_v45, %v2825_v61  ;;  %v4027_v24 = vadd.f32 %v4026_v7, %v4025_v1 }
 0x204   : > { %3648 = vst [vmem:[%s5528_s17 + $0x40] sm:$0xff] %v3589_v60   ;;  %v2826_v36 = vadd.f32 %v2768_v22, %v5721_v62  ;;  %v2760_v59 = vadd.f32 %v4009_v6, %v2759_v21  ;;  %v2959_v3 = vadd.f32 %v2958_v63, %v2928_v52  ;;  %v4029_v47 = vpop.f32.mrf.mxu0 }
 0x205   : > { %v2891_v40 = vadd.f32 %v2890_v12, %v2860_v30  ;;  %v2862_v46 = vadd.f32 %v5509_v45, %v2823_v16  ;;  %v4202_v17 = vpop.f32.mrf.mxu1  ;;  %v2933_v33 = vmul.f32 %v2864_v38, %v2864_v38  ;;  %v4030_v12 = vadd.f32 %v4029_v47, %v4028_v37  ;;  %v5727_v37 = vld [vmem:[#allocation16_spill] sm:$0xff] }
 0x206   : > { %v2865_v10 = vadd.f32 %v5509_v45, %v2826_v36  ;;  %v2824_v39 = vadd.f32 %v2760_v59, %v5722_v2  ;;  %v2781_v5 = vadd.f32 %v4202_v17, %v4024_v26  ;;  %v2960_v23 = vadd.f32 %v2959_v3, %v2929_v57  ;;  %v4031_v4 = vpop.f32.mrf.mxu0 }
 0x207   : > { %v2892_v18 = vadd.f32 %v2891_v40, %v2861_v19  ;;  %v2772_v8 = vpop.f32.mrf.mxu1  ;;  %v2931_v30 = vmul.f32 %v2862_v46, %v2862_v46 }
 0x208   : > { %v3604_v29 = vpack.c.bf16 %v2865_v10, %v2864_v38  ;;  %v2863_v53 = vadd.f32 %v5509_v45, %v2824_v39  ;;  %v2961_v42 = vadd.f32 %v2960_v23, %v2930_v34  ;;  %v2773_v32 = vadd.f32 %v4018_v50, %v2772_v8  ;;  %v4032_v14 = vpop.f32.mrf.mxu0  ;;  %v5729_v23 = vld [vmem:[#allocation14_spill] sm:$0xff] }
 0x209   : > { %v2893_v41 = vadd.f32 %v2892_v18, %v2862_v46  ;;  %v4203_v25 = vpop.f32.mrf.mxu1  ;;  %v2829_v19 = vadd.f32 %v2781_v5, %v5723_v31  ;;  %v2934_v22 = vmul.f32 %v2865_v10, %v2865_v10  ;;  %v4033_v17 = vadd.f32 %v4032_v14, %v4031_v4 }
 0x20a   : > { %3651 = vst [vmem:[%s5528_s17 + $0x58] sm:$0xff] %v3604_v29   ;;  %v2932_v58 = vmul.f32 %v2863_v53, %v2863_v53  ;;  %v3599_v28 = vpack.c.bf16 %v2863_v53, %v2862_v46  ;;  %v2784_v55 = vadd.f32 %v4203_v25, %v4027_v24  ;;  %v2962_v13 = vadd.f32 %v2961_v42, %v2931_v30  ;;  %v4034_v1 = vpop.f32.mrf.mxu0 }
 0x20b   : > { %v2894_v27 = vadd.f32 %v2893_v41, %v2863_v53  ;;  %v2827_v9 = vadd.f32 %v2773_v32, %v5724_v56  ;;  %v2775_v6 = vpop.f32.mrf.mxu1  ;;  %v2868_v52 = vadd.f32 %v5509_v45, %v2829_v19  ;;  %v5730_v32 = vld [vmem:[#allocation3_spill] sm:$0xff] }
 0x20c   : > { %3650 = vst [vmem:[%s5528_s17 + $0x50] sm:$0xff] %v3599_v28   ;;  %v2830_v48 = vadd.f32 %v2784_v55, %v5725_v20  ;;  %v2776_v15 = vadd.f32 %v4021_v35, %v2775_v6  ;;  %v2963_v54 = vadd.f32 %v2962_v13, %v2932_v58  ;;  %v4035_v16 = vpop.f32.mrf.mxu0  ;;  %v2334_v4 = vadd.f32 %v5730_v32, %v5493_v43  ;;  %v5731_v58 = vld [vmem:[#allocation15_spill] sm:$0xff] }
 0x20d   : > { %v2895_v51 = vadd.f32 %v2894_v27, %v2864_v38  ;;  %v2866_v44 = vadd.f32 %v5509_v45, %v2827_v9  ;;  %v4206_v11 = vpop.f32.mrf.mxu1  ;;  %v4036_v62 = vadd.f32 %v4035_v16, %v4034_v1  ;;  %v2937_v35 = vmul.f32 %v2868_v52, %v2868_v52 }
 0x20e   : > { %v2869_v60 = vadd.f32 %v5509_v45, %v2830_v48  ;;  %v2828_v61 = vadd.f32 %v2776_v15, %v5726_v49  ;;  %v2964_v63 = vadd.f32 %v2963_v54, %v2933_v33  ;;  %v4037_v3 = vpop.f32.mrf.mxu0 }
 0x20f   : > { %v2896_v0 = vadd.f32 %v2895_v51, %v2865_v10  ;;  %v2788_v7 = vpop.f32.mrf.mxu1  ;;  %v2935_v59 = vmul.f32 %v2866_v44, %v2866_v44  ;;  %v2797_v39 = vadd.f32 %v4206_v11, %v4036_v62  ;;  %v5728_v10 = vld [vmem:[#allocation2_spill] sm:$0xff] }
 0x210   : > { %v3614_v21 = vpack.c.bf16 %v2869_v60, %v2868_v52  ;;  %v2867_v26 = vadd.f32 %v5509_v45, %v2828_v61  ;;  %v2965_v57 = vadd.f32 %v2964_v63, %v2934_v22  ;;  %v2789_v40 = vadd.f32 %v4030_v12, %v2788_v7  ;;  %v4038_v47 = vpop.f32.mrf.mxu0 }
 0x211   : > { %v2897_v36 = vadd.f32 %v2896_v0, %v2866_v44  ;;  %v4207_v46 = vpop.f32.mrf.mxu1  ;;  %v2331_v5 = vadd.f32 %v5728_v10, %v5727_v37  ;;  %v4039_v29 = vadd.f32 %v4038_v47, %v4037_v3  ;;  %v2938_v31 = vmul.f32 %v2869_v60, %v2869_v60 }
 0x212   : > { %3653 = vst [vmem:[%s5528_s17 + $0x68] sm:$0xff] %v3614_v21   ;;  %v2936_v38 = vmul.f32 %v2867_v26, %v2867_v26  ;;  %v3609_v2 = vpack.c.bf16 %v2867_v26, %v2866_v44  ;;  %v2966_v50 = vadd.f32 %v2965_v57, %v2935_v59  ;;  %v2831_v18 = vadd.f32 %v2789_v40, %v5729_v23 }
 0x213   : > { %v2898_v34 = vadd.f32 %v2897_v36, %v2867_v26  ;;  %v2791_v8 = vpop.f32.mrf.mxu1  ;;  %v2833_v30 = vadd.f32 %v2797_v39, %v2331_v5  ;;  %v2800_v25 = vadd.f32 %v4207_v46, %v4039_v29 }
 0x214   : > { %3652 = vst [vmem:[%s5528_s17 + $0x60] sm:$0xff] %v3609_v2   ;;  %v2792_v24 = vadd.f32 %v4033_v17, %v2791_v8  ;;  %v2967_v41 = vadd.f32 %v2966_v50, %v2936_v38  ;;  %v2870_v42 = vadd.f32 %v5509_v45, %v2831_v18 }
 0x215   : > { %v2899_v53 = vadd.f32 %v2898_v34, %v2868_v52  ;;  %v2834_v13 = vadd.f32 %v2800_v25, %v2334_v4  ;;  %v2872_v56 = vadd.f32 %v5509_v45, %v2833_v30 }
 0x216   : > { %v2832_v28 = vadd.f32 %v2792_v24, %v5731_v58  ;;  %v2968_v19 = vadd.f32 %v2967_v41, %v2937_v35  ;;  %v2939_v14 = vmul.f32 %v2870_v42, %v2870_v42 }
 0x217   : > { %v2900_v55 = vadd.f32 %v2899_v53, %v2869_v60  ;;  %v2873_v20 = vadd.f32 %v5509_v45, %v2834_v13  ;;  %v2941_v54 = vmul.f32 %v2872_v56, %v2872_v56 }
 0x218   : > { %v2871_v27 = vadd.f32 %v5509_v45, %v2832_v28  ;;  %v2969_v6 = vadd.f32 %v2968_v19, %v2938_v31 }
 0x219   : > { %v2901_v9 = vadd.f32 %v2900_v55, %v2870_v42  ;;  %v3624_v51 = vpack.c.bf16 %v2873_v20, %v2872_v56  ;;  %v2942_v11 = vmul.f32 %v2873_v20, %v2873_v20 }
 0x21a   : > { %v2940_v48 = vmul.f32 %v2871_v27, %v2871_v27  ;;  %v3619_v43 = vpack.c.bf16 %v2871_v27, %v2870_v42  ;;  %v2970_v15 = vadd.f32 %v2969_v6, %v2939_v14 }
 0x21b   : > { %v2902_v33 = vadd.f32 %v2901_v9, %v2871_v27  ;;  %3655 = vst [vmem:[%s5528_s17 + $0x78] sm:$0xff] %v3624_v51  }
 0x21c   : > { %3654 = vst [vmem:[%s5528_s17 + $0x70] sm:$0xff] %v3619_v43   ;;  %v2971_v1 = vadd.f32 %v2970_v15, %v2940_v48 }
 0x21d   : > { %v2903_v44 = vadd.f32 %v2902_v33, %v2872_v56 }
 0x21e   : > { %v2972_v60 = vadd.f32 %v2971_v1, %v2941_v54 }
 0x21f   : > { %v2904_v52 = vadd.f32 %v2903_v44, %v2873_v20 }
 0x220   : > { %v2973_v61 = vadd.f32 %v2972_v60, %v2942_v11 }
 0x221   : > { %v2905_v49 = vrot.slane %v2904_v52, 4 }
 0x222   : > { %v2974_v63 = vrot.slane %v2973_v61, 4 }
 0x223   : > { %v2906_v22 = vadd.f32 %v2905_v49, %v2904_v52 }
 0x224   : > { %v2975_v45 = vadd.f32 %v2974_v63, %v2973_v61 }
 0x225   : > { %v2907_v12 = vrot.slane %v2906_v22, 2 }
 0x226   : > { %v2976_v16 = vrot.slane %v2975_v45, 2 }
 0x227   : > { %v2908_v0 = vadd.f32 %v2907_v12, %v2906_v22 }
 0x228   : > { %v2977_v21 = vadd.f32 %v2976_v16, %v2975_v45 }
 0x229   : > { %v2909_v7 = vrot.slane %v2908_v0, 1 }
 0x22a   : > { %v2978_v26 = vrot.slane %v2977_v21, 1 }
 0x22b   : > { %v2910_v62 = vadd.f32 %v2909_v7, %v2908_v0 }
 0x22c   : > { %v2979_v36 = vadd.f32 %v2978_v26, %v2977_v21 }
 0x22e   : > { %v2981_v59 = vsel %vm878_vm0, %v2910_v62, %v2979_v36 }
 0x22f   : > { %2982 = vst [vmem:[%s492_s20] sm:$0x3] %v2981_v59 }
 0x230 PF: > { %s19_s27 = sadd.s32 1, %s4345_s27   ;;  %s5732_s26 = smov %s4341_s2 }
 0x231   : > { %p16_p5 = scmp.ge.s32.totalorder %s19_s27, 4   ;;  %s5733_s2 = smov %s5735_s28 }
 0x233   :  { %18 = sbr.rel (!%p16_p5) target bundleno = 2 (0x2), region = 96 }

</bundles_post_ra>
